<compile_context>
chip_gen: v6e
topology: v6e:2x2x1
jax: 0.10.0
libtpu: 0.0.40
codegen_flags: <defaults>
</compile_context>

<pallas_src>
import jax
import jax.numpy as jnp
from jax.experimental import pallas as pl
from jax.experimental.pallas import tpu as pltpu


# ---------------------------------------------------------------------------
# Pallas kernels
# ---------------------------------------------------------------------------

_VMEM_LIMIT_BYTES = 32 * 1024 * 1024  # explicit scoped-VMEM budget (safe on v5e/v6e/v7x)


def _compiler_params():
    return pltpu.CompilerParams(
        dimension_semantics=("parallel",),     # shard the row/batch grid across TCs (v7x)
        vmem_limit_bytes=_VMEM_LIMIT_BYTES,
    )


def _cdiv(a, b):
    return (a + b - 1) // b


def _round_up(x, m):
    return ((x + m - 1) // m) * m


def _row_tile(m, tile_m):
    """Row tile: multiple of 16 (bf16 sublane packing), capped so the grid keeps
    >= 2 steps when m allows (both v7x TensorCores get work)."""
    return min(tile_m, max(16, _round_up(_cdiv(m, 2), 16)))


def _matmul_bias_elu_kernel(x_ref, w_ref, b_ref, o_ref):
    # x: (tm, K) bf16, w: (K, N) bf16, b: (1, N) f32 -> o: (tm, N) bf16
    y = jnp.dot(x_ref[...], w_ref[...], preferred_element_type=jnp.float32)
    y = y + b_ref[...]
    # ELU (alpha=1.0) in f32; clamp exp arg so padded/garbage tail rows stay finite.
    y = jnp.where(y > 0, y, jnp.exp(jnp.minimum(y, 0.0)) - 1.0)
    o_ref[...] = y.astype(o_ref.dtype)


def matmul_bias_elu(x, w, b, *, tile_m=4096):
    """(M, K) @ (K, N) + bias, ELU.  Tiled & pipelined over M, bf16 operands."""
    M, K = x.shape
    N = w.shape[1]
    tm = _row_tile(M, tile_m)
    grid = (_cdiv(M, tm),)
    return pl.pallas_call(
        _matmul_bias_elu_kernel,
        out_shape=jax.ShapeDtypeStruct((M, N), jnp.bfloat16),
        grid=grid,
        in_specs=[
            pl.BlockSpec((tm, K), lambda i: (i, 0)),   # activations stream
            pl.BlockSpec((K, N), lambda i: (0, 0)),    # weight resident
            pl.BlockSpec((1, N), lambda i: (0, 0)),    # bias resident
        ],
        out_specs=pl.BlockSpec((tm, N), lambda i: (i, 0)),
        compiler_params=_compiler_params(),
    )(x, w, b)


def _linear_ln_tanh_kernel(x_ref, w_ref, p_ref, o_ref):
    # x: (tb, 3136) bf16, w: (3136, 15) bf16, p: (3, 15) f32 = [bias; gamma; beta]
    y = jnp.dot(x_ref[...], w_ref[...], preferred_element_type=jnp.float32)
    y = y + p_ref[0:1, :]
    mean = jnp.mean(y, axis=-1, keepdims=True)
    var = jnp.mean((y - mean) ** 2, axis=-1, keepdims=True)   # biased, like nn.LayerNorm
    yn = (y - mean) * jax.lax.rsqrt(var + 1e-5)
    yn = yn * p_ref[1:2, :] + p_ref[2:3, :]
    o_ref[...] = jnp.tanh(yn)


def linear_ln_tanh(x, w, fc_params, *, tile_b=1024):
    B, K = x.shape
    N = w.shape[1]
    tb = _row_tile(B, tile_b)
    grid = (_cdiv(B, tb),)
    return pl.pallas_call(
        _linear_ln_tanh_kernel,
        out_shape=jax.ShapeDtypeStruct((B, N), jnp.float32),
        grid=grid,
        in_specs=[
            pl.BlockSpec((tb, K), lambda i: (i, 0)),
            pl.BlockSpec((K, N), lambda i: (0, 0)),
            pl.BlockSpec((3, N), lambda i: (0, 0)),    # [bias; gamma; beta] merged
        ],
        out_specs=pl.BlockSpec((tb, N), lambda i: (i, 0)),
        compiler_params=_compiler_params(),
    )(x, w, fc_params)


# ---------------------------------------------------------------------------
# Glue: space-to-depth, cheap im2col, lane-grouped conv1 patches
# ---------------------------------------------------------------------------

def _space_to_depth(x, f):
    """(B,H,W,C) -> (B,H/f,W/f,f*f*C); new channel order (di, dj, c)."""
    b, h, w, c = x.shape
    x = x.reshape(b, h // f, f, w // f, f, c)
    x = jnp.transpose(x, (0, 1, 3, 2, 4, 5))
    return x.reshape(b, h // f, w // f, f * f * c)


def _im2col_s1(x, k):
    """Stride-1 valid im2col: (B,H,W,C) -> (B*OH*OW, k*k*C); columns in (kh,kw,c) order."""
    b, h, w, c = x.shape
    oh, ow = h - k + 1, w - k + 1
    cols = [x[:, i:i + oh, j:j + ow, :] for i in range(k) for j in range(k)]
    return jnp.concatenate(cols, axis=-1).reshape(b * oh * ow, k * k * c)


def _conv1_grouped_patches(xs):
    """xs: s2d(4) input (B,21,21,16*ic).  One patch row covers 4 horizontally
    adjacent conv1 output pixels (output group g -> s2d columns 4g..4g+4), so
    the matmul output is 128 lanes wide.  Columns in (bi, bj, cc) order."""
    b, _, _, c = xs.shape
    cols = []
    for bi in range(2):
        for bj in range(5):
            cols.append(xs[:, bi:bi + 20, bj:bj + 17:4, :])   # (B,20,5,c): s2d cols bj+4g
    return jnp.concatenate(cols, axis=-1).reshape(b * 100, 10 * c)


# ---------------------------------------------------------------------------
# Parameters: init (PyTorch layout), spectral norm, one-time kernel re-layout
# ---------------------------------------------------------------------------

def spectral_normalize(w_oihw, key, n_iters=5):
    """Deterministic spectral norm (power iteration) of a conv weight."""
    oc = w_oihw.shape[0]
    wm = w_oihw.reshape(oc, -1)
    u = jax.random.normal(key, (oc,), jnp.float32)
    u = u / (jnp.linalg.norm(u) + 1e-12)
    v = None
    for _ in range(n_iters):
        v = wm.T @ u
        v = v / (jnp.linalg.norm(v) + 1e-12)
        u = wm @ v
        u = u / (jnp.linalg.norm(u) + 1e-12)
    sigma = u @ (wm @ v)
    return w_oihw / sigma


def init_params(key, stacked_frames=4):
    """Parameters stored in PyTorch layouts (OIHW conv weights, (c,h,w)-ordered FC rows)."""
    ks = jax.random.split(key, 16)

    def uinit(k, shape, fan_in):
        bound = 1.0 / jnp.sqrt(jnp.float32(fan_in))
        return jax.random.uniform(k, shape, jnp.float32, -bound, bound)

    w1 = uinit(ks[0], (32, stacked_frames, 8, 8), stacked_frames * 8 * 8)
    b1 = uinit(ks[1], (32,), stacked_frames * 8 * 8)
    w2 = uinit(ks[2], (64, 32, 4, 4), 32 * 4 * 4)
    b2 = uinit(ks[3], (64,), 32 * 4 * 4)
    w3 = uinit(ks[4], (64, 64, 3, 3), 64 * 3 * 3)
    b3 = uinit(ks[5], (64,), 64 * 3 * 3)

    # spectral norm (n_power_iterations = 5), deterministic u init
    w1 = spectral_normalize(w1, ks[6], 5)
    w2 = spectral_normalize(w2, ks[7], 5)
    w3 = spectral_normalize(w3, ks[8], 5)

    wfc = uinit(ks[9], (3136, 15), 3136)   # Linear(3136, 15), stored (in, out)
    bfc = uinit(ks[10], (15,), 3136)
    gamma = jnp.ones((15,), jnp.float32)
    beta = jnp.zeros((15,), jnp.float32)

    return dict(w1=w1, b1=b1, w2=w2, b2=b2, w3=w3, b3=b3,
                wfc=wfc, bfc=bfc, gamma=gamma, beta=beta)


def prepare_kernel_params(p):
    """One-time weight re-layout + bf16 cast (all transposes/grouping land on weights)."""
    ic = p["w1"].shape[1]

    # conv1: OIHW -> s2d(4) 2x2 weight (bi,bj,cc,oc) -> x4 lane-grouped block-banded (160*ic, 128)
    w1 = jnp.transpose(p["w1"], (2, 3, 1, 0))                 # (8,8,ic,32)  (kh,kw,ic,oc)
    w1 = w1.reshape(2, 4, 2, 4, ic, 32)                       # (bi,di,bj,dj,ic,oc)
    w1 = jnp.transpose(w1, (0, 2, 1, 3, 4, 5))                # (bi,bj,di,dj,ic,oc)
    cc1 = 16 * ic
    w1 = w1.reshape(2, 2, cc1, 32)                            # (bi,bj,cc,oc)
    w1g = jnp.zeros((2, 5, cc1, 4, 32), jnp.float32)
    for dw in range(4):            # output sub-pixel within a group of 4 (ow = 4g + dw)
        for dj in range(2):        # horizontal tap of the 2x2 s2d conv (s2d col = 4g + dw + dj)
            w1g = w1g.at[:, dw + dj, :, dw, :].set(w1[:, dj, :, :])
    w1g = w1g.reshape(2 * 5 * cc1, 4 * 32)                    # rows (bi,bj,cc), cols (dw,oc)
    b1g = jnp.tile(p["b1"], 4).reshape(1, 128)

    # conv2: OIHW -> s2d(2) 2x2 weight -> (512, 64), rows in (bi,bj,di,dj,ic) order
    w2 = jnp.transpose(p["w2"], (2, 3, 1, 0))                 # (4,4,32,64)
    w2 = w2.reshape(2, 2, 2, 2, 32, 64)                       # (bi,di,bj,dj,ic,oc)
    w2 = jnp.transpose(w2, (0, 2, 1, 3, 4, 5)).reshape(512, 64)

    # conv3: OIHW -> (576, 64), rows in (kh,kw,ic) order
    w3 = jnp.transpose(p["w3"], (2, 3, 1, 0)).reshape(576, 64)

    # FC: permute rows (c,h,w) -> (h,w,c) once so the NHWC flatten needs no transpose
    wfc = p["wfc"].reshape(64, 7, 7, 15).transpose(1, 2, 0, 3).reshape(3136, 15)
    fc_params = jnp.stack([p["bfc"], p["gamma"], p["beta"]], axis=0)   # (3,15)

    return dict(
        w1=w1g.astype(jnp.bfloat16), b1=b1g.astype(jnp.float32),
        w2=w2.astype(jnp.bfloat16), b2=p["b2"].reshape(1, -1).astype(jnp.float32),
        w3=w3.astype(jnp.bfloat16), b3=p["b3"].reshape(1, -1).astype(jnp.float32),
        wfc=wfc.astype(jnp.bfloat16), fc_params=fc_params.astype(jnp.float32),
    )


# ---------------------------------------------------------------------------
# Forward pass (== ContrastiveLearner.forward, i.e. the backbone)
# ---------------------------------------------------------------------------

@jax.jit
def contrastive_forward(kp, x_nchw):
    b = x_nchw.shape[0]
    x = jnp.transpose(x_nchw, (0, 2, 3, 1)).astype(jnp.bfloat16)       # NCHW -> NHWC bf16
    xs = _space_to_depth(x, 4)                                         # (B,21,21,16*ic)
    y1 = matmul_bias_elu(_conv1_grouped_patches(xs), kp["w1"], kp["b1"])   # (B*100, 128)
    y1 = y1.reshape(b, 20, 20, 32)               # lane order (dw, oc) -> pure reshape, no transpose
    x2 = _space_to_depth(y1, 2)                                        # (B,10,10,128)
    y2 = matmul_bias_elu(_im2col_s1(x2, 2), kp["w2"], kp["b2"])        # (B*81, 64)
    y2 = y2.reshape(b, 9, 9, 64)
    y3 = matmul_bias_elu(_im2col_s1(y2, 3), kp["w3"], kp["b3"])        # (B*49, 64)
    y3 = y3.reshape(b, 49 * 64)                  # NHWC flatten; wfc rows permuted to match
    return linear_ln_tanh(y3, kp["wfc"], kp["fc_params"])              # (B, 15) f32


# ---------------------------------------------------------------------------
# Pure-JAX reference (PyTorch layouts/semantics), for correctness checks
# ---------------------------------------------------------------------------

def reference_forward(params, x_nchw, matmul_dtype=jnp.float32):
    """Reference with original OIHW weights / NCHW flatten; matmul_dtype mimics the
    kernel's bf16 operand + bf16 activation-storage choice when set to bfloat16."""
    dn = ("NCHW", "OIHW", "NCHW")

    def conv(x, w, b, s):
        y = jax.lax.conv_general_dilated(
            x.astype(matmul_dtype), w.astype(matmul_dtype), (s, s), "VALID",
            dimension_numbers=dn, preferred_element_type=jnp.float32)
        y = jax.nn.elu(y + b[None, :, None, None])
        return y.astype(matmul_dtype)

    x = conv(x_nchw, params["w1"], params["b1"], 4)
    x = conv(x, params["w2"], params["b2"], 2)
    x = conv(x, params["w3"], params["b3"], 1)
    x = x.reshape(x.shape[0], -1)                                      # (c, h, w) flatten
    y = jnp.dot(x.astype(matmul_dtype), params["wfc"].astype(matmul_dtype),
                preferred_element_type=jnp.float32) + params["bfc"]
    mean = jnp.mean(y, axis=-1, keepdims=True)
    var = jnp.mean((y - mean) ** 2, axis=-1, keepdims=True)
    yn = (y - mean) * jax.lax.rsqrt(var + 1e-5)
    return jnp.tanh(yn * params["gamma"] + params["beta"])


if __name__ == "__main__":
    key = jax.random.PRNGKey(0)
    k_param, k_x = jax.random.split(key)

    stacked_frames = 4
    batch = 2
    # 84x84 input is implied by Linear(3136 = 64*7*7, 15) after the conv stack.
    x = jax.random.uniform(k_x, (batch, stacked_frames, 84, 84), jnp.float32)

    params = init_params(k_param, stacked_frames=stacked_frames)
    kparams = prepare_kernel_params(params)

    out = jax.block_until_ready(contrastive_forward(kparams, x))
    assert out.shape == (batch, 15), out.shape

    # Tight check vs a reference with matched bf16 operand / activation rounding.
    ref_bf16 = reference_forward(params, x, jnp.bfloat16)
    assert jnp.allclose(out, ref_bf16, atol=2e-2, rtol=2e-2), \
        float(jnp.max(jnp.abs(out - ref_bf16)))

    # Loose sanity check vs the full-f32 reference (bounded tanh outputs).
    ref_f32 = reference_forward(params, x, jnp.float32)
    assert jnp.allclose(out, ref_f32, atol=1.5e-1, rtol=1.5e-1), \
        float(jnp.max(jnp.abs(out - ref_f32)))

    print("KERNEL_OK")
</pallas_src>

<mosaic_0001>
module attributes {stable_mosaic.version = 11 : i64} {
  func.func @_matmul_bias_elu_kernel(%arg0: i32, %arg1: memref<112x640xbf16, #tpu.memory_space<vmem>>, %arg2: memref<640x128xbf16, #tpu.memory_space<vmem>>, %arg3: memref<1x128xf32, #tpu.memory_space<vmem>>, %arg4: memref<112x128xbf16, #tpu.memory_space<vmem>>) attributes {dimension_semantics = [#tpu.dimension_semantics<parallel>], iteration_bounds = array<i64: 2>, scalar_prefetch = 0 : i64, scratch_operands = 0 : i64, tpu.core_type = #tpu.core_type<tc>, window_params = [{transform_indices = @transform_0, window_bounds = array<i64: 112, 640>}, {pipeline_mode = #tpu.pipeline_mode<synchronous>, transform_indices = @transform_1, window_bounds = array<i64: 640, 128>}, {pipeline_mode = #tpu.pipeline_mode<synchronous>, transform_indices = @transform_2, window_bounds = array<i64: 1, 128>}, {transform_indices = @transform_3, window_bounds = array<i64: 112, 128>}]} {
    %c0 = arith.constant 0 : index
    %c0_0 = arith.constant 0 : index
    %0 = vector.load %arg1[%c0, %c0_0] : memref<112x640xbf16, #tpu.memory_space<vmem>>, vector<112x640xbf16>
    %c0_1 = arith.constant 0 : index
    %c0_2 = arith.constant 0 : index
    %1 = vector.load %arg2[%c0_1, %c0_2] : memref<640x128xbf16, #tpu.memory_space<vmem>>, vector<640x128xbf16>
    %cst = arith.constant dense<0.000000e+00> : vector<112x128xf32>
    %2 = tpu.matmul %0, %1, %cst {dimension_numbers = #tpu.dot_dimension_numbers<[1], [0], [0], [1], [0, 0, 1, 1], [], []>} : vector<112x640xbf16>, vector<640x128xbf16>, vector<112x128xf32> -> vector<112x128xf32>
    %c0_3 = arith.constant 0 : index
    %c0_4 = arith.constant 0 : index
    %3 = vector.load %arg3[%c0_3, %c0_4] : memref<1x128xf32, #tpu.memory_space<vmem>>, vector<1x128xf32>
    %4 = vector.broadcast %3 : vector<1x128xf32> to vector<112x128xf32>
    %5 = arith.addf %2, %4 : vector<112x128xf32>
    %cst_5 = arith.constant 0.000000e+00 : f32
    %6 = vector.broadcast %cst_5 : f32 to vector<112x128xf32>
    %7 = arith.cmpf ogt, %5, %6 : vector<112x128xf32>
    %cst_6 = arith.constant 0.000000e+00 : f32
    %8 = vector.broadcast %cst_6 : f32 to vector<112x128xf32>
    %9 = arith.minimumf %5, %8 : vector<112x128xf32>
    %10 = math.exp %9 : vector<112x128xf32>
    %cst_7 = arith.constant 1.000000e+00 : f32
    %11 = vector.broadcast %cst_7 : f32 to vector<112x128xf32>
    %12 = arith.subf %10, %11 : vector<112x128xf32>
    %13 = arith.select %7, %5, %12 : vector<112x128xi1>, vector<112x128xf32>
    %14 = arith.truncf %13 : vector<112x128xf32> to vector<112x128xbf16>
    %c0_8 = arith.constant 0 : index
    %c0_9 = arith.constant 0 : index
    %15 = vector.load %arg4[%c0_8, %c0_9] : memref<112x128xbf16, #tpu.memory_space<vmem>>, vector<112x128xbf16>
    tpu.vector_store %arg4[%c0_8, %c0_9], %14 {strides = array<i32>} : memref<112x128xbf16, #tpu.memory_space<vmem>>, vector<112x128xbf16>,
    return
  }
  func.func @transform_0(%arg0: i32) -> (i32, i32) {
    %c0_i32 = arith.constant 0 : i32
    %c0_i32_0 = arith.constant 0 : i32
    return %arg0, %c0_i32 : i32, i32
  }
  func.func @transform_1(%arg0: i32) -> (i32, i32) {
    %c0_i32 = arith.constant 0 : i32
    %c0_i32_0 = arith.constant 0 : i32
    %c0_i32_1 = arith.constant 0 : i32
    return %c0_i32, %c0_i32_0 : i32, i32
  }
  func.func @transform_2(%arg0: i32) -> (i32, i32) {
    %c0_i32 = arith.constant 0 : i32
    %c0_i32_0 = arith.constant 0 : i32
    %c0_i32_1 = arith.constant 0 : i32
    return %c0_i32, %c0_i32_0 : i32, i32
  }
  func.func @transform_3(%arg0: i32) -> (i32, i32) {
    %c0_i32 = arith.constant 0 : i32
    %c0_i32_0 = arith.constant 0 : i32
    return %arg0, %c0_i32 : i32, i32
  }
}

module attributes {stable_mosaic.version = 11 : i64} {
  func.func @_matmul_bias_elu_kernel(%arg0: i32, %arg1: memref<96x512xbf16, #tpu.memory_space<vmem>>, %arg2: memref<512x64xbf16, #tpu.memory_space<vmem>>, %arg3: memref<1x64xf32, #tpu.memory_space<vmem>>, %arg4: memref<96x64xbf16, #tpu.memory_space<vmem>>) attributes {dimension_semantics = [#tpu.dimension_semantics<parallel>], iteration_bounds = array<i64: 2>, scalar_prefetch = 0 : i64, scratch_operands = 0 : i64, tpu.core_type = #tpu.core_type<tc>, window_params = [{transform_indices = @transform_0, window_bounds = array<i64: 96, 512>}, {pipeline_mode = #tpu.pipeline_mode<synchronous>, transform_indices = @transform_1, window_bounds = array<i64: 512, 64>}, {pipeline_mode = #tpu.pipeline_mode<synchronous>, transform_indices = @transform_2, window_bounds = array<i64: 1, 64>}, {transform_indices = @transform_3, window_bounds = array<i64: 96, 64>}]} {
    %c0 = arith.constant 0 : index
    %c0_0 = arith.constant 0 : index
    %0 = vector.load %arg1[%c0, %c0_0] : memref<96x512xbf16, #tpu.memory_space<vmem>>, vector<96x512xbf16>
    %c0_1 = arith.constant 0 : index
    %c0_2 = arith.constant 0 : index
    %1 = vector.load %arg2[%c0_1, %c0_2] : memref<512x64xbf16, #tpu.memory_space<vmem>>, vector<512x64xbf16>
    %cst = arith.constant dense<0.000000e+00> : vector<96x64xf32>
    %2 = tpu.matmul %0, %1, %cst {dimension_numbers = #tpu.dot_dimension_numbers<[1], [0], [0], [1], [0, 0, 1, 1], [], []>} : vector<96x512xbf16>, vector<512x64xbf16>, vector<96x64xf32> -> vector<96x64xf32>
    %c0_3 = arith.constant 0 : index
    %c0_4 = arith.constant 0 : index
    %3 = vector.load %arg3[%c0_3, %c0_4] : memref<1x64xf32, #tpu.memory_space<vmem>>, vector<1x64xf32>
    %4 = vector.broadcast %3 : vector<1x64xf32> to vector<96x64xf32>
    %5 = arith.addf %2, %4 : vector<96x64xf32>
    %cst_5 = arith.constant 0.000000e+00 : f32
    %6 = vector.broadcast %cst_5 : f32 to vector<96x64xf32>
    %7 = arith.cmpf ogt, %5, %6 : vector<96x64xf32>
    %cst_6 = arith.constant 0.000000e+00 : f32
    %8 = vector.broadcast %cst_6 : f32 to vector<96x64xf32>
    %9 = arith.minimumf %5, %8 : vector<96x64xf32>
    %10 = math.exp %9 : vector<96x64xf32>
    %cst_7 = arith.constant 1.000000e+00 : f32
    %11 = vector.broadcast %cst_7 : f32 to vector<96x64xf32>
    %12 = arith.subf %10, %11 : vector<96x64xf32>
    %13 = arith.select %7, %5, %12 : vector<96x64xi1>, vector<96x64xf32>
    %14 = arith.truncf %13 : vector<96x64xf32> to vector<96x64xbf16>
    %c0_8 = arith.constant 0 : index
    %c0_9 = arith.constant 0 : index
    %15 = vector.load %arg4[%c0_8, %c0_9] : memref<96x64xbf16, #tpu.memory_space<vmem>>, vector<96x64xbf16>
    tpu.vector_store %arg4[%c0_8, %c0_9], %14 {strides = array<i32>} : memref<96x64xbf16, #tpu.memory_space<vmem>>, vector<96x64xbf16>,
    return
  }
  func.func @transform_0(%arg0: i32) -> (i32, i32) {
    %c0_i32 = arith.constant 0 : i32
    %c0_i32_0 = arith.constant 0 : i32
    return %arg0, %c0_i32 : i32, i32
  }
  func.func @transform_1(%arg0: i32) -> (i32, i32) {
    %c0_i32 = arith.constant 0 : i32
    %c0_i32_0 = arith.constant 0 : i32
    %c0_i32_1 = arith.constant 0 : i32
    return %c0_i32, %c0_i32_0 : i32, i32
  }
  func.func @transform_2(%arg0: i32) -> (i32, i32) {
    %c0_i32 = arith.constant 0 : i32
    %c0_i32_0 = arith.constant 0 : i32
    %c0_i32_1 = arith.constant 0 : i32
    return %c0_i32, %c0_i32_0 : i32, i32
  }
  func.func @transform_3(%arg0: i32) -> (i32, i32) {
    %c0_i32 = arith.constant 0 : i32
    %c0_i32_0 = arith.constant 0 : i32
    return %arg0, %c0_i32 : i32, i32
  }
}

module attributes {stable_mosaic.version = 11 : i64} {
  func.func @_matmul_bias_elu_kernel(%arg0: i32, %arg1: memref<64x576xbf16, #tpu.memory_space<vmem>>, %arg2: memref<576x64xbf16, #tpu.memory_space<vmem>>, %arg3: memref<1x64xf32, #tpu.memory_space<vmem>>, %arg4: memref<64x64xbf16, #tpu.memory_space<vmem>>) attributes {dimension_semantics = [#tpu.dimension_semantics<parallel>], iteration_bounds = array<i64: 2>, scalar_prefetch = 0 : i64, scratch_operands = 0 : i64, tpu.core_type = #tpu.core_type<tc>, window_params = [{transform_indices = @transform_0, window_bounds = array<i64: 64, 576>}, {pipeline_mode = #tpu.pipeline_mode<synchronous>, transform_indices = @transform_1, window_bounds = array<i64: 576, 64>}, {pipeline_mode = #tpu.pipeline_mode<synchronous>, transform_indices = @transform_2, window_bounds = array<i64: 1, 64>}, {transform_indices = @transform_3, window_bounds = array<i64: 64, 64>}]} {
    %c0 = arith.constant 0 : index
    %c0_0 = arith.constant 0 : index
    %0 = vector.load %arg1[%c0, %c0_0] : memref<64x576xbf16, #tpu.memory_space<vmem>>, vector<64x576xbf16>
    %c0_1 = arith.constant 0 : index
    %c0_2 = arith.constant 0 : index
    %1 = vector.load %arg2[%c0_1, %c0_2] : memref<576x64xbf16, #tpu.memory_space<vmem>>, vector<576x64xbf16>
    %cst = arith.constant dense<0.000000e+00> : vector<64x64xf32>
    %2 = tpu.matmul %0, %1, %cst {dimension_numbers = #tpu.dot_dimension_numbers<[1], [0], [0], [1], [0, 0, 1, 1], [], []>} : vector<64x576xbf16>, vector<576x64xbf16>, vector<64x64xf32> -> vector<64x64xf32>
    %c0_3 = arith.constant 0 : index
    %c0_4 = arith.constant 0 : index
    %3 = vector.load %arg3[%c0_3, %c0_4] : memref<1x64xf32, #tpu.memory_space<vmem>>, vector<1x64xf32>
    %4 = vector.broadcast %3 : vector<1x64xf32> to vector<64x64xf32>
    %5 = arith.addf %2, %4 : vector<64x64xf32>
    %cst_5 = arith.constant 0.000000e+00 : f32
    %6 = vector.broadcast %cst_5 : f32 to vector<64x64xf32>
    %7 = arith.cmpf ogt, %5, %6 : vector<64x64xf32>
    %cst_6 = arith.constant 0.000000e+00 : f32
    %8 = vector.broadcast %cst_6 : f32 to vector<64x64xf32>
    %9 = arith.minimumf %5, %8 : vector<64x64xf32>
    %10 = math.exp %9 : vector<64x64xf32>
    %cst_7 = arith.constant 1.000000e+00 : f32
    %11 = vector.broadcast %cst_7 : f32 to vector<64x64xf32>
    %12 = arith.subf %10, %11 : vector<64x64xf32>
    %13 = arith.select %7, %5, %12 : vector<64x64xi1>, vector<64x64xf32>
    %14 = arith.truncf %13 : vector<64x64xf32> to vector<64x64xbf16>
    %c0_8 = arith.constant 0 : index
    %c0_9 = arith.constant 0 : index
    %15 = vector.load %arg4[%c0_8, %c0_9] : memref<64x64xbf16, #tpu.memory_space<vmem>>, vector<64x64xbf16>
    tpu.vector_store %arg4[%c0_8, %c0_9], %14 {strides = array<i32>} : memref<64x64xbf16, #tpu.memory_space<vmem>>, vector<64x64xbf16>,
    return
  }
  func.func @transform_0(%arg0: i32) -> (i32, i32) {
    %c0_i32 = arith.constant 0 : i32
    %c0_i32_0 = arith.constant 0 : i32
    return %arg0, %c0_i32 : i32, i32
  }
  func.func @transform_1(%arg0: i32) -> (i32, i32) {
    %c0_i32 = arith.constant 0 : i32
    %c0_i32_0 = arith.constant 0 : i32
    %c0_i32_1 = arith.constant 0 : i32
    return %c0_i32, %c0_i32_0 : i32, i32
  }
  func.func @transform_2(%arg0: i32) -> (i32, i32) {
    %c0_i32 = arith.constant 0 : i32
    %c0_i32_0 = arith.constant 0 : i32
    %c0_i32_1 = arith.constant 0 : i32
    return %c0_i32, %c0_i32_0 : i32, i32
  }
  func.func @transform_3(%arg0: i32) -> (i32, i32) {
    %c0_i32 = arith.constant 0 : i32
    %c0_i32_0 = arith.constant 0 : i32
    return %arg0, %c0_i32 : i32, i32
  }
}

module attributes {stable_mosaic.version = 11 : i64} {
  func.func @_linear_ln_tanh_kernel(%arg0: i32, %arg1: memref<16x3136xbf16, #tpu.memory_space<vmem>>, %arg2: memref<3136x15xbf16, #tpu.memory_space<vmem>>, %arg3: memref<3x15xf32, #tpu.memory_space<vmem>>, %arg4: memref<16x15xf32, #tpu.memory_space<vmem>>) attributes {dimension_semantics = [#tpu.dimension_semantics<parallel>], iteration_bounds = array<i64: 1>, scalar_prefetch = 0 : i64, scratch_operands = 0 : i64, tpu.core_type = #tpu.core_type<tc>, window_params = [{transform_indices = @transform_0, window_bounds = array<i64: 16, 3136>}, {pipeline_mode = #tpu.pipeline_mode<synchronous>, transform_indices = @transform_1, window_bounds = array<i64: 3136, 15>}, {pipeline_mode = #tpu.pipeline_mode<synchronous>, transform_indices = @transform_2, window_bounds = array<i64: 3, 15>}, {transform_indices = @transform_3, window_bounds = array<i64: 16, 15>}]} {
    %c0 = arith.constant 0 : index
    %c0_0 = arith.constant 0 : index
    %0 = vector.load %arg1[%c0, %c0_0] : memref<16x3136xbf16, #tpu.memory_space<vmem>>, vector<16x3136xbf16>
    %c0_1 = arith.constant 0 : index
    %c0_2 = arith.constant 0 : index
    %1 = vector.load %arg2[%c0_1, %c0_2] : memref<3136x15xbf16, #tpu.memory_space<vmem>>, vector<3136x15xbf16>
    %cst = arith.constant dense<0.000000e+00> : vector<16x15xf32>
    %2 = tpu.matmul %0, %1, %cst {dimension_numbers = #tpu.dot_dimension_numbers<[1], [0], [0], [1], [0, 0, 1, 1], [], []>} : vector<16x3136xbf16>, vector<3136x15xbf16>, vector<16x15xf32> -> vector<16x15xf32>
    %c0_3 = arith.constant 0 : index
    %c0_4 = arith.constant 0 : index
    %3 = vector.load %arg3[%c0_3, %c0_4] : memref<3x15xf32, #tpu.memory_space<vmem>>, vector<1x15xf32>
    %4 = vector.broadcast %3 : vector<1x15xf32> to vector<16x15xf32>
    %5 = arith.addf %2, %4 : vector<16x15xf32>
    %cst_5 = arith.constant dense<0.000000e+00> : vector<16xf32>
    %6 = vector.multi_reduction <add>, %5, %cst_5 [1] : vector<16x15xf32> to vector<16xf32>
    %7 = vector.shape_cast %6 : vector<16xf32> to vector<16x1xf32>
    %cst_6 = arith.constant 1.500000e+01 : f32
    %8 = vector.broadcast %cst_6 : f32 to vector<16x1xf32>
    %9 = arith.divf %7, %8 : vector<16x1xf32>
    %10 = vector.broadcast %9 : vector<16x1xf32> to vector<16x15xf32>
    %11 = arith.subf %5, %10 : vector<16x15xf32>
    %12 = arith.mulf %11, %11 : vector<16x15xf32>
    %cst_7 = arith.constant dense<0.000000e+00> : vector<16xf32>
    %13 = vector.multi_reduction <add>, %12, %cst_7 [1] : vector<16x15xf32> to vector<16xf32>
    %14 = vector.shape_cast %13 : vector<16xf32> to vector<16x1xf32>
    %cst_8 = arith.constant 1.500000e+01 : f32
    %15 = vector.broadcast %cst_8 : f32 to vector<16x1xf32>
    %16 = arith.divf %14, %15 : vector<16x1xf32>
    %17 = vector.broadcast %9 : vector<16x1xf32> to vector<16x15xf32>
    %18 = arith.subf %5, %17 : vector<16x15xf32>
    %cst_9 = arith.constant 9.99999974E-6 : f32
    %19 = vector.broadcast %cst_9 : f32 to vector<16x1xf32>
    %20 = arith.addf %16, %19 : vector<16x1xf32>
    %21 = math.rsqrt %20 : vector<16x1xf32>
    %22 = vector.broadcast %21 : vector<16x1xf32> to vector<16x15xf32>
    %23 = arith.mulf %18, %22 : vector<16x15xf32>
    %c1 = arith.constant 1 : index
    %c0_10 = arith.constant 0 : index
    %24 = vector.load %arg3[%c1, %c0_10] : memref<3x15xf32, #tpu.memory_space<vmem>>, vector<1x15xf32>
    %25 = vector.broadcast %24 : vector<1x15xf32> to vector<16x15xf32>
    %26 = arith.mulf %23, %25 : vector<16x15xf32>
    %c2 = arith.constant 2 : index
    %c0_11 = arith.constant 0 : index
    %27 = vector.load %arg3[%c2, %c0_11] : memref<3x15xf32, #tpu.memory_space<vmem>>, vector<1x15xf32>
    %28 = vector.broadcast %27 : vector<1x15xf32> to vector<16x15xf32>
    %29 = arith.addf %26, %28 : vector<16x15xf32>
    %30 = math.tanh %29 : vector<16x15xf32>
    %c0_12 = arith.constant 0 : index
    %c0_13 = arith.constant 0 : index
    %31 = vector.load %arg4[%c0_12, %c0_13] : memref<16x15xf32, #tpu.memory_space<vmem>>, vector<16x15xf32>
    tpu.vector_store %arg4[%c0_12, %c0_13], %30 {strides = array<i32>} : memref<16x15xf32, #tpu.memory_space<vmem>>, vector<16x15xf32>,
    return
  }
  func.func @transform_0(%arg0: i32) -> (i32, i32) {
    %c0_i32 = arith.constant 0 : i32
    %c0_i32_0 = arith.constant 0 : i32
    return %arg0, %c0_i32 : i32, i32
  }
  func.func @transform_1(%arg0: i32) -> (i32, i32) {
    %c0_i32 = arith.constant 0 : i32
    %c0_i32_0 = arith.constant 0 : i32
    %c0_i32_1 = arith.constant 0 : i32
    return %c0_i32, %c0_i32_0 : i32, i32
  }
  func.func @transform_2(%arg0: i32) -> (i32, i32) {
    %c0_i32 = arith.constant 0 : i32
    %c0_i32_0 = arith.constant 0 : i32
    %c0_i32_1 = arith.constant 0 : i32
    return %c0_i32, %c0_i32_0 : i32, i32
  }
  func.func @transform_3(%arg0: i32) -> (i32, i32) {
    %c0_i32 = arith.constant 0 : i32
    %c0_i32_0 = arith.constant 0 : i32
    return %arg0, %c0_i32 : i32, i32
  }
}

</mosaic_0001>

<bundles_post_ra>
// kernel: contrastive_forward.4
= control target key start
LH: loop header
LB: loop body
LE: loop exit
PB: predicated region body
PF: predicated region fallthrough
CT: control target
= control target key end

     0   :  { %s2135_s12 = smov 0   ;;  %s2137_s13 = smov 0   ;;  %s2561_s0 = inlined_call_operand.vmem [shape: bf16[200,640], index: 0, kind: input, shape index: {}]   ;;  %s2562_s1 = inlined_call_operand.vmem [shape: bf16[640,128], index: 1, kind: input, shape index: {}]   ;;  %s2563_s2 = inlined_call_operand.vmem [shape: f32[1,128], index: 2, kind: input, shape index: {}]   ;;  %s2564_s3 = inlined_call_operand.vmem [shape: bf16[200,128], index: 3, kind: output, shape index: {}]  }
   0x1   :  { %s2139_s14 = smov 0  }
   0x2 LB: > { %s2148_s15 = sadd.s32 4294967295, %s2079_s14   ;;  %s2150_s16 = sadd.s32 1, %s2079_s14   ;;  %s2079_s14 = sphi %s2139_s14, %s2571_s14   ;;  %s2075_s13 = sphi %s2137_s13, %s2570_s13   ;;  %s2071_s12 = sphi %s2135_s12, %s2569_s12  }
   0x3   : > { %s85_s17 = ssub.s32 %s2079_s14, %s2150_s16  ;;  %s88_s18 = sadd.s32 1, %s2075_s13 }
   0x4   : > { %p86_p0 = scmp.eq.s32.totalorder %s85_s17, 0  ;;  %p98_p1 = scmp.ne.s32.totalorder %s2075_s13, %s2071_s12 }
   0x5   : > { %p99_p2 = scmp.eq.s32.totalorder %s2148_s15, 1  ;;  %p1446_p3 = scmp.ge.s32.totalorder %s2079_s14, 1 }
   0x6   : > { %s2158_s19 = scalar_select %p86_p0, %s2075_s13, %s88_s18  }
   0x7   : > { %p2160_p4 = por %p99_p2, %p98_p1  ;;  %p149_p5 = scmp.lt.s32.totalorder %s2079_s14, 3 }
   0x9   : > { %p150_p6 = pnand %p1446_p3, %p149_p5 }
   0xa   : > { %s2168_s23 = smul.u32 (!%p150_p6), 14, %s2148_s15  ;;  %s175_s4 = sand.u32 (!%p150_p6), 1, %s2071_s12  }
   0xb   : > { %153 = sbr.rel (%p150_p6) target bundleno = 421 (0x1a5), region = 32 }
   0xc   : > { %p184_p7 = scmp.lt.s32.totalorder (!%p150_p6), %s2168_s23, 24 }
  0x10   : > { %v1904_v0 = vld [vmem:[%s2562_s1 + $0x78] sm:$0xff]   ;;  %v1906_v2 = vld [vmem:[%s2562_s1 + $0x70] sm:$0xff]   ;;  %v1908_v4 = vld [vmem:[%s2562_s1 + $0x68] sm:$0xff]   ;;  %s185_s5 = scalar_select %p184_p7, %s2168_s23, 24  ;;  %v2113_v24 = vmov 0.0   ;;  %vm2114_vm0 = vmmov 0  }
  0x11   : > { %v1905_v1 = vld [vmem:[%s2562_s1 + $0x38] sm:$0xff]   ;;  %1620 = vmatprep.subr.bf16.mxu0 %v1904_v0  ;;  %1795 = vmatprep.subr.bf16.mxu1 %v1904_v0  ;;  %v1907_v3 = vld [vmem:[%s2562_s1 + $0x30] sm:$0xff]   ;;  %v1909_v5 = vld [vmem:[%s2562_s1 + $0x28] sm:$0xff]   ;;  %s1181_s6 = ssub.s32 (%p2160_p4), 25, %s2168_s23  ;;  %s1578_s7 = smul.u32 (%p2160_p4), 56, %s2148_s15 }
  0x12   : > { %1621 = vmatpush3.bf16.msra.mxu0 %v1905_v1  ;;  %1803 = vmatpush3.bf16.msra.mxu1 %v1905_v1  ;;  %v1910_v6 = vld [vmem:[%s2562_s1 + $0x60] sm:$0xff]   ;;  %s1812_s10 = smul.u32 20, %s185_s5  ;;  %v1912_v8 = vld [vmem:[%s2562_s1 + $0x58] sm:$0xff]   ;;  %v1914_v10 = vld [vmem:[%s2562_s1 + $0x50] sm:$0xff]   ;;  %p1182_p8 = scmp.lt.s32.totalorder (%p2160_p4), %s1181_s6, 14 }
  0x13   : > { %1622 = vmatprep.subr.bf16.mxu0 %v1906_v2  ;;  %1796 = vmatprep.subr.bf16.mxu1 %v1906_v2  ;;  %v1911_v7 = vld [vmem:[%s2562_s1 + $0x20] sm:$0xff]   ;;  %v1913_v9 = vld [vmem:[%s2562_s1 + $0x18] sm:$0xff]   ;;  %v1915_v13 = vld [vmem:[%s2562_s1 + $0x10] sm:$0xff]   ;;  %s1811_s5 = smul.u32 56, %s175_s4 }
  0x14   : > { %s2199_s24 = scalar_lea.vmem %s2561_s0, %s1812_s10  ;;  %v1916_v14 = vld [vmem:[%s2562_s1 + $0x48] sm:$0xff]   ;;  %v1918_v16 = vld [vmem:[%s2562_s1 + $0x40] sm:$0xff]   ;;  %v1926_v20 = vld [vmem:[%s2562_s1 + $0xf8] sm:$0xff]   ;;  %s2490_s10 = scalar_lea.vmem (%p2160_p4), %s2564_s3, %s1578_s7  }
  0x15   : > { %v1922_v11 = vld [vmem:[%s2199_s24 + $0x4] ss:$20 sps:$4 sm:$0xff]   ;;  %v1917_v15 = vld [vmem:[%s2562_s1 + $0x8] sm:$0xff]   ;;  %v1920_v18 = vld [vmem:[%s2199_s24] ss:$20 sps:$4 sm:$0xff]   ;;  %s2433_s12 = scalar_lea.vmem [#allocation2], %s1811_s5  }
  0x16   : > { %1623 = vmatpush3.bf16.msra.mxu0 %v1907_v3  ;;  %1804 = vmatpush3.bf16.msra.mxu1 %v1907_v3  ;;  %v1925_v12 = vld [vmem:[%s2199_s24 + $0xa4] ss:$20 sps:$4 sm:$0xff]   ;;  %v1923_v19 = vld [vmem:[%s2199_s24 + $0xa0] ss:$20 sps:$4 sm:$0xff]   ;;  %v1934_v29 = vld [vmem:[%s2199_s24 + $0x28] ss:$20 sps:$4 sm:$0xff]  }
  0x17   : > { %1624 = vmatprep.subr.bf16.mxu0 %v1908_v4  ;;  %1797 = vmatprep.subr.bf16.mxu1 %v1908_v4  ;;  %v1919_v17 = vld [vmem:[%s2562_s1] sm:$0xff]   ;;  %v1927_v21 = vld [vmem:[%s2562_s1 + $0xb8] sm:$0xff]   ;;  %v1929_v23 = vld [vmem:[%s2562_s1 + $0xf0] sm:$0xff]  }
  0x18   : > { %784 = vmatprep.mubr.bf16.mxu0 %v1922_v11  ;;  %816 = vmatprep.mubr.bf16.mxu1 %v1925_v12  ;;  %v1928_v22 = vld [vmem:[%s2562_s1 + $0x138] sm:$0xff]   ;;  %v1932_v25 = vld [vmem:[%s2199_s24 + $0x2c] ss:$20 sps:$4 sm:$0xff]   ;;  %v1930_v27 = vld [vmem:[%s2562_s1 + $0xb0] sm:$0xff]  }
  0x19   : > { %v1936_v26 = vld [vmem:[%s2199_s24 + $0xcc] ss:$20 sps:$4 sm:$0xff]   ;;  %v1931_v28 = vld [vmem:[%s2562_s1 + $0x130] sm:$0xff]   ;;  %v1940_v33 = vld [vmem:[%s2199_s24 + $0xc8] ss:$20 sps:$4 sm:$0xff]  }
  0x1a   : > { %1625 = vmatpush3.bf16.msra.mxu0 %v1909_v5  ;;  %1805 = vmatpush3.bf16.msra.mxu1 %v1909_v5  ;;  %v1935_v30 = vld [vmem:[%s2562_s1 + $0xe8] sm:$0xff]   ;;  %v1941_v34 = vld [vmem:[%s2562_s1 + $0xe0] sm:$0xff]   ;;  %v1947_v40 = vld [vmem:[%s2562_s1 + $0xd8] sm:$0xff]  }
  0x1b   : > { %1626 = vmatprep.subr.bf16.mxu0 %v1910_v6  ;;  %1798 = vmatprep.subr.bf16.mxu1 %v1910_v6  ;;  %v1938_v31 = vld [vmem:[%s2562_s1 + $0xa8] sm:$0xff]   ;;  %v1942_v37 = vld [vmem:[%s2562_s1 + $0xa0] sm:$0xff]   ;;  %v1950_v41 = vld [vmem:[%s2562_s1 + $0x98] sm:$0xff]  }
  0x1c   : > { %v1939_v32 = vld [vmem:[%s2562_s1 + $0x128] sm:$0xff]   ;;  %v1943_v38 = vld [vmem:[%s2562_s1 + $0x120] sm:$0xff]   ;;  %v1951_v43 = vld [vmem:[%s2562_s1 + $0x118] sm:$0xff]  }
  0x1d   : > { %v1944_v35 = vld [vmem:[%s2199_s24 + $0x54] ss:$20 sps:$4 sm:$0xff]   ;;  %v1946_v39 = vld [vmem:[%s2199_s24 + $0x50] ss:$20 sps:$4 sm:$0xff]   ;;  %v1967_v47 = vld [vmem:[%s2199_s24 + $0xc] ss:$20 sps:$4 sm:$0xff]  }
  0x1e   : > { %1627 = vmatpush3.bf16.msra.mxu0 %v1911_v7  ;;  %1806 = vmatpush3.bf16.msra.mxu1 %v1911_v7  ;;  %v1948_v36 = vld [vmem:[%s2199_s24 + $0xf4] ss:$20 sps:$4 sm:$0xff]   ;;  %v1952_v42 = vld [vmem:[%s2199_s24 + $0xf0] ss:$20 sps:$4 sm:$0xff]   ;;  %v1958_v50 = vld [vmem:[%s2199_s24 + $0x78] ss:$20 sps:$4 sm:$0xff]  }
  0x1f   : > { %1628 = vmatprep.subr.bf16.mxu0 %v1912_v8  ;;  %1799 = vmatprep.subr.bf16.mxu1 %v1912_v8  ;;  %v1953_v44 = vld [vmem:[%s2562_s1 + $0xd0] sm:$0xff]   ;;  %v1959_v49 = vld [vmem:[%s2562_s1 + $0xc8] sm:$0xff]   ;;  %v1962_v53 = vld [vmem:[%s2562_s1 + $0xc0] sm:$0xff]  }
  0x20   : > { %v1956_v45 = vld [vmem:[%s2199_s24 + $0x7c] ss:$20 sps:$4 sm:$0xff]   ;;  %v1960_v51 = vld [vmem:[%s2562_s1 + $0x88] sm:$0xff]   ;;  %v1963_v54 = vld [vmem:[%s2562_s1 + $0x80] sm:$0xff]  }
  0x21   : > { %v1954_v46 = vld [vmem:[%s2562_s1 + $0x90] sm:$0xff]   ;;  %v1961_v52 = vld [vmem:[%s2562_s1 + $0x108] sm:$0xff]   ;;  %v1964_v55 = vld [vmem:[%s2562_s1 + $0x100] sm:$0xff]  }
  0x22   : > { %1629 = vmatpush3.bf16.msra.mxu0 %v1913_v9  ;;  %1807 = vmatpush3.bf16.msra.mxu1 %v1913_v9  ;;  %v1955_v48 = vld [vmem:[%s2562_s1 + $0x110] sm:$0xff]   ;;  %v1965_v56 = vld [vmem:[%s2199_s24 + $0x8] ss:$20 sps:$4 sm:$0xff]   ;;  %v1972_v60 = vld [vmem:[%s2199_s24 + $0x38] ss:$20 sps:$4 sm:$0xff]  }
  0x23   : > { %1630 = vmatprep.subr.bf16.mxu0 %v1914_v10  ;;  %1800 = vmatprep.subr.bf16.mxu1 %v1914_v10  ;;  %v1968_v57 = vld [vmem:[%s2199_s24 + $0x10] ss:$20 sps:$4 sm:$0xff]   ;;  %v1969_v58 = vld [vmem:[%s2199_s24 + $0x34] ss:$20 sps:$4 sm:$0xff]   ;;  %v1975_v62 = vld [vmem:[%s2199_s24 + $0x58] ss:$20 sps:$4 sm:$0xff]  }
  0x24   : > { %v1971_v59 = vld [vmem:[%s2199_s24 + $0x30] ss:$20 sps:$4 sm:$0xff]   ;;  %v1976_v63 = vld [vmem:[%s2199_s24 + $0x60] ss:$20 sps:$4 sm:$0xff]   ;;  %v1980_v2 = vld [vmem:[%s2199_s24 + $0x88] ss:$20 sps:$4 sm:$0xff]  }
  0x25   : > { %v1973_v61 = vld [vmem:[%s2199_s24 + $0x5c] ss:$20 sps:$4 sm:$0xff]   ;;  %v1977_v0 = vld [vmem:[%s2199_s24 + $0x84] ss:$20 sps:$4 sm:$0xff]   ;;  %v1979_v1 = vld [vmem:[%s2199_s24 + $0x80] ss:$20 sps:$4 sm:$0xff]  }
  0x26   : > { %1631 = vmatpush3.bf16.msra.mxu0 %v1915_v13  ;;  %1808 = vmatpush3.bf16.msra.mxu1 %v1915_v13  ;;  %v1981_v3 = vld [vmem:[%s2199_s24 + $0xac] ss:$20 sps:$4 sm:$0xff]   ;;  %v1983_v4 = vld [vmem:[%s2199_s24 + $0xa8] ss:$20 sps:$4 sm:$0xff]   ;;  %v1984_v5 = vld [vmem:[%s2199_s24 + $0xb0] ss:$20 sps:$4 sm:$0xff]  }
  0x27   : > { %1632 = vmatprep.subr.bf16.mxu0 %v1916_v14  ;;  %1801 = vmatprep.subr.bf16.mxu1 %v1916_v14  ;;  %v1985_v6 = vld [vmem:[%s2199_s24 + $0xd4] ss:$20 sps:$4 sm:$0xff]   ;;  %v1987_v7 = vld [vmem:[%s2199_s24 + $0xd0] ss:$20 sps:$4 sm:$0xff]   ;;  %v1988_v8 = vld [vmem:[%s2199_s24 + $0xd8] ss:$20 sps:$4 sm:$0xff]  }
  0x28   : > { %v1989_v9 = vld [vmem:[%s2199_s24 + $0xfc] ss:$20 sps:$4 sm:$0xff]   ;;  %v1991_v10 = vld [vmem:[%s2199_s24 + $0xf8] ss:$20 sps:$4 sm:$0xff]   ;;  %v1992_v11 = vld [vmem:[%s2199_s24 + $0x100] ss:$20 sps:$4 sm:$0xff]  }
  0x2a   : > { %1633 = vmatpush3.bf16.msra.mxu0 %v1917_v15  ;;  %1809 = vmatpush3.bf16.msra.mxu1 %v1917_v15 }
  0x2b   : > { %1634 = vmatprep.subr.bf16.mxu0 %v1918_v16  ;;  %1802 = vmatprep.subr.bf16.mxu1 %v1918_v16 }
  0x2e   : > { %1635 = vmatpush3.bf16.msra.mxu0 %v1919_v17  ;;  %1810 = vmatpush3.bf16.msra.mxu1 %v1919_v17 }
  0x2f   : > { %1678 = vmatprep.subr.bf16.mxu1 %v1926_v20  ;;  %1751 = vmatprep.subr.bf16.mxu0 %v2113_v24 }
  0x31   : > { %785 = vmatmul.mubr.bf16.vlgmr.msra.gmra.mxu0 %v1920_v18  ;;  %817 = vmatmul.mubr.bf16.vlgmr.msra.gmra.mxu1 %v1923_v19 }
  0x32   : > { %1679 = vmatpush3.bf16.msra.mxu1 %v1927_v21  ;;  %1752 = vmatpush3.bf16.msra.mxu0 %v1928_v22 }
  0x33   : > { %1680 = vmatprep.subr.bf16.mxu1 %v1929_v23  ;;  %1753 = vmatprep.subr.bf16.mxu0 %v2113_v24 }
  0x34   : > { %792 = vmatprep.mubr.bf16.mxu0 %v1932_v25  ;;  %824 = vmatprep.mubr.bf16.mxu1 %v1936_v26 }
  0x36   : > { %1681 = vmatpush3.bf16.msra.mxu1 %v1930_v27  ;;  %1754 = vmatpush3.bf16.msra.mxu0 %v1931_v28 }
  0x37   : > { %1682 = vmatprep.subr.bf16.mxu1 %v1935_v30  ;;  %1755 = vmatprep.subr.bf16.mxu0 %v2113_v24 }
  0x39   : > { %793 = vmatmul.mubr.bf16.gmra.mxu0 %v1934_v29  ;;  %825 = vmatmul.mubr.bf16.gmra.mxu1 %v1940_v33 }
  0x3a   : > { %1683 = vmatpush3.bf16.msra.mxu1 %v1938_v31  ;;  %1756 = vmatpush3.bf16.msra.mxu0 %v1939_v32 }
  0x3b   : > { %1684 = vmatprep.subr.bf16.mxu1 %v1941_v34  ;;  %1757 = vmatprep.subr.bf16.mxu0 %v2113_v24 }
  0x3c   : > { %800 = vmatprep.mubr.bf16.mxu0 %v1944_v35  ;;  %832 = vmatprep.mubr.bf16.mxu1 %v1948_v36 }
  0x3e   : > { %1685 = vmatpush3.bf16.msra.mxu1 %v1942_v37  ;;  %1758 = vmatpush3.bf16.msra.mxu0 %v1943_v38 }
  0x3f   : > { %1686 = vmatprep.subr.bf16.mxu1 %v1947_v40  ;;  %1759 = vmatprep.subr.bf16.mxu0 %v2113_v24 }
  0x41   : > { %801 = vmatmul.mubr.bf16.gmra.mxu0 %v1946_v39  ;;  %833 = vmatmul.mubr.bf16.gmra.mxu1 %v1952_v42 }
  0x42   : > { %1687 = vmatpush3.bf16.msra.mxu1 %v1950_v41  ;;  %1760 = vmatpush3.bf16.msra.mxu0 %v1951_v43  ;;  %v2386_v43 = vld [vmem:[%s2563_s2] ss:$0 sm:$0xff] }
  0x43   : > { %1688 = vmatprep.subr.bf16.mxu1 %v1953_v44  ;;  %1761 = vmatprep.subr.bf16.mxu0 %v2113_v24 }
  0x44   : > { %808 = vmatprep.mubr.bf16.mxu0 %v1956_v45  ;;  %873 = vmatprep.mubr.bf16.mxu1 %v1967_v47 }
  0x46   : > { %1689 = vmatpush3.bf16.msra.mxu1 %v1954_v46  ;;  %1762 = vmatpush3.bf16.msra.mxu0 %v1955_v48 }
  0x47   : > { %1690 = vmatprep.subr.bf16.mxu1 %v1959_v49  ;;  %1763 = vmatprep.subr.bf16.mxu0 %v2113_v24 }
  0x49   : > { %809 = vmatmul.mubr.bf16.gmra.mxu0 %v1958_v50 }
  0x4a   : > { %1691 = vmatpush3.bf16.msra.mxu1 %v1960_v51  ;;  %1764 = vmatpush3.bf16.msra.mxu0 %v1961_v52 }
  0x4b   : > { %1692 = vmatprep.subr.bf16.mxu1 %v1962_v53  ;;  %1765 = vmatprep.subr.bf16.mxu0 %v2113_v24 }
  0x4c   : > { %1767 = vmatprep.mubr.msk.bf16.mxu0 %vm2114_vm0, %v2113_v24 }
  0x4e   : > { %1693 = vmatpush3.bf16.msra.mxu1 %v1963_v54  ;;  %1766 = vmatpush3.bf16.msra.mxu0 %v1964_v55 }
  0x51   : > { %874 = vmatmul.mubr.bf16.vlgmr.msra.gmra.mxu1 %v1965_v56  ;;  %1768 = vmatmul.mubr.bf16.vlgmr.msra.gmra.mxu0 %v1968_v57 }
  0x52   : > { %881 = vmatprep.mubr.bf16.mxu1 %v1969_v58  ;;  %1771 = vmatprep.mubr.msk.bf16.mxu0 %vm2114_vm0, %v2113_v24 }
  0x59   : > { %882 = vmatmul.mubr.bf16.gmra.mxu1 %v1971_v59  ;;  %1772 = vmatmul.mubr.bf16.gmra.mxu0 %v1972_v60 }
  0x5a   : > { %889 = vmatprep.mubr.bf16.mxu1 %v1973_v61  ;;  %1775 = vmatprep.mubr.msk.bf16.mxu0 %vm2114_vm0, %v2113_v24 }
  0x61   : > { %890 = vmatmul.mubr.bf16.gmra.mxu1 %v1975_v62  ;;  %1776 = vmatmul.mubr.bf16.gmra.mxu0 %v1976_v63 }
  0x62   : > { %897 = vmatprep.mubr.bf16.mxu1 %v1977_v0  ;;  %1779 = vmatprep.mubr.msk.bf16.mxu0 %vm2114_vm0, %v2113_v24 }
  0x69   : > { %898 = vmatmul.mubr.bf16.gmra.mxu1 %v1979_v1  ;;  %1780 = vmatmul.mubr.bf16.gmra.mxu0 %v1980_v2 }
  0x6a   : > { %905 = vmatprep.mubr.bf16.mxu1 %v1981_v3  ;;  %1783 = vmatprep.mubr.msk.bf16.mxu0 %vm2114_vm0, %v2113_v24 }
  0x71   : > { %906 = vmatmul.mubr.bf16.gmra.mxu1 %v1983_v4  ;;  %1784 = vmatmul.mubr.bf16.gmra.mxu0 %v1984_v5 }
  0x72   : > { %913 = vmatprep.mubr.bf16.mxu1 %v1985_v6  ;;  %1787 = vmatprep.mubr.msk.bf16.mxu0 %vm2114_vm0, %v2113_v24 }
  0x79   : > { %914 = vmatmul.mubr.bf16.gmra.mxu1 %v1987_v7  ;;  %1788 = vmatmul.mubr.bf16.gmra.mxu0 %v1988_v8 }
  0x7a   : > { %921 = vmatprep.mubr.bf16.mxu1 %v1989_v9  ;;  %1791 = vmatprep.mubr.msk.bf16.mxu0 %vm2114_vm0, %v2113_v24 }
  0x81   : > { %922 = vmatmul.mubr.bf16.gmra.mxu1 %v1991_v10  ;;  %1792 = vmatmul.mubr.bf16.gmra.mxu0 %v1992_v11 }
  0xf1   : > { %v1636_v12 = vpop.f32.mrf.mxu0  ;;  %v2351_v13 = vpop.f32.mrf.mxu1 }
  0xf3   : > { %v1637_v14 = vpop.f32.mrf.mxu0  ;;  %v2353_v15 = vpop.f32.mrf.mxu1 }
  0xf4   : > { %v1638_v40 = vadd.f32 %v1637_v14, %v1636_v12 }
  0xf5   : > { %v1639_v16 = vpop.f32.mrf.mxu0  ;;  %v2355_v17 = vpop.f32.mrf.mxu1 }
  0xf6   : > { %v787_v46 = vadd.f32 %v1638_v40, %v2386_v43 }
  0xf7   : > { %v1640_v18 = vpop.f32.mrf.mxu0  ;;  %v2357_v19 = vpop.f32.mrf.mxu1 }
  0xf8   : > { %v1641_v47 = vadd.f32 %v1640_v18, %v1639_v16 }
  0xf9   : > { %v1642_v20 = vpop.f32.mrf.mxu0  ;;  %v2359_v21 = vpop.f32.mrf.mxu1 }
  0xfa   : > { %v790_v55 = vadd.f32 %v1641_v47, %v2386_v43 }
  0xfb   : > { %v1643_v22 = vpop.f32.mrf.mxu0  ;;  %v2361_v23 = vpop.f32.mrf.mxu1 }
  0xfc   : > { %v1644_v52 = vadd.f32 %v1643_v22, %v1642_v20 }
  0xfd   : > { %v1645_v24 = vpop.f32.mrf.mxu0  ;;  %v2363_v25 = vpop.f32.mrf.mxu1 }
  0xfe   : > { %v795_v62 = vadd.f32 %v1644_v52, %v2386_v43 }
  0xff   : > { %v1646_v26 = vpop.f32.mrf.mxu0  ;;  %v2365_v27 = vpop.f32.mrf.mxu1 }
 0x100   : > { %v1647_v1 = vadd.f32 %v1646_v26, %v1645_v24 }
 0x101   : > { %v1648_v28 = vpop.f32.mrf.mxu0  ;;  %v2367_v30 = vpop.f32.mrf.mxu1 }
 0x102   : > { %v798_v12 = vadd.f32 %v1647_v1, %v2386_v43 }
 0x103   : > { %v1649_v29 = vpop.f32.mrf.mxu0  ;;  %v2369_v32 = vpop.f32.mrf.mxu1 }
 0x104   : > { %v1650_v9 = vadd.f32 %v1649_v29, %v1648_v28 }
 0x105   : > { %v1651_v31 = vpop.f32.mrf.mxu0  ;;  %v2373_v35 = vpop.f32.mrf.mxu1 }
 0x106   : > { %v803_v40 = vadd.f32 %v1650_v9, %v2386_v43 }
 0x107   : > { %v1652_v33 = vpop.f32.mrf.mxu0  ;;  %v2379_v38 = vpop.f32.mrf.mxu1 }
 0x109   : > { %v2371_v34 = vpop.f32.mrf.mxu0 }
 0x10b   : > { %v2375_v36 = vpop.f32.mrf.mxu0 }
 0x10d   : > { %v2377_v37 = vpop.f32.mrf.mxu0 }
 0x10f   : > { %v2381_v39 = vpop.f32.mrf.mxu0 }
 0x111   : > { %v1694_v41 = vpop.f32.mrf.mxu1  ;;  %v964_v42 = vpop.f32.mrf.mxu0 }
 0x113   : > { %v1695_v44 = vpop.f32.mrf.mxu1  ;;  %v1769_v45 = vpop.f32.mrf.mxu0 }
 0x114   : > { %v1696_v48 = vadd.f32 %v1695_v44, %v1694_v41  ;;  %v1653_v44 = vadd.f32 %v1652_v33, %v1651_v31  ;;  %v1656_v31 = vadd.f32 %v2375_v36, %v2371_v34 }
 0x115   : > { %v1697_v49 = vpop.f32.mrf.mxu1  ;;  %v967_v50 = vpop.f32.mrf.mxu0 }
 0x116   : > { %v876_v51 = vadd.f32 %v1696_v48, %v787_v46  ;;  %v806_v52 = vadd.f32 %v1653_v44, %v2386_v43 }
 0x117   : > { %v1698_v53 = vpop.f32.mrf.mxu1  ;;  %v1770_v54 = vpop.f32.mrf.mxu0 }
 0x118   : > { %v2390_v56 = vadd.f32 %v964_v42, %v876_v51  ;;  %v1699_v57 = vadd.f32 %v1698_v53, %v1697_v49 }
 0x119   : > { %v1700_v58 = vpop.f32.mrf.mxu1  ;;  %v972_v59 = vpop.f32.mrf.mxu0 }
 0x11a   : > { %v1033_v60 = vmin.f32 %v2390_v56, 0.0  ;;  %v879_v61 = vadd.f32 %v1699_v57, %v790_v55  ;;  %vm1019_vm1 = vcmp.gt.f32.partialorder %v2390_v56, 0.0 }
 0x11b   : > { %v1701_v63 = vpop.f32.mrf.mxu1  ;;  %v1773_v0 = vpop.f32.mrf.mxu0 }
 0x11c   : > { %v1047_v2 = vmul.f32 1.442695, %v1033_v60  ;;  %v2394_v3 = vadd.f32 %v967_v50, %v879_v61  ;;  %v1702_v4 = vadd.f32 %v1701_v63, %v1700_v58  ;;  %v1659_v63 = vadd.f32 %v2381_v39, %v2377_v37 }
 0x11d   : > { %v1703_v5 = vpop.f32.mrf.mxu1  ;;  %v975_v6 = vpop.f32.mrf.mxu0 }
 0x11e   : > { %1993 = vpow2.f32 %v1047_v2  ;;  %v1034_v7 = vmin.f32 %v2394_v3, 0.0  ;;  %v884_v8 = vadd.f32 %v1702_v4, %v795_v62  ;;  %v811_v4 = vadd.f32 %v1656_v31, %v2386_v43 }
 0x11f   : > { %v1704_v10 = vpop.f32.mrf.mxu1  ;;  %v1774_v11 = vpop.f32.mrf.mxu0  ;;  %v814_v39 = vadd.f32 %v1659_v63, %v2386_v43  ;;  %vm1020_vm2 = vcmp.gt.f32.partialorder %v2394_v3, 0.0  ;;  %v1671_v63 = vadd.f32 %v2365_v27, %v2363_v25 }
 0x120   : > { %v1049_v14 = vmul.f32 1.442695, %v1034_v7  ;;  %v2398_v16 = vadd.f32 %v972_v59, %v884_v8  ;;  %v1705_v18 = vadd.f32 %v1704_v10, %v1703_v5  ;;  %v1662_v8 = vadd.f32 %v2353_v15, %v2351_v13 }
 0x121   : > { %v1706_v20 = vpop.f32.mrf.mxu1  ;;  %v980_v22 = vpop.f32.mrf.mxu0 }
 0x122   : > { %1995 = vpow2.f32 %v1049_v14  ;;  %v1035_v24 = vmin.f32 %v2398_v16, 0.0  ;;  %v887_v26 = vadd.f32 %v1705_v18, %v798_v12  ;;  %vm1021_vm3 = vcmp.gt.f32.partialorder %v2398_v16, 0.0 }
 0x123   : > { %v1707_v41 = vpop.f32.mrf.mxu1  ;;  %v1777_v42 = vpop.f32.mrf.mxu0 }
 0x124   : > { %v1051_v28 = vmul.f32 1.442695, %v1035_v24  ;;  %v2402_v29 = vadd.f32 %v975_v6, %v887_v26  ;;  %v1708_v45 = vadd.f32 %v1707_v41, %v1706_v20 }
 0x125   : > { %v1709_v46 = vpop.f32.mrf.mxu1  ;;  %v983_v47 = vpop.f32.mrf.mxu0 }
 0x126   : > { %1997 = vpow2.f32 %v1051_v28  ;;  %v1036_v48 = vmin.f32 %v2402_v29, 0.0  ;;  %v892_v49 = vadd.f32 %v1708_v45, %v803_v40  ;;  %v819_v28 = vadd.f32 %v1662_v8, %v2386_v43 }
 0x127   : > { %v1710_v50 = vpop.f32.mrf.mxu1  ;;  %v1778_v51 = vpop.f32.mrf.mxu0  ;;  %vm1022_vm4 = vcmp.gt.f32.partialorder %v2402_v29, 0.0 }
 0x128   : > { %v1053_v53 = vmul.f32 1.442695, %v1036_v48  ;;  %v2406_v54 = vadd.f32 %v980_v22, %v892_v49  ;;  %v1711_v55 = vadd.f32 %v1710_v50, %v1709_v46 }
 0x129   : > { %v1712_v33 = vpop.f32.mrf.mxu1  ;;  %v988_v57 = vpop.f32.mrf.mxu0 }
 0x12a   : > { %1999 = vpow2.f32 %v1053_v53  ;;  %v1037_v58 = vmin.f32 %v2406_v54, 0.0  ;;  %v895_v59 = vadd.f32 %v1711_v55, %v806_v52  ;;  %v1668_v53 = vadd.f32 %v2361_v23, %v2359_v21 }
 0x12b   : > { %v1994_v60 = vpop.eup %1993  ;;  %v1713_v61 = vpop.f32.mrf.mxu1  ;;  %vm1023_vm5 = vcmp.gt.f32.partialorder %v2406_v54, 0.0 }
 0x12c   : > { %v1781_v62 = vpop.f32.mrf.mxu0  ;;  %v1055_v0 = vmul.f32 1.442695, %v1037_v58  ;;  %v2414_v1 = vadd.f32 %v983_v47, %v895_v59  ;;  %v1714_v2 = vadd.f32 %v1713_v61, %v1712_v33  ;;  %v1524_v5 = vadd.f32 -1.0, %v1994_v60 }
 0x12d   : > { %v1715_v34 = vpop.f32.mrf.mxu1  ;;  %v1665_v47 = vadd.f32 %v2357_v19, %v2355_v17 }
 0x12e   : > { %v991_v36 = vpop.f32.mrf.mxu0  ;;  %2001 = vpow2.f32 %v1055_v0  ;;  %v1038_v6 = vmin.f32 %v2414_v1, 0.0  ;;  %v900_v9 = vadd.f32 %v1714_v2, %v811_v4  ;;  %v1089_v24 = vsel %vm1019_vm1, %v2390_v56, %v1524_v5 }
 0x12f   : > { %v1996_v7 = vpop.eup %1995  ;;  %v1716_v10 = vpop.f32.mrf.mxu1  ;;  %v822_v58 = vadd.f32 %v1665_v47, %v2386_v43  ;;  %vm1024_vm6 = vcmp.gt.f32.partialorder %v2414_v1, 0.0 }
 0x130   : > { %v1782_v37 = vpop.f32.mrf.mxu0  ;;  %v1525_v11 = vadd.f32 -1.0, %v1996_v7  ;;  %v1057_v12 = vmul.f32 1.442695, %v1038_v6  ;;  %v1717_v14 = vadd.f32 %v1716_v10, %v1715_v34  ;;  %v2423_v18 = vadd.f32 %v988_v57, %v900_v9 }
 0x131   : > { %v1718_v20 = vpop.f32.mrf.mxu1  ;;  %v830_v37 = vadd.f32 %v1671_v63, %v2386_v43 }
 0x132   : > { %v996_v22 = vpop.f32.mrf.mxu0  ;;  %v1090_v13 = vsel %vm1020_vm2, %v2394_v3, %v1525_v11  ;;  %2003 = vpow2.f32 %v1057_v12  ;;  %v903_v15 = vadd.f32 %v1717_v14, %v814_v39  ;;  %v1039_v41 = vmin.f32 %v2423_v18, 0.0 }
 0x133   : > { %v1998_v26 = vpop.eup %1997  ;;  %v1582_v40 = vpack.c.bf16 %v1090_v13, %v1089_v24  ;;  %v1719_v42 = vpop.f32.mrf.mxu1  ;;  %v1674_v11 = vadd.f32 %v2369_v32, %v2367_v30  ;;  %vm1025_vm7 = vcmp.gt.f32.partialorder %v2423_v18, 0.0 }
 0x134   : > { %v1785_v44 = vpop.f32.mrf.mxu0  ;;  %v2429_v45 = vadd.f32 %v991_v36, %v903_v15  ;;  %v1720_v46 = vadd.f32 %v1719_v42, %v1718_v20  ;;  %v1059_v56 = vmul.f32 1.442695, %v1039_v41  ;;  %v1526_v49 = vadd.f32 -1.0, %v1998_v26 }
 0x135   : > { %1583 = vst [vmem:[%s2433_s12] sm:$0xff] %v1582_v40   ;;  %v1721_v3 = vpop.f32.mrf.mxu1  ;;  %v827_v36 = vadd.f32 %v1668_v53, %v2386_v43 }
 0x136   : > { %v999_v48 = vpop.f32.mrf.mxu0  ;;  %v1040_v50 = vmin.f32 %v2429_v45, 0.0  ;;  %v908_v51 = vadd.f32 %v1720_v46, %v819_v28  ;;  %2005 = vpow2.f32 %v1059_v56  ;;  %v1091_v61 = vsel %vm1021_vm3, %v2398_v16, %v1526_v49 }
 0x137   : > { %v2000_v52 = vpop.eup %1999  ;;  %v1722_v55 = vpop.f32.mrf.mxu1  ;;  %v835_v28 = vadd.f32 %v1674_v11, %v2386_v43  ;;  %vm1026_vm8 = vcmp.gt.f32.partialorder %v2429_v45, 0.0 }
 0x138   : > { %v1786_v31 = vpop.f32.mrf.mxu0  ;;  %v1527_v33 = vadd.f32 -1.0, %v2000_v52  ;;  %v1061_v17 = vmul.f32 1.442695, %v1040_v50  ;;  %v2439_v19 = vadd.f32 %v996_v22, %v908_v51  ;;  %v1723_v57 = vadd.f32 %v1722_v55, %v1721_v3 }
 0x139   : > { %v1724_v59 = vpop.f32.mrf.mxu1  ;;  %v1677_v3 = vadd.f32 %v2379_v38, %v2373_v35 }
 0x13a   : > { %v1004_v60 = vpop.f32.mrf.mxu0  ;;  %v1092_v21 = vsel %vm1022_vm4, %v2402_v29, %v1527_v33  ;;  %2007 = vpow2.f32 %v1061_v17  ;;  %v1041_v23 = vmin.f32 %v2439_v19, 0.0  ;;  %v911_v2 = vadd.f32 %v1723_v57, %v822_v58 }
 0x13b   : > { %v2002_v62 = vpop.eup %2001  ;;  %v1587_v0 = vpack.c.bf16 %v1092_v21, %v1091_v61  ;;  %v1725_v4 = vpop.f32.mrf.mxu1  ;;  %v838_v57 = vadd.f32 %v1677_v3, %v2386_v43  ;;  %vm1027_vm9 = vcmp.gt.f32.partialorder %v2439_v19, 0.0 }
 0x13c   : > { %v1789_v34 = vpop.f32.mrf.mxu0  ;;  %v1063_v5 = vmul.f32 1.442695, %v1041_v23  ;;  %v1726_v6 = vadd.f32 %v1725_v4, %v1724_v59  ;;  %v2451_v7 = vadd.f32 %v999_v48, %v911_v2  ;;  %v1528_v8 = vadd.f32 -1.0, %v2002_v62 }
 0x13d   : > { %1614 = vst [vmem:[%s2433_s12 + $0x8] sm:$0xff] %v1587_v0   ;;  %v1727_v16 = vpop.f32.mrf.mxu1 }
 0x13e   : > { %v1007_v29 = vpop.f32.mrf.mxu0  ;;  %v916_v9 = vadd.f32 %v1726_v6, %v827_v36  ;;  %2009 = vpow2.f32 %v1063_v5  ;;  %v1042_v25 = vmin.f32 %v2451_v7, 0.0  ;;  %v1093_v15 = vsel %vm1023_vm5, %v2406_v54, %v1528_v8 }
 0x13f   : > { %v2004_v10 = vpop.eup %2003  ;;  %v1728_v27 = vpop.f32.mrf.mxu1  ;;  %vm1028_vm10 = vcmp.gt.f32.partialorder %v2451_v7, 0.0 }
 0x140   : > { %v1790_v39 = vpop.f32.mrf.mxu0  ;;  %v1529_v12 = vadd.f32 -1.0, %v2004_v10  ;;  %v2457_v14 = vadd.f32 %v1004_v60, %v916_v9  ;;  %v1729_v20 = vadd.f32 %v1728_v27, %v1727_v16  ;;  %v1065_v22 = vmul.f32 1.442695, %v1042_v25 }
 0x141   : > { %v1730_v24 = vpop.f32.mrf.mxu1 }
 0x142   : > { %v1012_v13 = vpop.f32.mrf.mxu0  ;;  %v1094_v26 = vsel %vm1024_vm6, %v2414_v1, %v1529_v12  ;;  %v1043_v40 = vmin.f32 %v2457_v14, 0.0  ;;  %v919_v41 = vadd.f32 %v1729_v20, %v830_v37  ;;  %2011 = vpow2.f32 %v1065_v22 }
 0x143   : > { %v1592_v30 = vpack.c.bf16 %v1094_v26, %v1093_v15  ;;  %v1731_v32 = vpop.f32.mrf.mxu1  ;;  %v2006_v44 = vpop.eup %2005  ;;  %vm1029_vm11 = vcmp.gt.f32.partialorder %v2457_v14, 0.0 }
 0x144   : > { %v1793_v42 = vpop.f32.mrf.mxu0  ;;  %v1067_v46 = vmul.f32 1.442695, %v1043_v40  ;;  %v1008_v47 = vadd.f32 %v1007_v29, %v919_v41  ;;  %v1732_v56 = vadd.f32 %v1731_v32, %v1730_v24  ;;  %v1530_v1 = vadd.f32 -1.0, %v2006_v44 }
 0x145   : > { %1615 = vst [vmem:[%s2433_s12 + $0x10] sm:$0xff] %v1592_v30   ;;  %v1733_v54 = vpop.f32.mrf.mxu1 }
 0x146   : > { %v1015_v48 = vpop.f32.mrf.mxu0  ;;  %2013 = vpow2.f32 %v1067_v46  ;;  %v1044_v49 = vmin.f32 %v1008_v47, 0.0  ;;  %v924_v50 = vadd.f32 %v1732_v56, %v835_v28  ;;  %v1095_v35 = vsel %vm1025_vm7, %v2423_v18, %v1530_v1 }
 0x147   : > { %v2008_v51 = vpop.eup %2007  ;;  %v1734_v52 = vpop.f32.mrf.mxu1  ;;  %vm1030_vm12 = vcmp.gt.f32.partialorder %v1008_v47, 0.0 }
 0x148   : > { %v1794_v53 = vpop.f32.mrf.mxu0  ;;  %v1531_v55 = vadd.f32 -1.0, %v2008_v51  ;;  %v1069_v31 = vmul.f32 1.442695, %v1044_v49  ;;  %v1013_v33 = vadd.f32 %v1012_v13, %v924_v50  ;;  %v1735_v17 = vadd.f32 %v1734_v52, %v1733_v54 }
 0x14a   : > { %v1096_v38 = vsel %vm1026_vm8, %v2429_v45, %v1531_v55  ;;  %2015 = vpow2.f32 %v1069_v31  ;;  %v1045_v58 = vmin.f32 %v1013_v33, 0.0  ;;  %v927_v60 = vadd.f32 %v1735_v17, %v838_v57 }
 0x14b   : > { %v1597_v59 = vpack.c.bf16 %v1096_v38, %v1095_v35  ;;  %v2010_v61 = vpop.eup %2009  ;;  %vm1031_vm13 = vcmp.gt.f32.partialorder %v1013_v33, 0.0 }
 0x14c   : > { %v1071_v21 = vmul.f32 1.442695, %v1045_v58  ;;  %v1016_v23 = vadd.f32 %v1015_v48, %v927_v60  ;;  %v1532_v62 = vadd.f32 -1.0, %v2010_v61 }
 0x14d   : > { %1616 = vst [vmem:[%s2433_s12 + $0x18] sm:$0xff] %v1597_v59  }
 0x14e   : > { %2017 = vpow2.f32 %v1071_v21  ;;  %v1046_v43 = vmin.f32 %v1016_v23, 0.0  ;;  %v1097_v45 = vsel %vm1027_vm9, %v2439_v19, %v1532_v62  ;;  %vm1032_vm14 = vcmp.gt.f32.partialorder %v1016_v23, 0.0 }
 0x14f   : > { %v2012_v63 = vpop.eup %2011 }
 0x150   : > { %v1533_v0 = vadd.f32 -1.0, %v2012_v63  ;;  %v1073_v2 = vmul.f32 1.442695, %v1046_v43 }
 0x152   : > { %v1098_v4 = vsel %vm1028_vm10, %v2451_v7, %v1533_v0  ;;  %2019 = vpow2.f32 %v1073_v2 }
 0x153   : > { %v2014_v18 = vpop.eup %2013  ;;  %v1602_v34 = vpack.c.bf16 %v1098_v4, %v1097_v45 }
 0x154   : > { %v1534_v36 = vadd.f32 -1.0, %v2014_v18 }
 0x155   : > { %1617 = vst [vmem:[%s2433_s12 + $0x20] sm:$0xff] %v1602_v34  }
 0x156   : > { %v1099_v16 = vsel %vm1029_vm11, %v2457_v14, %v1534_v36 }
 0x157   : > { %v2016_v5 = vpop.eup %2015 }
 0x158   : > { %v1535_v6 = vadd.f32 -1.0, %v2016_v5 }
 0x15a   : > { %v1100_v29 = vsel %vm1030_vm12, %v1008_v47, %v1535_v6 }
 0x15b   : > { %v1607_v8 = vpack.c.bf16 %v1100_v29, %v1099_v16  ;;  %v2018_v9 = vpop.eup %2017 }
 0x15c   : > { %v1536_v10 = vadd.f32 -1.0, %v2018_v9 }
 0x15d   : > { %1618 = vst [vmem:[%s2433_s12 + $0x28] sm:$0xff] %v1607_v8  }
 0x15e   : > { %v1101_v7 = vsel %vm1031_vm13, %v1013_v33, %v1536_v10 }
 0x15f   : > { %v2020_v19 = vpop.eup %2019 }
 0x160   : > { %v1537_v37 = vadd.f32 -1.0, %v2020_v19 }
 0x161   : > { %1179 = sbr.rel (!%p2160_p4) target bundleno = 421 (0x1a5), region = 36 }
 0x162   : > { %v1102_v25 = vsel %vm1032_vm14, %v1016_v23, %v1537_v37 }
 0x163   : > { %v1612_v27 = vpack.c.bf16 %v1102_v25, %v1101_v7 }
 0x165   : > { %1619 = vst [vmem:[%s2433_s12 + $0x30] sm:$0xff] %v1612_v27  }
 0x166   : > { %s2573_s6 = smov (!%p1182_p8, %s1181_s6), 14 }
 0x167   : > { %s1552_s11 = sshll.u32 %s2573_s6, 6 }
 0x168   : > { %p1555_p9 = scmp.eq.s32.totalorder %s1552_s11, 0 }
 0x169   : > { %2021 = sdivrem.u32 (!%p1555_p9), %s2573_s6, 14 }
 0x16a   : > { %1190 = sbr.rel (%p1555_p9) target bundleno = 421 (0x1a5), region = 40 }
 0x172   : > { %s2496_s20 = spop.drf %2021 }
 0x173   : > { %p1556_p10 = scmp.le.s32.totalorder %s2496_s20, 0 }
 0x174   : > { %s2566_s15 = smov (!%p1556_p10), %s2490_s10  ;;  %s2567_s23 = smov (!%p1556_p10), %s2433_s12 }
 0x175   : > { %1399 = sbr.rel (%p1556_p10) target bundleno = 396 (0x18c), region = 112  ;;  %s2505_s14 = smov (!%p1556_p10), 0  }
 0x176   : > { %s2507_s17 = smov (!%p1556_p10), 0  }
 0x17a LB: >> { %v1208_v39 = vld [vmem:[%s2087_s23] sm:$0xf]  ;;  %v1210_v11 = vld [vmem:[%s2087_s23 + $0x4] sm:$0xf]  ;;  %v1212_v12 = vld [vmem:[%s2087_s23 + $0x8] sm:$0xf]  ;;  %s2095_s17 = sphi %s2507_s17, %s1202_s17   ;;  %s2091_s14 = sphi %s2505_s14, %s2568_s14   ;;  %s2087_s23 = sphi %s2567_s23, %s1241_s23   ;;  %s2083_s15 = sphi %s2566_s15, %s1242_s15  }
 0x17b   : >> { %1209 = vst [vmem:[%s2083_s15] sm:$0xf] %v1208_v39  ;;  %1211 = vst [vmem:[%s2083_s15 + $0x4] sm:$0xf] %v1210_v11  ;;  %v1214_v14 = vld [vmem:[%s2087_s23 + $0xc] sm:$0xf]  ;;  %s1236_s18 = sadd.s32 1, %s2091_s14 }
 0x17c   : >> { %1213 = vst [vmem:[%s2083_s15 + $0x8] sm:$0xf] %v1212_v12  ;;  %v1216_v20 = vld [vmem:[%s2087_s23 + $0x10] sm:$0xf]  ;;  %v1218_v22 = vld [vmem:[%s2087_s23 + $0x14] sm:$0xf]  ;;  %p1237_p11 = scmp.ge.s32.totalorder %s1236_s18, %s2496_s20 }
 0x17d   : >> { %1215 = vst [vmem:[%s2083_s15 + $0xc] sm:$0xf] %v1214_v14  ;;  %1217 = vst [vmem:[%s2083_s15 + $0x10] sm:$0xf] %v1216_v20  ;;  %v1220_v24 = vld [vmem:[%s2087_s23 + $0x18] sm:$0xf] }
 0x17e   : >> { %1219 = vst [vmem:[%s2083_s15 + $0x14] sm:$0xf] %v1218_v22  ;;  %v1222_v13 = vld [vmem:[%s2087_s23 + $0x1c] sm:$0xf]  ;;  %v1224_v15 = vld [vmem:[%s2087_s23 + $0x20] sm:$0xf] }
 0x17f   : >> { %1221 = vst [vmem:[%s2083_s15 + $0x18] sm:$0xf] %v1220_v24  ;;  %1223 = vst [vmem:[%s2083_s15 + $0x1c] sm:$0xf] %v1222_v13  ;;  %v1226_v26 = vld [vmem:[%s2087_s23 + $0x24] sm:$0xf] }
 0x180   : >> { %1225 = vst [vmem:[%s2083_s15 + $0x20] sm:$0xf] %v1224_v15  ;;  %v1228_v40 = vld [vmem:[%s2087_s23 + $0x28] sm:$0xf]  ;;  %v1230_v41 = vld [vmem:[%s2087_s23 + $0x2c] sm:$0xf] }
 0x181   : >> { %1227 = vst [vmem:[%s2083_s15 + $0x24] sm:$0xf] %v1226_v26  ;;  %1229 = vst [vmem:[%s2083_s15 + $0x28] sm:$0xf] %v1228_v40  ;;  %v1232_v30 = vld [vmem:[%s2087_s23 + $0x30] sm:$0xf] }
 0x182   : >> { %1231 = vst [vmem:[%s2083_s15 + $0x2c] sm:$0xf] %v1230_v41  ;;  %v1234_v32 = vld [vmem:[%s2087_s23 + $0x34] sm:$0xf]  ;;  %1233 = vst [vmem:[%s2083_s15 + $0x30] sm:$0xf] %v1232_v30 }
 0x183   : >> { %1235 = vst [vmem:[%s2083_s15 + $0x34] sm:$0xf] %v1234_v32  ;;  %s2575_s18 = smov (%p1237_p11, %s1236_s18), 0  ;;  %s1202_s17 = sadd.s32 1, %s2095_s17  }
 0x184   : >> { %s1239_s21 = smul.u32 56, %s2575_s18  ;;  %p1201_p12 = scmp.ge.s32.totalorder %s1202_s17, %s2496_s20 }
 0x185   : >> { %s2568_s14 = smov %s2575_s18 }
 0x186   : >> { %s1241_s23 = scalar_lea.vmem %s2433_s12, %s1239_s21 [#allocation2]   ;;  %s1242_s15 = scalar_lea.vmem %s2490_s10, %s1239_s21  }
 0x187   : > { %1204 = sbr.rel (!%p1201_p12) target bundleno = 378 (0x17a), region = 118 }
 0x18c PF: > { %2023 = sdivrem.u32 %s2573_s6, 14 }
 0x18d   : > { %s1557_s22 = smul.u32 56, %s2496_s20 }
 0x18f   : > { %s1247_s25 = scalar_lea.vmem %s2433_s12, %s1557_s22 [#allocation2]   ;;  %s1249_s26 = scalar_lea.vmem %s2490_s10, %s1557_s22  }
 0x195   : > { %s2024_s27 = spop.drf %2023 }
 0x196   : > { %p1559_p13 = scmp.le.s32.totalorder %s2024_s27, 0 }
 0x197   : > { %s2097_s28 = smov (!%p1559_p13), %s1249_s26   ;;  %s2101_s29 = smov (!%p1559_p13), %s1247_s25  }
 0x198   : > { %1413 = sbr.rel (%p1559_p13) target bundleno = 421 (0x1a5), region = 123  ;;  %s2105_s24 = smov (!%p1559_p13), 0  }
 0x199   : > { %s2109_s30 = smov (!%p1559_p13), 0  }
 0x19d LB: >> { %v1259_v42 = vld [vmem:[%s2103_s29] sm:$0xf]  ;;  %s1261_s4 = sadd.s32 1, %s2107_s24  ;;  %s1253_s30 = sadd.s32 1, %s2111_s30   ;;  %s2111_s30 = sphi %s2109_s30, %s1253_s30   ;;  %s2107_s24 = sphi %s2105_s24, %s2106_s24   ;;  %s2103_s29 = sphi %s2101_s29, %s1266_s29   ;;  %s2099_s28 = sphi %s2097_s28, %s1267_s28  }
 0x19e   : >> { %1260 = vst [vmem:[%s2099_s28] sm:$0xf] %v1259_v42  ;;  %p1262_p0 = scmp.ge.s32.totalorder %s1261_s4, %s2024_s27  ;;  %p1252_p1 = scmp.ge.s32.totalorder %s1253_s30, %s2024_s27 }
 0x1a0   : >> { %s2577_s4 = smov (%p1262_p0, %s1261_s4), 0  ;;  %1255 = sbr.rel (!%p1252_p1) target bundleno = 413 (0x19d), region = 129 }
 0x1a1   : >> { %s1560_s5 = sshll.u32 %s2577_s4, 2  ;;  %s2106_s24 = smov %s2577_s4  }
 0x1a2   : >> { %s1266_s29 = scalar_lea.vmem %s1247_s25, %s1560_s5 [#allocation2]   ;;  %s1267_s28 = scalar_lea.vmem %s1249_s26, %s1560_s5  }
 0x1a5 PF: > { %p10_p2 = scmp.ge.s32.totalorder %s2150_s16, 4   ;;  %s2569_s12 = smov %s2075_s13 }
 0x1a6   : > { %s2570_s13 = smov %s2158_s19  ;;  %s2571_s14 = smov %s2150_s16 }
 0x1a7   :  { %12 = sbr.rel (!%p10_p2) target bundleno = 2 (0x2), region = 140 }

// kernel: contrastive_forward.5
= control target key start
LH: loop header
LB: loop body
LE: loop exit
PB: predicated region body
PF: predicated region fallthrough
CT: control target
= control target key end

     0   :  { %s1676_s12 = smov 0   ;;  %s1678_s13 = smov 0   ;;  %s1983_s0 = inlined_call_operand.vmem [shape: bf16[162,512], index: 0, kind: input, shape index: {}]   ;;  %s1984_s1 = inlined_call_operand.vmem [shape: bf16[512,64], index: 1, kind: input, shape index: {}]   ;;  %s1985_s2 = inlined_call_operand.vmem [shape: f32[1,64], index: 2, kind: input, shape index: {}]   ;;  %s1986_s3 = inlined_call_operand.vmem [shape: bf16[162,64], index: 3, kind: output, shape index: {}]  }
   0x1   :  { %s1680_s14 = smov 0  }
   0x2 LB: > { %s1689_s15 = sadd.s32 4294967295, %s1622_s14   ;;  %s1691_s16 = sadd.s32 1, %s1622_s14   ;;  %s1622_s14 = sphi %s1680_s14, %s1993_s14   ;;  %s1618_s13 = sphi %s1678_s13, %s1992_s13   ;;  %s1614_s12 = sphi %s1676_s12, %s1991_s12  }
   0x3   : > { %s85_s17 = ssub.s32 %s1622_s14, %s1691_s16  ;;  %s88_s18 = sadd.s32 1, %s1618_s13 }
   0x4   : > { %p86_p0 = scmp.eq.s32.totalorder %s85_s17, 0  ;;  %p98_p1 = scmp.ne.s32.totalorder %s1618_s13, %s1614_s12 }
   0x5   : > { %p99_p2 = scmp.eq.s32.totalorder %s1689_s15, 1  ;;  %p1168_p3 = scmp.ge.s32.totalorder %s1622_s14, 1 }
   0x6   : > { %s1699_s19 = scalar_select %p86_p0, %s1618_s13, %s88_s18  }
   0x7   : > { %p1701_p4 = por %p99_p2, %p98_p1  ;;  %p149_p5 = scmp.lt.s32.totalorder %s1622_s14, 3 }
   0x9   : > { %p150_p6 = pnand %p1168_p3, %p149_p5 }
   0xa   : > { %s1751_s30 = smul.u32 (!%p150_p6), 12, %s1689_s15  ;;  %s175_s5 = sand.u32 (!%p150_p6), 1, %s1614_s12  }
   0xb   : > { %153 = sbr.rel (%p150_p6) target bundleno = 380 (0x17c), region = 32 }
   0xc   : > { %p184_p7 = scmp.lt.s32.totalorder (!%p150_p6), %s1751_s30, 20  ;;  %s1382_s6 = smul.u32 (!%p150_p6), 48, %s175_s5 }
   0xe   : > { %s1868_s12 = scalar_lea.vmem (!%p150_p6), [#allocation2], %s1382_s6  }
  0x10   : > { %v1472_v0 = vld [vmem:[%s1984_s1 + $0x78] sm:$0xff]   ;;  %v1476_v4 = vld [vmem:[%s1984_s1 + $0x70] sm:$0xff]   ;;  %v1480_v8 = vld [vmem:[%s1984_s1 + $0x68] sm:$0xff]   ;;  %s185_s26 = scalar_select %p184_p7, %s1751_s30, 20  ;;  %vm890_vm1 = vcmask 519168  }
  0x11   : > { %v1473_v1 = vld [vmem:[%s1984_s1 + $0xf8] sm:$0xff]   ;;  %1278 = vmatprep.subr.bf16.mxu0 %v1472_v0  ;;  %v1477_v5 = vld [vmem:[%s1984_s1 + $0xf0] sm:$0xff]   ;;  %v1481_v9 = vld [vmem:[%s1984_s1 + $0xe8] sm:$0xff]   ;;  %s911_s7 = ssub.s32 (%p1701_p4), 21, %s1751_s30  ;;  %s1277_s8 = smul.u32 (%p1701_p4), 48, %s1689_s15 }
  0x12   : > { %v1474_v2 = vld [vmem:[%s1984_s1 + $0x38] sm:$0xff]   ;;  %1330 = vmatprep.subr.bf16.mxu1 %v1473_v1  ;;  %v1478_v6 = vld [vmem:[%s1984_s1 + $0x30] sm:$0xff]   ;;  %v1482_v10 = vld [vmem:[%s1984_s1 + $0x28] sm:$0xff]   ;;  %s1264_s9 = sshll.u32 %s185_s26, 4  ;;  %p912_p8 = scmp.lt.s32.totalorder (%p1701_p4), %s911_s7, 12 }
  0x13   : > { %v1475_v3 = vld [vmem:[%s1984_s1 + $0xb8] sm:$0xff]   ;;  %1279 = vmatpush3.bf16.msra.mxu0 %v1474_v2  ;;  %v1479_v7 = vld [vmem:[%s1984_s1 + $0xb0] sm:$0xff]   ;;  %v1483_v11 = vld [vmem:[%s1984_s1 + $0xa8] sm:$0xff]   ;;  %s1803_s24 = scalar_lea.vmem %s1983_s0, %s1264_s9  ;;  %s1931_s11 = scalar_lea.vmem (%p1701_p4), %s1986_s3, %s1277_s8  }
  0x14   : > { %1331 = vmatpush3.bf16.msra.mxu1 %v1475_v3  ;;  %1280 = vmatprep.subr.bf16.mxu0 %v1476_v4  ;;  %v1484_v12 = vld [vmem:[%s1984_s1 + $0x60] sm:$0xff]   ;;  %v1488_v16 = vld [vmem:[%s1984_s1 + $0x58] sm:$0xff]   ;;  %v1492_v20 = vld [vmem:[%s1984_s1 + $0x50] sm:$0xff]  }
  0x15   : > { %1332 = vmatprep.subr.bf16.mxu1 %v1477_v5  ;;  %v1485_v13 = vld [vmem:[%s1984_s1 + $0xe0] sm:$0xff]   ;;  %v1489_v17 = vld [vmem:[%s1984_s1 + $0xd8] sm:$0xff]   ;;  %v1493_v21 = vld [vmem:[%s1984_s1 + $0xd0] sm:$0xff]  }
  0x16   : > { %v1486_v14 = vld [vmem:[%s1984_s1 + $0x20] sm:$0xff]   ;;  %v1490_v18 = vld [vmem:[%s1984_s1 + $0x18] sm:$0xff]   ;;  %v1494_v22 = vld [vmem:[%s1984_s1 + $0x10] sm:$0xff]  }
  0x17   : > { %1281 = vmatpush3.bf16.msra.mxu0 %v1478_v6  ;;  %v1487_v15 = vld [vmem:[%s1984_s1 + $0xa0] sm:$0xff]   ;;  %v1491_v19 = vld [vmem:[%s1984_s1 + $0x98] sm:$0xff]   ;;  %v1495_v23 = vld [vmem:[%s1984_s1 + $0x90] sm:$0xff]  }
  0x18   : > { %1333 = vmatpush3.bf16.msra.mxu1 %v1479_v7  ;;  %1282 = vmatprep.subr.bf16.mxu0 %v1480_v8  ;;  %v1496_v24 = vld [vmem:[%s1984_s1 + $0x48] sm:$0xff]   ;;  %v1500_v28 = vld [vmem:[%s1984_s1 + $0x40] sm:$0xff]  }
  0x19   : > { %1334 = vmatprep.subr.bf16.mxu1 %v1481_v9  ;;  %v1497_v25 = vld [vmem:[%s1984_s1 + $0xc8] sm:$0xff]   ;;  %v1501_v29 = vld [vmem:[%s1984_s1 + $0xc0] sm:$0xff]  }
  0x1a   : > { %v1498_v26 = vld [vmem:[%s1984_s1 + $0x8] sm:$0xff]   ;;  %v1502_v30 = vld [vmem:[%s1984_s1] sm:$0xff]  }
  0x1b   : > { %1283 = vmatpush3.bf16.msra.mxu0 %v1482_v10  ;;  %v1499_v27 = vld [vmem:[%s1984_s1 + $0x88] sm:$0xff]   ;;  %v1503_v31 = vld [vmem:[%s1984_s1 + $0x80] sm:$0xff]  }
  0x1c   : > { %1335 = vmatpush3.bf16.msra.mxu1 %v1483_v11  ;;  %1284 = vmatprep.subr.bf16.mxu0 %v1484_v12  ;;  %v1504_v32 = vld [vmem:[%s1803_s24] ss:$16 sps:$4 sm:$0xff]   ;;  %v1506_v33 = vld [vmem:[%s1803_s24 + $0x4] ss:$16 sps:$4 sm:$0xff]   ;;  %v1507_v34 = vld [vmem:[%s1803_s24 + $0x8] ss:$16 sps:$4 sm:$0xff]  }
  0x1d   : > { %1336 = vmatprep.subr.bf16.mxu1 %v1485_v13  ;;  %v1509_v35 = vld [vmem:[%s1803_s24 + $0xc] ss:$16 sps:$4 sm:$0xff]   ;;  %640 = vmatprep.mubr.bf16.mxu0 %v1506_v33  ;;  %v1510_v36 = vld [vmem:[%s1803_s24 + $0x24] ss:$16 sps:$4 sm:$0xff]   ;;  %v1514_v38 = vld [vmem:[%s1803_s24 + $0x20] ss:$16 sps:$4 sm:$0xff]  }
  0x1e   : > { %721 = vmatprep.mubr.bf16.mxu1 %v1509_v35  ;;  %v1512_v37 = vld [vmem:[%s1803_s24 + $0x2c] ss:$16 sps:$4 sm:$0xff]   ;;  %v1515_v39 = vld [vmem:[%s1803_s24 + $0x28] ss:$16 sps:$4 sm:$0xff]   ;;  %v1516_v40 = vld [vmem:[%s1803_s24 + $0x44] ss:$16 sps:$4 sm:$0xff]  }
  0x1f   : > { %1285 = vmatpush3.bf16.msra.mxu0 %v1486_v14  ;;  %v1518_v41 = vld [vmem:[%s1803_s24 + $0x4c] ss:$16 sps:$4 sm:$0xff]   ;;  %v1520_v42 = vld [vmem:[%s1803_s24 + $0x40] ss:$16 sps:$4 sm:$0xff]   ;;  %v1521_v43 = vld [vmem:[%s1803_s24 + $0x48] ss:$16 sps:$4 sm:$0xff]  }
  0x20   : > { %1337 = vmatpush3.bf16.msra.mxu1 %v1487_v15  ;;  %1286 = vmatprep.subr.bf16.mxu0 %v1488_v16  ;;  %v1522_v44 = vld [vmem:[%s1803_s24 + $0x64] ss:$16 sps:$4 sm:$0xff]   ;;  %v1524_v45 = vld [vmem:[%s1803_s24 + $0x6c] ss:$16 sps:$4 sm:$0xff]   ;;  %v1526_v46 = vld [vmem:[%s1803_s24 + $0x60] ss:$16 sps:$4 sm:$0xff]  }
  0x21   : > { %1338 = vmatprep.subr.bf16.mxu1 %v1489_v17  ;;  %v1527_v47 = vld [vmem:[%s1803_s24 + $0x68] ss:$16 sps:$4 sm:$0xff]   ;;  %v1528_v48 = vld [vmem:[%s1803_s24 + $0x84] ss:$16 sps:$4 sm:$0xff]   ;;  %v1530_v49 = vld [vmem:[%s1803_s24 + $0x8c] ss:$16 sps:$4 sm:$0xff]  }
  0x22   : > { %v1532_v50 = vld [vmem:[%s1803_s24 + $0x80] ss:$16 sps:$4 sm:$0xff]   ;;  %v1533_v51 = vld [vmem:[%s1803_s24 + $0x88] ss:$16 sps:$4 sm:$0xff]   ;;  %v1534_v52 = vld [vmem:[%s1803_s24 + $0xa4] ss:$16 sps:$4 sm:$0xff]  }
  0x23   : > { %1287 = vmatpush3.bf16.msra.mxu0 %v1490_v18  ;;  %v1536_v53 = vld [vmem:[%s1803_s24 + $0xac] ss:$16 sps:$4 sm:$0xff]   ;;  %v1538_v54 = vld [vmem:[%s1803_s24 + $0xa0] ss:$16 sps:$4 sm:$0xff]   ;;  %v1539_v55 = vld [vmem:[%s1803_s24 + $0xa8] ss:$16 sps:$4 sm:$0xff]  }
  0x24   : > { %1339 = vmatpush3.bf16.msra.mxu1 %v1491_v19  ;;  %1288 = vmatprep.subr.bf16.mxu0 %v1492_v20  ;;  %v1838_v58 = vld [vmem:[%s1985_s2] ss:$0 sm:$0xff] }
  0x25   : > { %1340 = vmatprep.subr.bf16.mxu1 %v1493_v21 }
  0x27   : > { %1289 = vmatpush3.bf16.msra.mxu0 %v1494_v22 }
  0x28   : > { %1341 = vmatpush3.bf16.msra.mxu1 %v1495_v23  ;;  %1290 = vmatprep.subr.bf16.mxu0 %v1496_v24 }
  0x29   : > { %1342 = vmatprep.subr.bf16.mxu1 %v1497_v25 }
  0x2b   : > { %1291 = vmatpush3.bf16.msra.mxu0 %v1498_v26 }
  0x2c   : > { %1343 = vmatpush3.bf16.msra.mxu1 %v1499_v27  ;;  %1292 = vmatprep.subr.bf16.mxu0 %v1500_v28 }
  0x2d   : > { %1344 = vmatprep.subr.bf16.mxu1 %v1501_v29 }
  0x2f   : > { %1293 = vmatpush3.bf16.msra.mxu0 %v1502_v30 }
  0x30   : > { %1345 = vmatpush3.bf16.msra.mxu1 %v1503_v31 }
  0x32   : > { %641 = vmatmul.mubr.bf16.vlgmr.msra.gmra.mxu0 %v1504_v32 }
  0x33   : > { %722 = vmatmul.mubr.bf16.vlgmr.msra.gmra.mxu1 %v1507_v34  ;;  %648 = vmatprep.mubr.bf16.mxu0 %v1510_v36 }
  0x34   : > { %729 = vmatprep.mubr.bf16.mxu1 %v1512_v37 }
  0x3a   : > { %649 = vmatmul.mubr.bf16.gmra.mxu0 %v1514_v38 }
  0x3b   : > { %730 = vmatmul.mubr.bf16.gmra.mxu1 %v1515_v39  ;;  %656 = vmatprep.mubr.bf16.mxu0 %v1516_v40 }
  0x3c   : > { %737 = vmatprep.mubr.bf16.mxu1 %v1518_v41 }
  0x42   : > { %657 = vmatmul.mubr.bf16.gmra.mxu0 %v1520_v42 }
  0x43   : > { %738 = vmatmul.mubr.bf16.gmra.mxu1 %v1521_v43  ;;  %664 = vmatprep.mubr.bf16.mxu0 %v1522_v44 }
  0x44   : > { %745 = vmatprep.mubr.bf16.mxu1 %v1524_v45 }
  0x4a   : > { %665 = vmatmul.mubr.bf16.gmra.mxu0 %v1526_v46 }
  0x4b   : > { %746 = vmatmul.mubr.bf16.gmra.mxu1 %v1527_v47  ;;  %672 = vmatprep.mubr.bf16.mxu0 %v1528_v48 }
  0x4c   : > { %753 = vmatprep.mubr.bf16.mxu1 %v1530_v49 }
  0x52   : > { %673 = vmatmul.mubr.bf16.gmra.mxu0 %v1532_v50 }
  0x53   : > { %754 = vmatmul.mubr.bf16.gmra.mxu1 %v1533_v51  ;;  %680 = vmatprep.mubr.bf16.mxu0 %v1534_v52 }
  0x54   : > { %761 = vmatprep.mubr.bf16.mxu1 %v1536_v53 }
  0x5a   : > { %681 = vmatmul.mubr.bf16.gmra.mxu0 %v1538_v54 }
  0x5b   : > { %762 = vmatmul.mubr.bf16.gmra.mxu1 %v1539_v55 }
  0xf2   : > { %v1294_v56 = vpop.f32.mrf.mxu0 }
  0xf3   : > { %v1346_v57 = vpop.f32.mrf.mxu1 }
  0xf4   : > { %v1295_v59 = vpop.f32.mrf.mxu0 }
  0xf5   : > { %v1296_v60 = vadd.f32 %v1295_v59, %v1294_v56  ;;  %v1347_v61 = vpop.f32.mrf.mxu1 }
  0xf6   : > { %v1297_v62 = vpop.f32.mrf.mxu0  ;;  %v1348_v0 = vadd.f32 %v1347_v61, %v1346_v57 }
  0xf7   : > { %v643_v63 = vadd.f32 %v1296_v60, %v1838_v58  ;;  %v1349_v1 = vpop.f32.mrf.mxu1 }
  0xf8   : > { %v1298_v2 = vpop.f32.mrf.mxu0 }
  0xf9   : > { %v1841_v3 = vadd.f32 %v1348_v0, %v643_v63  ;;  %v1299_v4 = vadd.f32 %v1298_v2, %v1297_v62  ;;  %v1350_v5 = vpop.f32.mrf.mxu1 }
  0xfa   : > { %v1300_v6 = vpop.f32.mrf.mxu0  ;;  %v1351_v9 = vadd.f32 %v1350_v5, %v1349_v1 }
  0xfb   : > { %v782_v7 = vmin.f32 %v1841_v3, 0.0  ;;  %v646_v8 = vadd.f32 %v1299_v4, %v1838_v58  ;;  %v1352_v10 = vpop.f32.mrf.mxu1  ;;  %vm770_vm0 = vcmp.gt.f32.partialorder %v1841_v3, 0.0 }
  0xfc   : > { %v1301_v11 = vpop.f32.mrf.mxu0 }
  0xfd   : > { %v794_v12 = vmul.f32 1.442695, %v782_v7  ;;  %v1845_v13 = vadd.f32 %v1351_v9, %v646_v8  ;;  %v1302_v14 = vadd.f32 %v1301_v11, %v1300_v6  ;;  %v1353_v15 = vpop.f32.mrf.mxu1 }
  0xfe   : > { %v1303_v16 = vpop.f32.mrf.mxu0  ;;  %v1354_v19 = vadd.f32 %v1353_v15, %v1352_v10 }
  0xff   : > { %1540 = vpow2.f32 %v794_v12  ;;  %v783_v17 = vmin.f32 %v1845_v13, 0.0  ;;  %v651_v18 = vadd.f32 %v1302_v14, %v1838_v58  ;;  %v1355_v20 = vpop.f32.mrf.mxu1  ;;  %vm771_vm2 = vcmp.gt.f32.partialorder %v1845_v13, 0.0 }
 0x100   : > { %v1304_v21 = vpop.f32.mrf.mxu0 }
 0x101   : > { %v796_v22 = vmul.f32 1.442695, %v783_v17  ;;  %v1849_v23 = vadd.f32 %v1354_v19, %v651_v18  ;;  %v1305_v24 = vadd.f32 %v1304_v21, %v1303_v16  ;;  %v1356_v25 = vpop.f32.mrf.mxu1 }
 0x102   : > { %v1306_v26 = vpop.f32.mrf.mxu0  ;;  %v1357_v29 = vadd.f32 %v1356_v25, %v1355_v20 }
 0x103   : > { %1542 = vpow2.f32 %v796_v22  ;;  %v784_v27 = vmin.f32 %v1849_v23, 0.0  ;;  %v654_v28 = vadd.f32 %v1305_v24, %v1838_v58  ;;  %v1358_v30 = vpop.f32.mrf.mxu1  ;;  %vm772_vm3 = vcmp.gt.f32.partialorder %v1849_v23, 0.0 }
 0x104   : > { %v1307_v31 = vpop.f32.mrf.mxu0 }
 0x105   : > { %v798_v32 = vmul.f32 1.442695, %v784_v27  ;;  %v1853_v33 = vadd.f32 %v1357_v29, %v654_v28  ;;  %v1308_v34 = vadd.f32 %v1307_v31, %v1306_v26  ;;  %v1359_v35 = vpop.f32.mrf.mxu1 }
 0x106   : > { %v1309_v36 = vpop.f32.mrf.mxu0  ;;  %v1360_v39 = vadd.f32 %v1359_v35, %v1358_v30 }
 0x107   : > { %1544 = vpow2.f32 %v798_v32  ;;  %v785_v37 = vmin.f32 %v1853_v33, 0.0  ;;  %v659_v38 = vadd.f32 %v1308_v34, %v1838_v58  ;;  %v1361_v40 = vpop.f32.mrf.mxu1  ;;  %vm773_vm4 = vcmp.gt.f32.partialorder %v1853_v33, 0.0 }
 0x108   : > { %v1310_v41 = vpop.f32.mrf.mxu0 }
 0x109   : > { %v800_v42 = vmul.f32 1.442695, %v785_v37  ;;  %v1858_v43 = vadd.f32 %v1360_v39, %v659_v38  ;;  %v1311_v44 = vadd.f32 %v1310_v41, %v1309_v36  ;;  %v1362_v45 = vpop.f32.mrf.mxu1 }
 0x10a   : > { %v1312_v46 = vpop.f32.mrf.mxu0  ;;  %v1363_v49 = vadd.f32 %v1362_v45, %v1361_v40 }
 0x10b   : > { %1546 = vpow2.f32 %v800_v42  ;;  %v786_v47 = vmin.f32 %v1858_v43, 0.0  ;;  %v662_v48 = vadd.f32 %v1311_v44, %v1838_v58  ;;  %v1364_v50 = vpop.f32.mrf.mxu1  ;;  %vm774_vm5 = vcmp.gt.f32.partialorder %v1858_v43, 0.0 }
 0x10c   : > { %v1541_v51 = vpop.eup %1540  ;;  %v1313_v52 = vpop.f32.mrf.mxu0 }
 0x10d   : > { %v1228_v53 = vadd.f32 -1.0, %v1541_v51  ;;  %v802_v54 = vmul.f32 1.442695, %v786_v47  ;;  %v1862_v55 = vadd.f32 %v1363_v49, %v662_v48  ;;  %v1314_v56 = vadd.f32 %v1313_v52, %v1312_v46  ;;  %v1365_v57 = vpop.f32.mrf.mxu1 }
 0x10e   : > { %v1315_v59 = vpop.f32.mrf.mxu0  ;;  %v1366_v2 = vadd.f32 %v1365_v57, %v1364_v50 }
 0x10f   : > { %v830_v60 = vsel %vm770_vm0, %v1841_v3, %v1228_v53  ;;  %1548 = vpow2.f32 %v802_v54  ;;  %v787_v61 = vmin.f32 %v1862_v55, 0.0  ;;  %v1367_v62 = vpop.f32.mrf.mxu1  ;;  %v667_v1 = vadd.f32 %v1314_v56, %v1838_v58 }
 0x110   : > { %v1543_v63 = vpop.eup %1542  ;;  %v1265_v0 = vpack.c.bf16 %v830_v60, %v830_v60  ;;  %v1316_v4 = vpop.f32.mrf.mxu0  ;;  %vm775_vm6 = vcmp.gt.f32.partialorder %v1862_v55, 0.0 }
 0x111   : > { %v1229_v5 = vadd.f32 -1.0, %v1543_v63  ;;  %v804_v6 = vmul.f32 1.442695, %v787_v61  ;;  %v1317_v7 = vadd.f32 %v1316_v4, %v1315_v59  ;;  %v1368_v8 = vpop.f32.mrf.mxu1  ;;  %v1873_v3 = vadd.f32 %v1366_v2, %v667_v1 }
 0x112   : > { %891 = vst.msk [vmem:[%s1868_s12] sm:$0xf] %vm890_vm1, %v1265_v0  ;;  %v1318_v9 = vpop.f32.mrf.mxu0  ;;  %v1369_v12 = vadd.f32 %v1368_v8, %v1367_v62 }
 0x113   : > { %v831_v10 = vsel %vm771_vm2, %v1845_v13, %v1229_v5  ;;  %1550 = vpow2.f32 %v804_v6  ;;  %v670_v11 = vadd.f32 %v1317_v7, %v1838_v58  ;;  %v1370_v14 = vpop.f32.mrf.mxu1  ;;  %v788_v17 = vmin.f32 %v1873_v3, 0.0 }
 0x114   : > { %v1545_v15 = vpop.eup %1544  ;;  %v1266_v16 = vpack.c.bf16 %v831_v10, %v831_v10  ;;  %v1319_v18 = vpop.f32.mrf.mxu0  ;;  %vm776_vm7 = vcmp.gt.f32.partialorder %v1873_v3, 0.0 }
 0x115   : > { %v1230_v19 = vadd.f32 -1.0, %v1545_v15  ;;  %v1878_v20 = vadd.f32 %v1369_v12, %v670_v11  ;;  %v1320_v21 = vadd.f32 %v1319_v18, %v1318_v9  ;;  %v1371_v22 = vpop.f32.mrf.mxu1  ;;  %v806_v13 = vmul.f32 1.442695, %v788_v17 }
 0x116   : > { %892 = vst.msk [vmem:[%s1868_s12 + $0x4] sm:$0xf] %vm890_vm1, %v1266_v16  ;;  %v1321_v24 = vpop.f32.mrf.mxu0  ;;  %v1372_v28 = vadd.f32 %v1371_v22, %v1370_v14 }
 0x117   : > { %v832_v25 = vsel %vm772_vm3, %v1849_v23, %v1230_v19  ;;  %v789_v26 = vmin.f32 %v1878_v20, 0.0  ;;  %v675_v27 = vadd.f32 %v1320_v21, %v1838_v58  ;;  %v1373_v29 = vpop.f32.mrf.mxu1  ;;  %1552 = vpow2.f32 %v806_v13 }
 0x118   : > { %v1547_v30 = vpop.eup %1546  ;;  %v1267_v31 = vpack.c.bf16 %v832_v25, %v832_v25  ;;  %v1322_v32 = vpop.f32.mrf.mxu0  ;;  %vm777_vm8 = vcmp.gt.f32.partialorder %v1878_v20, 0.0 }
 0x119   : > { %v1231_v34 = vadd.f32 -1.0, %v1547_v30  ;;  %v808_v35 = vmul.f32 1.442695, %v789_v26  ;;  %v1886_v36 = vadd.f32 %v1372_v28, %v675_v27  ;;  %v1323_v37 = vadd.f32 %v1322_v32, %v1321_v24  ;;  %v1374_v38 = vpop.f32.mrf.mxu1 }
 0x11a   : > { %893 = vst.msk [vmem:[%s1868_s12 + $0x8] sm:$0xf] %vm890_vm1, %v1267_v31  ;;  %v1324_v23 = vpop.f32.mrf.mxu0  ;;  %v1375_v46 = vadd.f32 %v1374_v38, %v1373_v29 }
 0x11b   : > { %v833_v39 = vsel %vm773_vm4, %v1853_v33, %v1231_v34  ;;  %1554 = vpow2.f32 %v808_v35  ;;  %v790_v40 = vmin.f32 %v1886_v36, 0.0  ;;  %v1376_v41 = vpop.f32.mrf.mxu1  ;;  %v678_v45 = vadd.f32 %v1323_v37, %v1838_v58 }
 0x11c   : > { %v1549_v42 = vpop.eup %1548  ;;  %v1268_v44 = vpack.c.bf16 %v833_v39, %v833_v39  ;;  %v1325_v47 = vpop.f32.mrf.mxu0  ;;  %vm778_vm9 = vcmp.gt.f32.partialorder %v1886_v36, 0.0 }
 0x11d   : > { %v1232_v48 = vadd.f32 -1.0, %v1549_v42  ;;  %v810_v49 = vmul.f32 1.442695, %v790_v40  ;;  %v1326_v50 = vadd.f32 %v1325_v47, %v1324_v23  ;;  %v1377_v51 = vpop.f32.mrf.mxu1  ;;  %v759_v33 = vadd.f32 %v1375_v46, %v678_v45 }
 0x11e   : > { %894 = vst.msk [vmem:[%s1868_s12 + $0xc] sm:$0xf] %vm890_vm1, %v1268_v44  ;;  %v1327_v52 = vpop.f32.mrf.mxu0  ;;  %v1378_v56 = vadd.f32 %v1377_v51, %v1376_v41 }
 0x11f   : > { %v834_v53 = vsel %vm774_vm5, %v1858_v43, %v1232_v48  ;;  %1556 = vpow2.f32 %v810_v49  ;;  %v683_v54 = vadd.f32 %v1326_v50, %v1838_v58  ;;  %v1379_v57 = vpop.f32.mrf.mxu1  ;;  %v791_v61 = vmin.f32 %v759_v33, 0.0 }
 0x120   : > { %v1551_v59 = vpop.eup %1550  ;;  %v1269_v60 = vpack.c.bf16 %v834_v53, %v834_v53  ;;  %v1328_v62 = vpop.f32.mrf.mxu0  ;;  %vm779_vm10 = vcmp.gt.f32.partialorder %v759_v33, 0.0 }
 0x121   : > { %v1233_v63 = vadd.f32 -1.0, %v1551_v59  ;;  %v764_v0 = vadd.f32 %v1378_v56, %v683_v54  ;;  %v1329_v1 = vadd.f32 %v1328_v62, %v1327_v52  ;;  %v1380_v2 = vpop.f32.mrf.mxu1  ;;  %v812_v4 = vmul.f32 1.442695, %v791_v61 }
 0x122   : > { %895 = vst.msk [vmem:[%s1868_s12 + $0x10] sm:$0xf] %vm890_vm1, %v1269_v60  ;;  %v1381_v7 = vadd.f32 %v1380_v2, %v1379_v57 }
 0x123   : > { %v835_v43 = vsel %vm775_vm6, %v1862_v55, %v1233_v63  ;;  %v792_v5 = vmin.f32 %v764_v0, 0.0  ;;  %v686_v6 = vadd.f32 %v1329_v1, %v1838_v58  ;;  %1558 = vpow2.f32 %v812_v4 }
 0x124   : > { %v1270_v8 = vpack.c.bf16 %v835_v43, %v835_v43  ;;  %v1553_v9 = vpop.eup %1552  ;;  %vm780_vm11 = vcmp.gt.f32.partialorder %v764_v0, 0.0 }
 0x125   : > { %v814_v10 = vmul.f32 1.442695, %v792_v5  ;;  %v767_v11 = vadd.f32 %v1381_v7, %v686_v6  ;;  %v1234_v12 = vadd.f32 -1.0, %v1553_v9 }
 0x126   : > { %896 = vst.msk [vmem:[%s1868_s12 + $0x14] sm:$0xf] %vm890_vm1, %v1270_v8 }
 0x127   : > { %1560 = vpow2.f32 %v814_v10  ;;  %v793_v14 = vmin.f32 %v767_v11, 0.0  ;;  %v836_v55 = vsel %vm776_vm7, %v1873_v3, %v1234_v12  ;;  %vm781_vm12 = vcmp.gt.f32.partialorder %v767_v11, 0.0 }
 0x128   : > { %v1555_v15 = vpop.eup %1554  ;;  %v1271_v58 = vpack.c.bf16 %v836_v55, %v836_v55 }
 0x129   : > { %v1235_v16 = vadd.f32 -1.0, %v1555_v15  ;;  %v816_v17 = vmul.f32 1.442695, %v793_v14 }
 0x12a   : > { %897 = vst.msk [vmem:[%s1868_s12 + $0x18] sm:$0xf] %vm890_vm1, %v1271_v58 }
 0x12b   : > { %v837_v18 = vsel %vm777_vm8, %v1878_v20, %v1235_v16  ;;  %1562 = vpow2.f32 %v816_v17 }
 0x12c   : > { %v1557_v19 = vpop.eup %1556  ;;  %v1272_v21 = vpack.c.bf16 %v837_v18, %v837_v18 }
 0x12d   : > { %v1236_v22 = vadd.f32 -1.0, %v1557_v19 }
 0x12e   : > { %898 = vst.msk [vmem:[%s1868_s12 + $0x1c] sm:$0xf] %vm890_vm1, %v1272_v21 }
 0x12f   : > { %v838_v3 = vsel %vm778_vm9, %v1886_v36, %v1236_v22 }
 0x130   : > { %v1273_v13 = vpack.c.bf16 %v838_v3, %v838_v3  ;;  %v1559_v24 = vpop.eup %1558 }
 0x131   : > { %v1237_v25 = vadd.f32 -1.0, %v1559_v24 }
 0x132   : > { %899 = vst.msk [vmem:[%s1868_s12 + $0x20] sm:$0xf] %vm890_vm1, %v1273_v13 }
 0x133   : > { %v839_v26 = vsel %vm779_vm10, %v759_v33, %v1237_v25 }
 0x134   : > { %v1561_v20 = vpop.eup %1560  ;;  %v1274_v27 = vpack.c.bf16 %v839_v26, %v839_v26 }
 0x135   : > { %v1238_v28 = vadd.f32 -1.0, %v1561_v20 }
 0x136   : > { %900 = vst.msk [vmem:[%s1868_s12 + $0x24] sm:$0xf] %vm890_vm1, %v1274_v27 }
 0x137   : > { %v840_v29 = vsel %vm780_vm11, %v764_v0, %v1238_v28 }
 0x138   : > { %v1563_v30 = vpop.eup %1562  ;;  %v1275_v31 = vpack.c.bf16 %v840_v29, %v840_v29 }
 0x139   : > { %v1239_v32 = vadd.f32 -1.0, %v1563_v30 }
 0x13a   : > { %901 = vst.msk [vmem:[%s1868_s12 + $0x28] sm:$0xf] %vm890_vm1, %v1275_v31  ;;  %909 = sbr.rel (!%p1701_p4) target bundleno = 380 (0x17c), region = 36 }
 0x13b   : > { %v841_v34 = vsel %vm781_vm12, %v767_v11, %v1239_v32 }
 0x13c   : > { %v1276_v35 = vpack.c.bf16 %v841_v34, %v841_v34 }
 0x13e   : > { %902 = vst.msk [vmem:[%s1868_s12 + $0x2c] sm:$0xf] %vm890_vm1, %v1276_v35 }
 0x13f   : > { %s1995_s7 = smov (!%p912_p8, %s911_s7), 12 }
 0x140   : > { %s1252_s14 = sshll.u32 %s1995_s7, 6 }
 0x141   : > { %p1255_p9 = scmp.eq.s32.totalorder %s1252_s14, 0 }
 0x142   : > { %1564 = sdivrem.u32 (!%p1255_p9), %s1995_s7, 12 }
 0x143   : > { %920 = sbr.rel (%p1255_p9) target bundleno = 380 (0x17c), region = 40 }
 0x14b   : > { %s1937_s20 = spop.drf %1564 }
 0x14c   : > { %p1256_p10 = scmp.le.s32.totalorder %s1937_s20, 0 }
 0x14d   : > { %s1988_s15 = smov (!%p1256_p10), %s1931_s11  ;;  %s1989_s30 = smov (!%p1256_p10), %s1868_s12 }
 0x14e   : > { %1121 = sbr.rel (%p1256_p10) target bundleno = 355 (0x163), region = 112  ;;  %s1946_s17 = smov (!%p1256_p10), 0  }
 0x14f   : > { %s1948_s18 = smov (!%p1256_p10), 0  }
 0x153 LB: >> { %v938_v36 = vld [vmem:[%s1630_s30] sm:$0xf]  ;;  %v940_v37 = vld [vmem:[%s1630_s30 + $0x4] sm:$0xf]  ;;  %v942_v38 = vld [vmem:[%s1630_s30 + $0x8] sm:$0xf]  ;;  %s1638_s18 = sphi %s1948_s18, %s932_s18   ;;  %s1634_s17 = sphi %s1946_s17, %s1990_s17   ;;  %s1630_s30 = sphi %s1989_s30, %s967_s30   ;;  %s1626_s15 = sphi %s1988_s15, %s968_s15  }
 0x154   : >> { %939 = vst [vmem:[%s1626_s15] sm:$0xf] %v938_v36  ;;  %941 = vst [vmem:[%s1626_s15 + $0x4] sm:$0xf] %v940_v37  ;;  %v944_v23 = vld [vmem:[%s1630_s30 + $0xc] sm:$0xf]  ;;  %s962_s21 = sadd.s32 1, %s1634_s17 }
 0x155   : >> { %943 = vst [vmem:[%s1626_s15 + $0x8] sm:$0xf] %v942_v38  ;;  %v946_v39 = vld [vmem:[%s1630_s30 + $0x10] sm:$0xf]  ;;  %v948_v40 = vld [vmem:[%s1630_s30 + $0x14] sm:$0xf]  ;;  %p963_p11 = scmp.ge.s32.totalorder %s962_s21, %s1937_s20 }
 0x156   : >> { %945 = vst [vmem:[%s1626_s15 + $0xc] sm:$0xf] %v944_v23  ;;  %947 = vst [vmem:[%s1626_s15 + $0x10] sm:$0xf] %v946_v39  ;;  %v950_v41 = vld [vmem:[%s1630_s30 + $0x18] sm:$0xf] }
 0x157   : >> { %949 = vst [vmem:[%s1626_s15 + $0x14] sm:$0xf] %v948_v40  ;;  %v952_v42 = vld [vmem:[%s1630_s30 + $0x1c] sm:$0xf]  ;;  %v954_v44 = vld [vmem:[%s1630_s30 + $0x20] sm:$0xf] }
 0x158   : >> { %951 = vst [vmem:[%s1626_s15 + $0x18] sm:$0xf] %v950_v41  ;;  %953 = vst [vmem:[%s1626_s15 + $0x1c] sm:$0xf] %v952_v42  ;;  %v956_v45 = vld [vmem:[%s1630_s30 + $0x24] sm:$0xf] }
 0x159   : >> { %955 = vst [vmem:[%s1626_s15 + $0x20] sm:$0xf] %v954_v44  ;;  %v958_v46 = vld [vmem:[%s1630_s30 + $0x28] sm:$0xf]  ;;  %v960_v47 = vld [vmem:[%s1630_s30 + $0x2c] sm:$0xf] }
 0x15a   : >> { %957 = vst [vmem:[%s1626_s15 + $0x24] sm:$0xf] %v956_v45  ;;  %959 = vst [vmem:[%s1626_s15 + $0x28] sm:$0xf] %v958_v46  ;;  %s1997_s21 = smov (%p963_p11, %s962_s21), 0  ;;  %s932_s18 = sadd.s32 1, %s1638_s18  }
 0x15b   : >> { %961 = vst [vmem:[%s1626_s15 + $0x2c] sm:$0xf] %v960_v47  ;;  %s965_s22 = smul.u32 48, %s1997_s21  ;;  %p931_p12 = scmp.ge.s32.totalorder %s932_s18, %s1937_s20 }
 0x15c   : >> { %s1990_s17 = smov %s1997_s21 }
 0x15d   : >> { %s967_s30 = scalar_lea.vmem %s1868_s12, %s965_s22 [#allocation2]   ;;  %s968_s15 = scalar_lea.vmem %s1931_s11, %s965_s22  }
 0x15e   : > { %934 = sbr.rel (!%p931_p12) target bundleno = 339 (0x153), region = 118 }
 0x163 PF: > { %1566 = sdivrem.u32 %s1995_s7, 12 }
 0x164   : > { %s1257_s23 = smul.u32 48, %s1937_s20 }
 0x166   : > { %s973_s24 = scalar_lea.vmem %s1868_s12, %s1257_s23 [#allocation2]   ;;  %s975_s25 = scalar_lea.vmem %s1931_s11, %s1257_s23  }
 0x16c   : > { %s1567_s26 = spop.drf %1566 }
 0x16d   : > { %p1259_p13 = scmp.le.s32.totalorder %s1567_s26, 0 }
 0x16e   : > { %s1640_s27 = smov (!%p1259_p13), %s975_s25   ;;  %s1644_s28 = smov (!%p1259_p13), %s973_s24  }
 0x16f   : > { %1135 = sbr.rel (%p1259_p13) target bundleno = 380 (0x17c), region = 123  ;;  %s1648_s29 = smov (!%p1259_p13), 0  }
 0x170   : > { %s1652_s4 = smov (!%p1259_p13), 0  }
 0x174 LB: >> { %v985_v48 = vld [vmem:[%s1646_s28] sm:$0xf]  ;;  %s987_s5 = sadd.s32 1, %s1650_s29  ;;  %s979_s4 = sadd.s32 1, %s1654_s4   ;;  %s1654_s4 = sphi %s1652_s4, %s979_s4   ;;  %s1650_s29 = sphi %s1648_s29, %s1649_s29   ;;  %s1646_s28 = sphi %s1644_s28, %s992_s28   ;;  %s1642_s27 = sphi %s1640_s27, %s993_s27  }
 0x175   : >> { %986 = vst [vmem:[%s1642_s27] sm:$0xf] %v985_v48  ;;  %p988_p0 = scmp.ge.s32.totalorder %s987_s5, %s1567_s26  ;;  %p978_p1 = scmp.ge.s32.totalorder %s979_s4, %s1567_s26 }
 0x177   : >> { %s1999_s5 = smov (%p988_p0, %s987_s5), 0  ;;  %981 = sbr.rel (!%p978_p1) target bundleno = 372 (0x174), region = 129 }
 0x178   : >> { %s1260_s6 = sshll.u32 %s1999_s5, 2  ;;  %s1649_s29 = smov %s1999_s5  }
 0x179   : >> { %s992_s28 = scalar_lea.vmem %s973_s24, %s1260_s6 [#allocation2]   ;;  %s993_s27 = scalar_lea.vmem %s975_s25, %s1260_s6  }
 0x17c PF: > { %p10_p2 = scmp.ge.s32.totalorder %s1691_s16, 4   ;;  %s1991_s12 = smov %s1618_s13 }
 0x17d   : > { %s1992_s13 = smov %s1699_s19  ;;  %s1993_s14 = smov %s1691_s16 }
 0x17e   :  { %12 = sbr.rel (!%p10_p2) target bundleno = 2 (0x2), region = 140 }

// kernel: contrastive_forward.6
= control target key start
LH: loop header
LB: loop body
LE: loop exit
PB: predicated region body
PF: predicated region fallthrough
CT: control target
= control target key end

     0   :  { %s1662_s12 = smov 0   ;;  %s1664_s13 = smov 0   ;;  %s1915_s0 = inlined_call_operand.vmem [shape: bf16[98,576], index: 0, kind: input, shape index: {}]   ;;  %s1916_s1 = inlined_call_operand.vmem [shape: bf16[576,64], index: 1, kind: input, shape index: {}]   ;;  %s1917_s2 = inlined_call_operand.vmem [shape: f32[1,64], index: 2, kind: input, shape index: {}]   ;;  %s1918_s3 = inlined_call_operand.vmem [shape: bf16[98,64], index: 3, kind: output, shape index: {}]  }
   0x1   :  { %s1666_s14 = smov 0  }
   0x2 LB: > { %s1675_s15 = sadd.s32 4294967295, %s1608_s14   ;;  %s1677_s16 = sadd.s32 1, %s1608_s14   ;;  %s1608_s14 = sphi %s1666_s14, %s1925_s14   ;;  %s1604_s13 = sphi %s1664_s13, %s1924_s13   ;;  %s1600_s12 = sphi %s1662_s12, %s1923_s12  }
   0x3   : > { %s85_s17 = ssub.s32 %s1608_s14, %s1677_s16  ;;  %s88_s18 = sadd.s32 1, %s1604_s13 }
   0x4   : > { %p86_p0 = scmp.eq.s32.totalorder %s85_s17, 0  ;;  %p98_p1 = scmp.ne.s32.totalorder %s1604_s13, %s1600_s12 }
   0x5   : > { %p99_p2 = scmp.eq.s32.totalorder %s1675_s15, 1  ;;  %p1164_p3 = scmp.ge.s32.totalorder %s1608_s14, 1 }
   0x6   : > { %s1685_s19 = scalar_select %p86_p0, %s1604_s13, %s88_s18  }
   0x7   : > { %p1687_p4 = por %p99_p2, %p98_p1  ;;  %p149_p5 = scmp.lt.s32.totalorder %s1608_s14, 3 }
   0x9   : > { %p150_p6 = pnand %p1164_p3, %p149_p5 }
   0xa   : > { %s1737_s30 = sshll.u32 (!%p150_p6), %s1675_s15, 3  ;;  %s175_s17 = sand.u32 (!%p150_p6), 1, %s1600_s12  }
   0xb   : > { %153 = sbr.rel (%p150_p6) target bundleno = 352 (0x160), region = 32  ;;  %p184_p7 = scmp.lt.s32.totalorder (!%p150_p6), %s1737_s30, 12 }
   0xc   : > { %s1165_s18 = sshll.u32 (!%p150_p6), %s175_s17, 5 }
   0xd   : > { %s1836_s12 = scalar_lea.vmem (!%p150_p6), [#allocation2], %s1165_s18  }
  0x10   : > { %v1474_v0 = vld [vmem:[%s1916_s1 + $0x78] sm:$0xff]   ;;  %v1478_v4 = vld [vmem:[%s1916_s1 + $0x70] sm:$0xff]   ;;  %v1482_v8 = vld [vmem:[%s1916_s1 + $0x68] sm:$0xff]   ;;  %s185_s24 = scalar_select %p184_p7, %s1737_s30, 12  ;;  %vm620_vm0 = vcmask 523264   ;;  %vm908_vm2 = vcmask 519168  }
  0x11   : > { %v1475_v1 = vld [vmem:[%s1916_s1 + $0xf8] sm:$0xff]   ;;  %1273 = vmatprep.subr.bf16.mxu0 %v1474_v0  ;;  %v1479_v5 = vld [vmem:[%s1916_s1 + $0xf0] sm:$0xff]   ;;  %v1483_v9 = vld [vmem:[%s1916_s1 + $0xe8] sm:$0xff]   ;;  %s925_s21 = ssub.s32 (%p1687_p4), 13, %s1737_s30  ;;  %s1270_s22 = sshll.u32 (%p1687_p4), %s1675_s15, 5 }
  0x12   : > { %v1476_v2 = vld [vmem:[%s1916_s1 + $0x38] sm:$0xff]   ;;  %1313 = vmatprep.subr.bf16.mxu1 %v1475_v1  ;;  %v1480_v6 = vld [vmem:[%s1916_s1 + $0x30] sm:$0xff]   ;;  %v1484_v10 = vld [vmem:[%s1916_s1 + $0x28] sm:$0xff]   ;;  %s1385_s7 = smul.u32 20, %s185_s24  ;;  %p926_p8 = scmp.lt.s32.totalorder (%p1687_p4), %s925_s21, 8 }
  0x13   : > { %v1477_v3 = vld [vmem:[%s1916_s1 + $0xb8] sm:$0xff]   ;;  %1274 = vmatpush3.bf16.msra.mxu0 %v1476_v2  ;;  %v1481_v7 = vld [vmem:[%s1916_s1 + $0xb0] sm:$0xff]   ;;  %v1485_v11 = vld [vmem:[%s1916_s1 + $0xa8] sm:$0xff]   ;;  %s1861_s25 = scalar_lea.vmem (%p1687_p4), %s1918_s3, %s1270_s22  }
  0x14   : > { %1314 = vmatpush3.bf16.msra.mxu1 %v1477_v3  ;;  %1275 = vmatprep.subr.bf16.mxu0 %v1478_v4  ;;  %v1486_v12 = vld [vmem:[%s1916_s1 + $0x60] sm:$0xff]   ;;  %v1490_v16 = vld [vmem:[%s1916_s1 + $0x58] sm:$0xff]   ;;  %v1494_v20 = vld [vmem:[%s1916_s1 + $0x50] sm:$0xff]   ;;  %s1789_s24 = scalar_lea.vmem %s1915_s0, %s1385_s7 }
  0x15   : > { %1315 = vmatprep.subr.bf16.mxu1 %v1479_v5  ;;  %v1487_v13 = vld [vmem:[%s1916_s1 + $0xe0] sm:$0xff]   ;;  %v1491_v17 = vld [vmem:[%s1916_s1 + $0xd8] sm:$0xff]   ;;  %v1495_v21 = vld [vmem:[%s1916_s1 + $0xd0] sm:$0xff]  }
  0x16   : > { %v1488_v14 = vld [vmem:[%s1916_s1 + $0x20] sm:$0xff]   ;;  %v1492_v18 = vld [vmem:[%s1916_s1 + $0x18] sm:$0xff]   ;;  %v1496_v22 = vld [vmem:[%s1916_s1 + $0x10] sm:$0xff]  }
  0x17   : > { %1276 = vmatpush3.bf16.msra.mxu0 %v1480_v6  ;;  %v1489_v15 = vld [vmem:[%s1916_s1 + $0xa0] sm:$0xff]   ;;  %v1493_v19 = vld [vmem:[%s1916_s1 + $0x98] sm:$0xff]   ;;  %v1497_v23 = vld [vmem:[%s1916_s1 + $0x90] sm:$0xff]  }
  0x18   : > { %1316 = vmatpush3.bf16.msra.mxu1 %v1481_v7  ;;  %1277 = vmatprep.subr.bf16.mxu0 %v1482_v8  ;;  %v1498_v24 = vld [vmem:[%s1916_s1 + $0x48] sm:$0xff]   ;;  %v1502_v28 = vld [vmem:[%s1916_s1 + $0x40] sm:$0xff]   ;;  %v1512_v36 = vld [vmem:[%s1916_s1 + $0x118] sm:$0xff]  }
  0x19   : > { %1317 = vmatprep.subr.bf16.mxu1 %v1483_v9  ;;  %v1499_v25 = vld [vmem:[%s1916_s1 + $0xc8] sm:$0xff]   ;;  %v1503_v29 = vld [vmem:[%s1916_s1 + $0xc0] sm:$0xff]   ;;  %v1519_v39 = vld [vmem:[%s1916_s1 + $0x110] sm:$0xff]  }
  0x1a   : > { %v1500_v26 = vld [vmem:[%s1916_s1 + $0x8] sm:$0xff]   ;;  %v1504_v30 = vld [vmem:[%s1916_s1] sm:$0xff]   ;;  %v1522_v43 = vld [vmem:[%s1789_s24 + $0x5c] ss:$20 sps:$4 sm:$0xff]  }
  0x1b   : > { %1278 = vmatpush3.bf16.msra.mxu0 %v1484_v10  ;;  %v1501_v27 = vld [vmem:[%s1916_s1 + $0x88] sm:$0xff]   ;;  %v1505_v31 = vld [vmem:[%s1916_s1 + $0x80] sm:$0xff]   ;;  %v1527_v48 = vld [vmem:[%s1789_s24 + $0x7c] ss:$20 sps:$4 sm:$0xff]  }
  0x1c   : > { %1318 = vmatpush3.bf16.msra.mxu1 %v1485_v11  ;;  %1279 = vmatprep.subr.bf16.mxu0 %v1486_v12  ;;  %v1506_v32 = vld [vmem:[%s1789_s24] ss:$20 sps:$4 sm:$0xff]   ;;  %v1508_v33 = vld [vmem:[%s1789_s24 + $0x4] ss:$20 sps:$4 sm:$0xff]   ;;  %v1509_v34 = vld [vmem:[%s1789_s24 + $0x8] ss:$20 sps:$4 sm:$0xff]  }
  0x1d   : > { %1319 = vmatprep.subr.bf16.mxu1 %v1487_v13  ;;  %v1511_v35 = vld [vmem:[%s1789_s24 + $0xc] ss:$20 sps:$4 sm:$0xff]   ;;  %665 = vmatprep.mubr.bf16.mxu0 %v1508_v33  ;;  %v1515_v38 = vld [vmem:[%s1789_s24 + $0x34] ss:$20 sps:$4 sm:$0xff]   ;;  %v1518_v41 = vld [vmem:[%s1789_s24 + $0x30] ss:$20 sps:$4 sm:$0xff]  }
  0x1e   : > { %730 = vmatprep.mubr.bf16.mxu1 %v1511_v35  ;;  %v1513_v37 = vld [vmem:[%s1789_s24 + $0x2c] ss:$20 sps:$4 sm:$0xff]   ;;  %v1517_v40 = vld [vmem:[%s1789_s24 + $0x28] ss:$20 sps:$4 sm:$0xff]   ;;  %v1524_v46 = vld [vmem:[%s1789_s24 + $0x50] ss:$20 sps:$4 sm:$0xff]  }
  0x1f   : > { %1280 = vmatpush3.bf16.msra.mxu0 %v1488_v14  ;;  %v1520_v42 = vld [vmem:[%s1789_s24 + $0x54] ss:$20 sps:$4 sm:$0xff]   ;;  %v1533_v45 = vld [vmem:[%s1916_s1 + $0x100] sm:$0xff]   ;;  %v1525_v47 = vld [vmem:[%s1789_s24 + $0x58] ss:$20 sps:$4 sm:$0xff]  }
  0x20   : > { %1320 = vmatpush3.bf16.msra.mxu1 %v1489_v15  ;;  %1281 = vmatprep.subr.bf16.mxu0 %v1490_v16  ;;  %v1526_v44 = vld [vmem:[%s1916_s1 + $0x108] sm:$0xff]   ;;  %v1529_v49 = vld [vmem:[%s1789_s24 + $0x84] ss:$20 sps:$4 sm:$0xff]   ;;  %v1532_v51 = vld [vmem:[%s1789_s24 + $0x80] ss:$20 sps:$4 sm:$0xff]  }
  0x21   : > { %1321 = vmatprep.subr.bf16.mxu1 %v1491_v17  ;;  %v1531_v50 = vld [vmem:[%s1789_s24 + $0x78] ss:$20 sps:$4 sm:$0xff]   ;;  %v1534_v52 = vld [vmem:[%s1789_s24 + $0x10] ss:$20 sps:$4 sm:$0xff]   ;;  %v1535_v53 = vld [vmem:[%s1789_s24 + $0x60] ss:$20 sps:$4 sm:$0xff]  }
  0x22   : > { %v1536_v54 = vld [vmem:[%s1789_s24 + $0x38] ss:$20 sps:$4 sm:$0xff]   ;;  %v1537_v55 = vld [vmem:[%s1789_s24 + $0x88] ss:$20 sps:$4 sm:$0xff]  }
  0x23   : > { %1282 = vmatpush3.bf16.msra.mxu0 %v1492_v18 }
  0x24   : > { %1322 = vmatpush3.bf16.msra.mxu1 %v1493_v19  ;;  %1283 = vmatprep.subr.bf16.mxu0 %v1494_v20  ;;  %v1168_v20 = vld [vmem:[%s1917_s2] ss:$0 sm:$0xff] }
  0x25   : > { %1323 = vmatprep.subr.bf16.mxu1 %v1495_v21 }
  0x27   : > { %1284 = vmatpush3.bf16.msra.mxu0 %v1496_v22 }
  0x28   : > { %1324 = vmatpush3.bf16.msra.mxu1 %v1497_v23  ;;  %1285 = vmatprep.subr.bf16.mxu0 %v1498_v24 }
  0x29   : > { %1325 = vmatprep.subr.bf16.mxu1 %v1499_v25 }
  0x2b   : > { %1286 = vmatpush3.bf16.msra.mxu0 %v1500_v26 }
  0x2c   : > { %1326 = vmatpush3.bf16.msra.mxu1 %v1501_v27  ;;  %1287 = vmatprep.subr.bf16.mxu0 %v1502_v28 }
  0x2d   : > { %1327 = vmatprep.subr.bf16.mxu1 %v1503_v29 }
  0x2f   : > { %1288 = vmatpush3.bf16.msra.mxu0 %v1504_v30 }
  0x30   : > { %1328 = vmatpush3.bf16.msra.mxu1 %v1505_v31  ;;  %1361 = vmatprep.subr.bf16.mxu0 %v1512_v36 }
  0x31   : > { %1377 = vmatprep.subr.bf16.mxu1 %v1512_v36 }
  0x32   : > { %666 = vmatmul.mubr.bf16.vlgmr.msra.gmra.mxu0 %v1506_v32 }
  0x33   : > { %731 = vmatmul.mubr.bf16.vlgmr.msra.gmra.mxu1 %v1509_v34  ;;  %1362 = vmatpush3.bf16.msra.mxu0 %v1512_v36 }
  0x34   : > { %1381 = vmatpush3.bf16.msra.mxu1 %v1512_v36  ;;  %673 = vmatprep.mubr.bf16.mxu0 %v1513_v37 }
  0x35   : > { %738 = vmatprep.mubr.bf16.mxu1 %v1515_v38  ;;  %1363 = vmatprep.subr.bf16.mxu0 %v1519_v39 }
  0x36   : > { %1378 = vmatprep.subr.bf16.mxu1 %v1519_v39 }
  0x37   : > { %1364 = vmatpush3.bf16.msra.mxu0 %v1519_v39 }
  0x38   : > { %1382 = vmatpush3.bf16.msra.mxu1 %v1519_v39  ;;  %1365 = vmatprep.subr.bf16.mxu0 %v1526_v44 }
  0x39   : > { %1379 = vmatprep.subr.bf16.mxu1 %v1526_v44 }
  0x3a   : > { %674 = vmatmul.mubr.bf16.gmra.mxu0 %v1517_v40 }
  0x3b   : > { %739 = vmatmul.mubr.bf16.gmra.mxu1 %v1518_v41  ;;  %681 = vmatprep.mubr.bf16.mxu0 %v1520_v42 }
  0x3c   : > { %746 = vmatprep.mubr.bf16.mxu1 %v1522_v43  ;;  %1366 = vmatpush3.bf16.msra.mxu0 %v1526_v44 }
  0x3d   : > { %1383 = vmatpush3.bf16.msra.mxu1 %v1526_v44  ;;  %1367 = vmatprep.subr.bf16.mxu0 %v1533_v45 }
  0x3e   : > { %1380 = vmatprep.subr.bf16.mxu1 %v1533_v45 }
  0x40   : > { %1368 = vmatpush3.bf16.msra.mxu0 %v1533_v45 }
  0x41   : > { %1384 = vmatpush3.bf16.msra.mxu1 %v1533_v45 }
  0x42   : > { %682 = vmatmul.mubr.bf16.gmra.mxu0 %v1524_v46 }
  0x43   : > { %747 = vmatmul.mubr.bf16.gmra.mxu1 %v1525_v47  ;;  %689 = vmatprep.mubr.bf16.mxu0 %v1527_v48 }
  0x44   : > { %754 = vmatprep.mubr.bf16.mxu1 %v1529_v49 }
  0x4a   : > { %690 = vmatmul.mubr.bf16.gmra.mxu0 %v1531_v50 }
  0x4b   : > { %755 = vmatmul.mubr.bf16.gmra.mxu1 %v1532_v51  ;;  %1369 = vmatprep.mubr.msk.bf16.mxu0 %vm620_vm0, %v1534_v52 }
  0x4c   : > { %1373 = vmatprep.mubr.msk.bf16.mxu1 %vm620_vm0, %v1535_v53 }
  0x52   : > { %1370 = vmatmul.mubr.msk.bf16.vlgmr.msra.gmra.mxu0 %vm620_vm0, %v1536_v54 }
  0x53   : > { %1374 = vmatmul.mubr.msk.bf16.vlgmr.msra.gmra.mxu1 %vm620_vm0, %v1537_v55 }
  0xf2   : > { %v1289_v56 = vpop.f32.mrf.mxu0 }
  0xf3   : > { %v1329_v57 = vpop.f32.mrf.mxu1 }
  0xf4   : > { %v1290_v58 = vpop.f32.mrf.mxu0 }
  0xf5   : > { %v1330_v59 = vpop.f32.mrf.mxu1  ;;  %v1291_v18 = vadd.f32 %v1290_v58, %v1289_v56 }
  0xf6   : > { %v1292_v60 = vpop.f32.mrf.mxu0  ;;  %v1331_v33 = vadd.f32 %v1330_v59, %v1329_v57 }
  0xf7   : > { %v1829_v61 = vpop.f32.mrf.mxu1  ;;  %v668_v28 = vadd.f32 %v1291_v18, %v1168_v20 }
  0xf8   : > { %v1293_v62 = vpop.f32.mrf.mxu0 }
  0xf9   : > { %v1333_v63 = vpop.f32.mrf.mxu1  ;;  %v1294_v34 = vadd.f32 %v1293_v62, %v1292_v60  ;;  %v733_v50 = vadd.f32 %v1331_v33, %v668_v28 }
  0xfa   : > { %v1295_v0 = vpop.f32.mrf.mxu0  ;;  %v1334_v62 = vadd.f32 %v1333_v63, %v1829_v61 }
  0xfb   : > { %v1335_v1 = vpop.f32.mrf.mxu1  ;;  %v671_v51 = vadd.f32 %v1294_v34, %v1168_v20 }
  0xfc   : > { %v1296_v2 = vpop.f32.mrf.mxu0 }
  0xfd   : > { %v1336_v3 = vpop.f32.mrf.mxu1  ;;  %v1297_v15 = vadd.f32 %v1296_v2, %v1295_v0 }
  0xfe   : > { %v1298_v4 = vpop.f32.mrf.mxu0  ;;  %v1337_v29 = vadd.f32 %v1336_v3, %v1335_v1 }
  0xff   : > { %v1338_v5 = vpop.f32.mrf.mxu1  ;;  %v676_v24 = vadd.f32 %v1297_v15, %v1168_v20 }
 0x100   : > { %v1299_v6 = vpop.f32.mrf.mxu0 }
 0x101   : > { %v1339_v7 = vpop.f32.mrf.mxu1  ;;  %v1300_v21 = vadd.f32 %v1299_v6, %v1298_v4  ;;  %v741_v41 = vadd.f32 %v1337_v29, %v676_v24 }
 0x102   : > { %v1301_v8 = vpop.f32.mrf.mxu0  ;;  %v1340_v43 = vadd.f32 %v1339_v7, %v1338_v5 }
 0x103   : > { %v1341_v9 = vpop.f32.mrf.mxu1  ;;  %v679_v35 = vadd.f32 %v1300_v21, %v1168_v20 }
 0x104   : > { %v1302_v10 = vpop.f32.mrf.mxu0 }
 0x105   : > { %v1342_v11 = vpop.f32.mrf.mxu1  ;;  %v1303_v22 = vadd.f32 %v1302_v10, %v1301_v8  ;;  %v744_v55 = vadd.f32 %v1340_v43, %v679_v35 }
 0x106   : > { %v1304_v12 = vpop.f32.mrf.mxu0  ;;  %v1343_v44 = vadd.f32 %v1342_v11, %v1341_v9  ;;  %v736_v11 = vadd.f32 %v1334_v62, %v671_v51 }
 0x107   : > { %v1344_v13 = vpop.f32.mrf.mxu1  ;;  %v684_v36 = vadd.f32 %v1303_v22, %v1168_v20 }
 0x108   : > { %v1305_v14 = vpop.f32.mrf.mxu0 }
 0x109   : > { %v1345_v16 = vpop.f32.mrf.mxu1  ;;  %v1306_v38 = vadd.f32 %v1305_v14, %v1304_v12  ;;  %v749_v54 = vadd.f32 %v1343_v44, %v684_v36 }
 0x10a   : > { %v1307_v17 = vpop.f32.mrf.mxu0  ;;  %v1346_v3 = vadd.f32 %v1345_v16, %v1344_v13 }
 0x10b   : > { %v1347_v19 = vpop.f32.mrf.mxu1  ;;  %v687_v56 = vadd.f32 %v1306_v38, %v1168_v20 }
 0x10c   : > { %v1308_v23 = vpop.f32.mrf.mxu0 }
 0x10d   : > { %v1309_v25 = vadd.f32 %v1308_v23, %v1307_v17  ;;  %v1348_v26 = vpop.f32.mrf.mxu1  ;;  %v752_v17 = vadd.f32 %v1346_v3, %v687_v56 }
 0x10e   : > { %v1310_v27 = vpop.f32.mrf.mxu0  ;;  %v1349_v31 = vadd.f32 %v1348_v26, %v1347_v19 }
 0x10f   : > { %v692_v30 = vadd.f32 %v1309_v25, %v1168_v20  ;;  %v1350_v32 = vpop.f32.mrf.mxu1 }
 0x110   : > { %v1311_v37 = vpop.f32.mrf.mxu0 }
 0x111   : > { %v1312_v39 = vadd.f32 %v1311_v37, %v1310_v27  ;;  %v1351_v40 = vpop.f32.mrf.mxu1  ;;  %v757_v42 = vadd.f32 %v1349_v31, %v692_v30 }
 0x112   : > { %v1371_v45 = vpop.f32.mrf.mxu0  ;;  %v1352_v47 = vadd.f32 %v1351_v40, %v1350_v32 }
 0x113   : > { %v695_v46 = vadd.f32 %v1312_v39, %v1168_v20  ;;  %v806_v48 = vadd.f32 %v1371_v45, %v741_v41  ;;  %v1375_v49 = vpop.f32.mrf.mxu1 }
 0x114   : > { %v822_v52 = vadd.f32 %v1375_v49, %v757_v42  ;;  %v797_v53 = vpop.f32.mrf.mxu0 }
 0x115   : > { %v838_v57 = vmin.f32 %v806_v48, 0.0  ;;  %v798_v58 = vadd.f32 %v797_v53, %v733_v50  ;;  %v813_v59 = vpop.f32.mrf.mxu1  ;;  %v760_v60 = vadd.f32 %v1352_v47, %v695_v46  ;;  %vm830_vm1 = vcmp.gt.f32.partialorder %v806_v48, 0.0 }
 0x116   : > { %v842_v0 = vmin.f32 %v822_v52, 0.0  ;;  %v814_v1 = vadd.f32 %v813_v59, %v749_v54  ;;  %v1372_v2 = vpop.f32.mrf.mxu0  ;;  %vm834_vm3 = vcmp.gt.f32.partialorder %v822_v52, 0.0 }
 0x117   : > { %v848_v4 = vmul.f32 1.442695, %v838_v57  ;;  %v836_v5 = vmin.f32 %v798_v58, 0.0  ;;  %v809_v6 = vadd.f32 %v1372_v2, %v744_v55  ;;  %v1376_v7 = vpop.f32.mrf.mxu1  ;;  %vm828_vm4 = vcmp.gt.f32.partialorder %v798_v58, 0.0 }
 0x118   : > { %v856_v8 = vmul.f32 1.442695, %v842_v0  ;;  %v840_v9 = vmin.f32 %v814_v1, 0.0  ;;  %v825_v10 = vadd.f32 %v1376_v7, %v760_v60  ;;  %v800_v12 = vpop.f32.mrf.mxu0  ;;  %vm832_vm5 = vcmp.gt.f32.partialorder %v814_v1, 0.0 }
 0x119   : > { %1538 = vpow2.f32 %v848_v4  ;;  %v844_v14 = vmul.f32 1.442695, %v836_v5  ;;  %v839_v15 = vmin.f32 %v809_v6, 0.0  ;;  %v816_v18 = vpop.f32.mrf.mxu1  ;;  %v801_v16 = vadd.f32 %v800_v12, %v736_v11 }
 0x11a   : > { %1540 = vpow2.f32 %v856_v8  ;;  %v852_v61 = vmul.f32 1.442695, %v840_v9  ;;  %v843_v63 = vmin.f32 %v825_v10, 0.0  ;;  %v817_v19 = vadd.f32 %v816_v18, %v752_v17 }
 0x11b   : > { %1542 = vpow2.f32 %v844_v14  ;;  %v850_v13 = vmul.f32 1.442695, %v839_v15  ;;  %v837_v21 = vmin.f32 %v801_v16, 0.0  ;;  %vm831_vm6 = vcmp.gt.f32.partialorder %v809_v6, 0.0 }
 0x11c   : > { %1544 = vpow2.f32 %v852_v61  ;;  %v858_v20 = vmul.f32 1.442695, %v843_v63  ;;  %v841_v22 = vmin.f32 %v817_v19, 0.0  ;;  %vm835_vm7 = vcmp.gt.f32.partialorder %v825_v10, 0.0 }
 0x11d   : > { %1546 = vpow2.f32 %v850_v13  ;;  %v846_v23 = vmul.f32 1.442695, %v837_v21  ;;  %vm829_vm8 = vcmp.gt.f32.partialorder %v801_v16, 0.0  ;;  %vm833_vm9 = vcmp.gt.f32.partialorder %v817_v19, 0.0 }
 0x11e   : > { %1548 = vpow2.f32 %v858_v20  ;;  %v854_v24 = vmul.f32 1.442695, %v841_v22 }
 0x11f   : > { %1550 = vpow2.f32 %v846_v23 }
 0x120   : > { %1552 = vpow2.f32 %v854_v24 }
 0x126   : > { %v1539_v25 = vpop.eup %1538 }
 0x127   : > { %v1541_v26 = vpop.eup %1540  ;;  %v1231_v27 = vadd.f32 -1.0, %v1539_v25 }
 0x128   : > { %v1543_v28 = vpop.eup %1542  ;;  %v1235_v29 = vadd.f32 -1.0, %v1541_v26 }
 0x129   : > { %v1545_v30 = vpop.eup %1544  ;;  %v870_v31 = vsel %vm830_vm1, %v806_v48, %v1231_v27  ;;  %v1229_v32 = vadd.f32 -1.0, %v1543_v28 }
 0x12a   : > { %v1547_v33 = vpop.eup %1546  ;;  %v1264_v34 = vpack.c.bf16 %v870_v31, %v870_v31  ;;  %v874_v35 = vsel %vm834_vm3, %v822_v52, %v1235_v29  ;;  %v1233_v36 = vadd.f32 -1.0, %v1545_v30 }
 0x12b   : > { %v1549_v37 = vpop.eup %1548  ;;  %v1268_v38 = vpack.c.bf16 %v874_v35, %v874_v35  ;;  %v868_v39 = vsel %vm828_vm4, %v798_v58, %v1229_v32  ;;  %v1232_v40 = vadd.f32 -1.0, %v1547_v33 }
 0x12c   : > { %911 = vst.msk [vmem:[%s1836_s12 + $0x8] sm:$0xf] %vm908_vm2, %v1264_v34  ;;  %v1262_v41 = vpack.c.bf16 %v868_v39, %v868_v39  ;;  %v872_v42 = vsel %vm832_vm5, %v814_v1, %v1233_v36  ;;  %v1236_v43 = vadd.f32 -1.0, %v1549_v37  ;;  %v1551_v46 = vpop.eup %1550 }
 0x12d   : > { %915 = vst.msk [vmem:[%s1836_s12 + $0x18] sm:$0xf] %vm908_vm2, %v1268_v38  ;;  %v1266_v44 = vpack.c.bf16 %v872_v42, %v872_v42  ;;  %v871_v45 = vsel %vm831_vm6, %v809_v6, %v1232_v40  ;;  %v1553_v49 = vpop.eup %1552  ;;  %v1230_v51 = vadd.f32 -1.0, %v1551_v46 }
 0x12e   : > { %909 = vst.msk [vmem:[%s1836_s12] sm:$0xf] %vm908_vm2, %v1262_v41  ;;  %v1265_v47 = vpack.c.bf16 %v871_v45, %v871_v45  ;;  %v875_v48 = vsel %vm835_vm7, %v825_v10, %v1236_v43  ;;  %v1234_v52 = vadd.f32 -1.0, %v1553_v49 }
 0x12f   : > { %913 = vst.msk [vmem:[%s1836_s12 + $0x10] sm:$0xf] %vm908_vm2, %v1266_v44  ;;  %v1269_v50 = vpack.c.bf16 %v875_v48, %v875_v48  ;;  %v869_v53 = vsel %vm829_vm8, %v801_v16, %v1230_v51  ;;  %923 = sbr.rel (!%p1687_p4) target bundleno = 352 (0x160), region = 36 }
 0x130   : > { %912 = vst.msk [vmem:[%s1836_s12 + $0xc] sm:$0xf] %vm908_vm2, %v1265_v47  ;;  %v1263_v54 = vpack.c.bf16 %v869_v53, %v869_v53  ;;  %v873_v55 = vsel %vm833_vm9, %v817_v19, %v1234_v52 }
 0x131   : > { %916 = vst.msk [vmem:[%s1836_s12 + $0x1c] sm:$0xf] %vm908_vm2, %v1269_v50  ;;  %v1267_v56 = vpack.c.bf16 %v873_v55, %v873_v55 }
 0x132   : > { %910 = vst.msk [vmem:[%s1836_s12 + $0x4] sm:$0xf] %vm908_vm2, %v1263_v54 }
 0x133   : > { %914 = vst.msk [vmem:[%s1836_s12 + $0x14] sm:$0xf] %vm908_vm2, %v1267_v56 }
 0x134   : > { %s1927_s21 = smov (!%p926_p8, %s925_s21), 8 }
 0x135   : > { %s1247_s26 = sshll.u32 %s1927_s21, 6 }
 0x136   : > { %p1250_p9 = scmp.eq.s32.totalorder %s1247_s26, 0 }
 0x137   : > { %s1867_s27 = sshrl.u32 (!%p1250_p9), %s1927_s21, 3 }
 0x138   : > { %934 = sbr.rel (%p1250_p9) target bundleno = 352 (0x160), region = 40  ;;  %p1251_p10 = scmp.le.s32.totalorder (!%p1250_p9), %s1867_s27, 0 }
 0x13d   : > { %1117 = sbr.rel (%p1251_p10) target bundleno = 335 (0x14f), region = 112  ;;  %s1920_s15 = smov (!%p1251_p10), %s1861_s25 }
 0x13e   : > { %s1921_s20 = smov (!%p1251_p10), %s1836_s12  ;;  %s1876_s30 = smov (!%p1251_p10), 0  }
 0x13f   : > { %s1878_s28 = smov (!%p1251_p10), 0  }
 0x142 LB: >> { %v951_v57 = vld [vmem:[%s1616_s20] sm:$0xf]  ;;  %v953_v58 = vld [vmem:[%s1616_s20 + $0x4] sm:$0xf]  ;;  %v955_v59 = vld [vmem:[%s1616_s20 + $0x8] sm:$0xf]  ;;  %s1624_s28 = sphi %s1878_s28, %s945_s28   ;;  %s1620_s30 = sphi %s1876_s30, %s1922_s30   ;;  %s1616_s20 = sphi %s1921_s20, %s972_s20   ;;  %s1612_s15 = sphi %s1920_s15, %s973_s15  }
 0x143   : >> { %952 = vst [vmem:[%s1612_s15] sm:$0xf] %v951_v57  ;;  %954 = vst [vmem:[%s1612_s15 + $0x4] sm:$0xf] %v953_v58  ;;  %v957_v60 = vld [vmem:[%s1616_s20 + $0xc] sm:$0xf]  ;;  %s967_s29 = sadd.s32 1, %s1620_s30 }
 0x144   : >> { %956 = vst [vmem:[%s1612_s15 + $0x8] sm:$0xf] %v955_v59  ;;  %v959_v62 = vld [vmem:[%s1616_s20 + $0x10] sm:$0xf]  ;;  %v961_v0 = vld [vmem:[%s1616_s20 + $0x14] sm:$0xf]  ;;  %p968_p11 = scmp.ge.s32.totalorder %s967_s29, %s1867_s27 }
 0x145   : >> { %958 = vst [vmem:[%s1612_s15 + $0xc] sm:$0xf] %v957_v60  ;;  %960 = vst [vmem:[%s1612_s15 + $0x10] sm:$0xf] %v959_v62  ;;  %v963_v1 = vld [vmem:[%s1616_s20 + $0x18] sm:$0xf] }
 0x146   : >> { %962 = vst [vmem:[%s1612_s15 + $0x14] sm:$0xf] %v961_v0  ;;  %v965_v2 = vld [vmem:[%s1616_s20 + $0x1c] sm:$0xf]  ;;  %964 = vst [vmem:[%s1612_s15 + $0x18] sm:$0xf] %v963_v1 }
 0x147   : >> { %966 = vst [vmem:[%s1612_s15 + $0x1c] sm:$0xf] %v965_v2  ;;  %s1929_s29 = smov (%p968_p11, %s967_s29), 0  ;;  %s945_s28 = sadd.s32 1, %s1624_s28  }
 0x148   : >> { %s1252_s4 = sshll.u32 %s1929_s29, 5  ;;  %p944_p12 = scmp.ge.s32.totalorder %s945_s28, %s1867_s27 }
 0x149   : >> { %s972_s20 = scalar_lea.vmem %s1836_s12, %s1252_s4 [#allocation2]   ;;  %s973_s15 = scalar_lea.vmem %s1861_s25, %s1252_s4  }
 0x14a   : >> { %s1922_s30 = smov %s1929_s29  ;;  %947 = sbr.rel (!%p944_p12) target bundleno = 322 (0x142), region = 118 }
 0x14f PF: > { %s1897_s5 = sand.u32 7, %s1927_s21   ;;  %s1271_s6 = sshll.u32 %s1867_s27, 5 }
 0x150   : > { %s978_s7 = scalar_lea.vmem %s1836_s12, %s1271_s6 [#allocation2]   ;;  %s980_s8 = scalar_lea.vmem %s1861_s25, %s1271_s6  }
 0x151   : > { %p1257_p13 = scmp.le.s32.totalorder %s1897_s5, 0 }
 0x152   : > { %s1626_s9 = smov (!%p1257_p13), %s980_s8   ;;  %s1630_s10 = smov (!%p1257_p13), %s978_s7  }
 0x153   : > { %1131 = sbr.rel (%p1257_p13) target bundleno = 352 (0x160), region = 123  ;;  %s1634_s11 = smov (!%p1257_p13), 0  }
 0x154   : > { %s1638_s14 = smov (!%p1257_p13), 0  }
 0x158 LB: >> { %v990_v3 = vld [vmem:[%s1632_s10] sm:$0xf]  ;;  %s992_s17 = sadd.s32 1, %s1636_s11  ;;  %s984_s14 = sadd.s32 1, %s1640_s14   ;;  %s1640_s14 = sphi %s1638_s14, %s984_s14   ;;  %s1636_s11 = sphi %s1634_s11, %s1635_s11   ;;  %s1632_s10 = sphi %s1630_s10, %s997_s10   ;;  %s1628_s9 = sphi %s1626_s9, %s998_s9  }
 0x159   : >> { %991 = vst [vmem:[%s1628_s9] sm:$0xf] %v990_v3  ;;  %p993_p0 = scmp.ge.s32.totalorder %s992_s17, %s1897_s5  ;;  %p983_p1 = scmp.ge.s32.totalorder %s984_s14, %s1897_s5 }
 0x15b   : >> { %s1931_s17 = smov (%p993_p0, %s992_s17), 0  ;;  %986 = sbr.rel (!%p983_p1) target bundleno = 344 (0x158), region = 129 }
 0x15c   : >> { %s1258_s18 = sshll.u32 %s1931_s17, 2  ;;  %s1635_s11 = smov %s1931_s17  }
 0x15d   : >> { %s997_s10 = scalar_lea.vmem %s978_s7, %s1258_s18 [#allocation2]   ;;  %s998_s9 = scalar_lea.vmem %s980_s8, %s1258_s18  }
 0x160 PF: > { %p10_p2 = scmp.ge.s32.totalorder %s1677_s16, 4   ;;  %s1923_s12 = smov %s1604_s13 }
 0x161   : > { %s1924_s13 = smov %s1685_s19  ;;  %s1925_s14 = smov %s1677_s16 }
 0x162   :  { %12 = sbr.rel (!%p10_p2) target bundleno = 2 (0x2), region = 140 }

// kernel: contrastive_forward.7
= control target key start
LH: loop header
LB: loop body
LE: loop exit
PB: predicated region body
PF: predicated region fallthrough
CT: control target
= control target key end

     0   :  { %8 = vsyncpa [#allocation3], 0  ;;  %v488_v28 = vlaneseq  ;;  %v3486_v32 = vmov 1966171168   ;;  %vm3488_vm0 = vmmov 0   ;;  %vm2134_vm1 = vcmask 523264   ;;  %s4274_s0 = inlined_call_operand.vmem [shape: bf16[2,3136], index: 0, kind: input, shape index: {}]   ;;  %s4275_s1 = inlined_call_operand.vmem [shape: bf16[3136,15], index: 1, kind: input, shape index: {}]   ;;  %s4276_s2 = inlined_call_operand.vmem [shape: f32[3,15], index: 2, kind: input, shape index: {}]   ;;  %s4277_s3 = inlined_call_operand.hbm [shape: f32[2,15], index: 3, kind: output, shape index: {}]  }
   0x1   :  { %v3220_v0 = vld [vmem:[%s4275_s1 + $0x78] sm:$0xff]   ;;  %v3224_v4 = vld [vmem:[%s4275_s1 + $0x70] sm:$0xff]   ;;  %v3228_v8 = vld [vmem:[%s4275_s1 + $0x68] sm:$0xff]   ;;  %v486_v33 = vunpack.c.l.s4 %v3486_v32  ;;  %vm2671_vm2 = vcmask 121856  }
   0x2   :  { %v3221_v1 = vld [vmem:[%s4275_s1 + $0x38] sm:$0xff]   ;;  %2933 = vmatprep.subr.bf16.mxu0 %v3220_v0  ;;  %v3225_v5 = vld [vmem:[%s4275_s1 + $0x30] sm:$0xff]   ;;  %v3229_v9 = vld [vmem:[%s4275_s1 + $0x28] sm:$0xff]   ;;  %v489_v34 = vshrl.u32 %v488_v28, 7 }
   0x3   :  { %v3222_v2 = vld [vmem:[%s4275_s1 + $0xf8] sm:$0xff]   ;;  %2934 = vmatpush3.bf16.msra.mxu0 %v3221_v1  ;;  %v3226_v6 = vld [vmem:[%s4275_s1 + $0xf0] sm:$0xff]   ;;  %v3230_v10 = vld [vmem:[%s4275_s1 + $0xe8] sm:$0xff]   ;;  %v487_v38 = vunpack.c.0.s8 %v486_v33 }
   0x4   :  { %v3223_v3 = vld [vmem:[%s4275_s1 + $0xb8] sm:$0xff]   ;;  %2955 = vmatprep.subr.bf16.mxu1 %v3222_v2  ;;  %2935 = vmatprep.subr.bf16.mxu0 %v3224_v4  ;;  %v3227_v7 = vld [vmem:[%s4275_s1 + $0xb0] sm:$0xff]   ;;  %v3231_v11 = vld [vmem:[%s4275_s1 + $0xa8] sm:$0xff]  }
   0x5   :  { %2956 = vmatpush3.bf16.msra.mxu1 %v3223_v3  ;;  %v3232_v12 = vld [vmem:[%s4275_s1 + $0x60] sm:$0xff]   ;;  %v3236_v16 = vld [vmem:[%s4275_s1 + $0x58] sm:$0xff]   ;;  %v3240_v20 = vld [vmem:[%s4275_s1 + $0x50] sm:$0xff]   ;;  %v3629_v44 = vsub.s32 %v487_v38, %v489_v34 }
   0x6   :  { %2957 = vmatprep.subr.bf16.mxu1 %v3226_v6  ;;  %v3233_v13 = vld [vmem:[%s4275_s1 + $0x20] sm:$0xff]   ;;  %v3237_v17 = vld [vmem:[%s4275_s1 + $0x18] sm:$0xff]   ;;  %v3241_v21 = vld [vmem:[%s4275_s1 + $0x10] sm:$0xff]  }
   0x7   :  { %2936 = vmatpush3.bf16.msra.mxu0 %v3225_v5  ;;  %v3234_v14 = vld [vmem:[%s4275_s1 + $0xe0] sm:$0xff]   ;;  %v3238_v18 = vld [vmem:[%s4275_s1 + $0xd8] sm:$0xff]   ;;  %v3242_v22 = vld [vmem:[%s4275_s1 + $0xd0] sm:$0xff]  }
   0x8   :  { %2937 = vmatprep.subr.bf16.mxu0 %v3228_v8  ;;  %v3235_v15 = vld [vmem:[%s4275_s1 + $0xa0] sm:$0xff]   ;;  %v3239_v19 = vld [vmem:[%s4275_s1 + $0x98] sm:$0xff]   ;;  %v3243_v23 = vld [vmem:[%s4275_s1 + $0x90] sm:$0xff]  }
   0x9   :  { %2958 = vmatpush3.bf16.msra.mxu1 %v3227_v7  ;;  %v3244_v24 = vld [vmem:[%s4275_s1 + $0x48] sm:$0xff]   ;;  %v3248_v29 = vld [vmem:[%s4275_s1 + $0x40] sm:$0xff]   ;;  %v3262_v43 = vld [vmem:[%s4274_s0 + $0x9a] ss:$25 sps:$4 sm:$0xff]  }
   0xa   :  { %2959 = vmatprep.subr.bf16.mxu1 %v3230_v10  ;;  %v3245_v25 = vld [vmem:[%s4275_s1 + $0x8] sm:$0xff]   ;;  %v3249_v30 = vld [vmem:[%s4275_s1] sm:$0xff]   ;;  %v3264_v50 = vld [vmem:[%s4275_s1 + $0x178] sm:$0xff]   ;;  %v3651_v54 = vrot.slane %v3262_v43, %v3629_v44 }
   0xb   :  { %2938 = vmatpush3.bf16.msra.mxu0 %v3229_v9  ;;  %v3246_v26 = vld [vmem:[%s4275_s1 + $0xc8] sm:$0xff]   ;;  %v3250_v31 = vld [vmem:[%s4275_s1 + $0xc0] sm:$0xff]   ;;  %v3266_v59 = vld [vmem:[%s4275_s1 + $0x1f8] sm:$0xff]  }
   0xc   :  { %2939 = vmatprep.subr.bf16.mxu0 %v3232_v12  ;;  %v3247_v27 = vld [vmem:[%s4275_s1 + $0x88] sm:$0xff]   ;;  %v3251_v35 = vld [vmem:[%s4274_s0] ss:$25 sps:$4 sm:$0xff]   ;;  %v3268_v10 = vld [vmem:[%s4275_s1 + $0x170] sm:$0xff]  }
   0xd   :  { %2960 = vmatpush3.bf16.msra.mxu1 %v3231_v11  ;;  %v3253_v36 = vld [vmem:[%s4274_s0 + $0x4] ss:$25 sps:$4 sm:$0xff]   ;;  %v3254_v37 = vld [vmem:[%s4274_s0 + $0x32] ss:$25 sps:$4 sm:$0xff]   ;;  %v491_v46 = vrot.slane %v3251_v35, %v3629_v44 }
   0xe   :  { %2961 = vmatprep.subr.bf16.mxu1 %v3234_v14  ;;  %v3256_v39 = vld [vmem:[%s4274_s0 + $0x36] ss:$25 sps:$4 sm:$0xff]   ;;  %v3257_v40 = vld [vmem:[%s4274_s0 + $0x64] ss:$25 sps:$4 sm:$0xff]   ;;  %v505_v47 = vrot.slane %v3254_v37, %v3629_v44  ;;  %v3642_v51 = vrot.slane %v3253_v36, %v3629_v44 }
   0xf   :  { %2940 = vmatpush3.bf16.msra.mxu0 %v3233_v13  ;;  %v3259_v41 = vld [vmem:[%s4274_s0 + $0x68] ss:$25 sps:$4 sm:$0xff]   ;;  %v3260_v42 = vld [vmem:[%s4274_s0 + $0x96] ss:$25 sps:$4 sm:$0xff]   ;;  %v519_v48 = vrot.slane %v3257_v40, %v3629_v44  ;;  %v3645_v52 = vrot.slane %v3256_v39, %v3629_v44 }
  0x10   :  { %2941 = vmatprep.subr.bf16.mxu0 %v3236_v16  ;;  %v3263_v45 = vld [vmem:[%s4275_s1 + $0x80] sm:$0xff]   ;;  %v533_v49 = vrot.slane %v3260_v42, %v3629_v44  ;;  %v3648_v53 = vrot.slane %v3259_v41, %v3629_v44  ;;  %v542_v55 = vcombine.high %v491_v46, %v505_v47  ;;  %v541_v57 = vcombine.low %v491_v46, %v505_v47  ;;  %v3265_v2 = vld [vmem:[%s4275_s1 + $0x138] sm:$0xff]   ;;  %v3270_v11 = vld [vmem:[%s4275_s1 + $0x1f0] sm:$0xff]  }
  0x11   :  { %2962 = vmatpush3.bf16.msra.mxu1 %v3235_v15  ;;  %v544_v60 = vcombine.high %v3642_v51, %v3645_v52  ;;  %v3267_v3 = vld [vmem:[%s4275_s1 + $0x1b8] sm:$0xff]   ;;  %v3269_v12 = vld [vmem:[%s4275_s1 + $0x130] sm:$0xff]   ;;  %v3272_v16 = vld [vmem:[%s4275_s1 + $0x168] sm:$0xff]   ;;  %v543_v36 = vcombine.low %v3642_v51, %v3645_v52 }
  0x12   :  { %2963 = vmatprep.subr.bf16.mxu1 %v3238_v18  ;;  %v546_v56 = vcombine.high %v519_v48, %v533_v49  ;;  %v545_v58 = vcombine.low %v519_v48, %v533_v49  ;;  %v548_v61 = vcombine.high %v3648_v53, %v3651_v54  ;;  %v569_v62 = vrot.slane %v542_v55, %v3629_v44  ;;  %v3271_v15 = vld [vmem:[%s4275_s1 + $0x1b0] sm:$0xff]   ;;  %v3273_v18 = vld [vmem:[%s4275_s1 + $0x128] sm:$0xff]   ;;  %v3292_v38 = vld [vmem:[%s4275_s1 + $0x140] sm:$0xff]  }
  0x13   :  { %2942 = vmatpush3.bf16.msra.mxu0 %v3237_v17  ;;  %v555_v0 = vrot.slane %v541_v57, %v3629_v44  ;;  %v576_v4 = vrot.slane %v544_v60, %v3629_v44  ;;  %v3274_v17 = vld [vmem:[%s4275_s1 + $0x1e8] sm:$0xff]   ;;  %v3284_v28 = vld [vmem:[%s4275_s1 + $0x150] sm:$0xff]   ;;  %v547_v37 = vcombine.low %v3648_v53, %v3651_v54  ;;  %v3294_v39 = vld [vmem:[%s4275_s1 + $0x1c0] sm:$0xff]   ;;  %v562_v42 = vrot.slane %v543_v36, %v3629_v44 }
  0x14   :  { %2943 = vmatprep.subr.bf16.mxu0 %v3240_v20  ;;  %v597_v63 = vrot.slane %v546_v56, %v3629_v44  ;;  %v583_v1 = vrot.slane %v545_v58, %v3629_v44  ;;  %v604_v5 = vrot.slane %v548_v61, %v3629_v44  ;;  %v3276_v20 = vld [vmem:[%s4275_s1 + $0x160] sm:$0xff]   ;;  %v3288_v32 = vld [vmem:[%s4275_s1 + $0x148] sm:$0xff]   ;;  %v3298_v46 = vld [vmem:[%s4275_s1 + $0x2f8] sm:$0xff]  }
  0x15   :  { %2964 = vmatpush3.bf16.msra.mxu1 %v3239_v19  ;;  %v3275_v19 = vld [vmem:[%s4275_s1 + $0x1a8] sm:$0xff]   ;;  %v3293_v40 = vld [vmem:[%s4275_s1 + $0x100] sm:$0xff]   ;;  %v590_v43 = vrot.slane %v547_v37, %v3629_v44  ;;  %v3297_v47 = vld [vmem:[%s4275_s1 + $0x238] sm:$0xff]  }
  0x16   :  { %2965 = vmatprep.subr.bf16.mxu1 %v3242_v22  ;;  %v609_v6 = vcombine.low %v569_v62, %v597_v63  ;;  %v605_v7 = vcombine.low %v555_v0, %v583_v1  ;;  %v610_v8 = vcombine.high %v569_v62, %v597_v63  ;;  %v606_v9 = vcombine.high %v555_v0, %v583_v1  ;;  %v3277_v22 = vld [vmem:[%s4275_s1 + $0x120] sm:$0xff]   ;;  %v3290_v33 = vld [vmem:[%s4275_s1 + $0x1c8] sm:$0xff]   ;;  %v3300_v51 = vld [vmem:[%s4275_s1 + $0x270] sm:$0xff]  }
  0x17   :  { %2944 = vmatpush3.bf16.msra.mxu0 %v3241_v21  ;;  %v611_v13 = vcombine.low %v576_v4, %v604_v5  ;;  %v612_v14 = vcombine.high %v576_v4, %v604_v5  ;;  %v3278_v21 = vld [vmem:[%s4275_s1 + $0x1e0] sm:$0xff]   ;;  %v3289_v34 = vld [vmem:[%s4275_s1 + $0x108] sm:$0xff]   ;;  %v607_v48 = vcombine.low %v562_v42, %v590_v43  ;;  %v608_v49 = vcombine.high %v562_v42, %v590_v43  ;;  %v3302_v52 = vld [vmem:[%s4275_s1 + $0x2f0] sm:$0xff]  }
  0x18   :  { %2945 = vmatprep.subr.bf16.mxu0 %v3244_v24  ;;  %2170 = vmatprep.mubr.bf16.mxu0 %v609_v6  ;;  %v3280_v24 = vld [vmem:[%s4275_s1 + $0x158] sm:$0xff]   ;;  %v3291_v35 = vld [vmem:[%s4275_s1 + $0x188] sm:$0xff]   ;;  %v3295_v41 = vld [vmem:[%s4275_s1 + $0x180] sm:$0xff]  }
  0x19   :  { %2966 = vmatpush3.bf16.msra.mxu1 %v3243_v23  ;;  %2211 = vmatprep.mubr.bf16.mxu1 %v610_v8  ;;  %v3279_v23 = vld [vmem:[%s4275_s1 + $0x1a0] sm:$0xff]   ;;  %v3301_v53 = vld [vmem:[%s4275_s1 + $0x230] sm:$0xff]   ;;  %v3304_v55 = vld [vmem:[%s4275_s1 + $0x268] sm:$0xff]  }
  0x1a   :  { %2967 = vmatprep.subr.bf16.mxu1 %v3246_v26  ;;  %v3281_v26 = vld [vmem:[%s4275_s1 + $0x118] sm:$0xff]   ;;  %v3303_v54 = vld [vmem:[%s4275_s1 + $0x2b0] sm:$0xff]   ;;  %v3306_v56 = vld [vmem:[%s4275_s1 + $0x2e8] sm:$0xff]  }
  0x1b   :  { %2946 = vmatpush3.bf16.msra.mxu0 %v3245_v25  ;;  %v3282_v25 = vld [vmem:[%s4275_s1 + $0x1d8] sm:$0xff]   ;;  %v3305_v57 = vld [vmem:[%s4275_s1 + $0x228] sm:$0xff]   ;;  %v3310_v60 = vld [vmem:[%s4275_s1 + $0x2e0] sm:$0xff]  }
  0x1c   :  { %2947 = vmatprep.subr.bf16.mxu0 %v3248_v29  ;;  %v3286_v29 = vld [vmem:[%s4275_s1 + $0x1d0] sm:$0xff]   ;;  %v3307_v58 = vld [vmem:[%s4275_s1 + $0x2a8] sm:$0xff]   ;;  %v3309_v61 = vld [vmem:[%s4275_s1 + $0x220] sm:$0xff]  }
  0x1d   :  { %2968 = vmatpush3.bf16.msra.mxu1 %v3247_v27  ;;  %v3283_v27 = vld [vmem:[%s4275_s1 + $0x198] sm:$0xff]   ;;  %v3311_v62 = vld [vmem:[%s4275_s1 + $0x2a0] sm:$0xff]   ;;  %v3318_v4 = vld [vmem:[%s4275_s1 + $0x2d0] sm:$0xff]  }
  0x1e   :  { %2969 = vmatprep.subr.bf16.mxu1 %v3250_v31  ;;  %v3287_v31 = vld [vmem:[%s4275_s1 + $0x190] sm:$0xff]   ;;  %v3312_v63 = vld [vmem:[%s4275_s1 + $0x258] sm:$0xff]   ;;  %v3322_v8 = vld [vmem:[%s4275_s1 + $0x2c8] sm:$0xff]  }
  0x1f   :  { %2948 = vmatpush3.bf16.msra.mxu0 %v3249_v30  ;;  %v3285_v30 = vld [vmem:[%s4275_s1 + $0x110] sm:$0xff]   ;;  %v3314_v0 = vld [vmem:[%s4275_s1 + $0x2d8] sm:$0xff]   ;;  %v3344_v43 = vld [vmem:[%s4275_s1 + $0x368] sm:$0xff]  }
  0x20   :  { %2977 = vmatprep.subr.bf16.mxu0 %v3264_v50  ;;  %v3299_v50 = vld [vmem:[%s4275_s1 + $0x2b8] sm:$0xff]   ;;  %v3317_v5 = vld [vmem:[%s4275_s1 + $0x210] sm:$0xff]  }
  0x21   :  { %2970 = vmatpush3.bf16.msra.mxu1 %v3263_v45  ;;  %v3296_v45 = vld [vmem:[%s4275_s1 + $0x278] sm:$0xff]   ;;  %v3319_v6 = vld [vmem:[%s4275_s1 + $0x290] sm:$0xff]  }
  0x22   :  { %2999 = vmatprep.subr.bf16.mxu1 %v3266_v59  ;;  %2171 = vmatmul.mubr.bf16.vlgmr.msra.gmra.mxu0 %v605_v7  ;;  %v3308_v59 = vld [vmem:[%s4275_s1 + $0x260] sm:$0xff]   ;;  %v3313_v1 = vld [vmem:[%s4275_s1 + $0x218] sm:$0xff]   ;;  %v3320_v7 = vld [vmem:[%s4275_s1 + $0x248] sm:$0xff]  }
  0x23   :  { %2978 = vmatpush3.bf16.msra.mxu0 %v3265_v2  ;;  %2252 = vmatprep.mubr.bf16.mxu0 %v611_v13  ;;  %v3315_v2 = vld [vmem:[%s4275_s1 + $0x298] sm:$0xff]   ;;  %v3325_v13 = vld [vmem:[%s4275_s1 + $0x200] sm:$0xff]   ;;  %v3343_v42 = vld [vmem:[%s4275_s1 + $0x3b0] sm:$0xff]  }
  0x24   :  { %2212 = vmatmul.mubr.bf16.vlgmr.msra.gmra.mxu1 %v606_v9  ;;  %2979 = vmatprep.subr.bf16.mxu0 %v3268_v10  ;;  %v3321_v9 = vld [vmem:[%s4275_s1 + $0x208] sm:$0xff]  }
  0x25   :  { %3000 = vmatpush3.bf16.msra.mxu1 %v3267_v3  ;;  %2293 = vmatprep.mubr.bf16.mxu1 %v612_v14  ;;  %v3316_v3 = vld [vmem:[%s4275_s1 + $0x250] sm:$0xff]   ;;  %v3323_v10 = vld [vmem:[%s4275_s1 + $0x288] sm:$0xff]  }
  0x26   :  { %3001 = vmatprep.subr.bf16.mxu1 %v3270_v11  ;;  %v3324_v11 = vld [vmem:[%s4275_s1 + $0x240] sm:$0xff]  }
  0x27   :  { %2980 = vmatpush3.bf16.msra.mxu0 %v3269_v12  ;;  %v3326_v12 = vld [vmem:[%s4275_s1 + $0x2c0] sm:$0xff]  }
  0x28   :  { %2981 = vmatprep.subr.bf16.mxu0 %v3272_v16  ;;  %v3327_v14 = vld [vmem:[%s4274_s0 + $0x8] ss:$25 sps:$4 sm:$0xff]  }
  0x29   :  { %3002 = vmatpush3.bf16.msra.mxu1 %v3271_v15  ;;  %v3329_v15 = vld [vmem:[%s4274_s0 + $0x3a] ss:$25 sps:$4 sm:$0xff]   ;;  %v3331_v16 = vld [vmem:[%s4274_s0 + $0x6c] ss:$25 sps:$4 sm:$0xff]  }
  0x2a   :  { %3003 = vmatprep.subr.bf16.mxu1 %v3274_v17  ;;  %v3333_v17 = vld [vmem:[%s4274_s0 + $0x9e] ss:$25 sps:$4 sm:$0xff]  }
  0x2b   :  { %2982 = vmatpush3.bf16.msra.mxu0 %v3273_v18  ;;  %v627_v18 = vrot.slane %v3327_v14, %v3629_v44 }
  0x2c   :  { %2983 = vmatprep.subr.bf16.mxu0 %v3276_v20  ;;  %v3335_v20 = vld [vmem:[%s4275_s1 + $0x280] sm:$0xff]  }
  0x2d   :  { %3004 = vmatpush3.bf16.msra.mxu1 %v3275_v19  ;;  %v641_v19 = vrot.slane %v3329_v15, %v3629_v44 }
  0x2e   :  { %3005 = vmatprep.subr.bf16.mxu1 %v3278_v21  ;;  %v655_v21 = vrot.slane %v3331_v16, %v3629_v44  ;;  %v3374_v16 = vld [vmem:[%s4275_s1 + $0x4f8] sm:$0xff]  }
  0x2f   :  { %2984 = vmatpush3.bf16.msra.mxu0 %v3277_v22  ;;  %v669_v22 = vrot.slane %v3333_v17, %v3629_v44 }
  0x30   :  { %2985 = vmatprep.subr.bf16.mxu0 %v3280_v24  ;;  %v678_v24 = vcombine.high %v627_v18, %v641_v19 }
  0x31   :  { %3006 = vmatpush3.bf16.msra.mxu1 %v3279_v23  ;;  %v3336_v23 = vld [vmem:[%s4275_s1 + $0x378] sm:$0xff]  }
  0x32   :  { %3007 = vmatprep.subr.bf16.mxu1 %v3282_v25  ;;  %v677_v25 = vcombine.low %v627_v18, %v641_v19 }
  0x33   :  { %2986 = vmatpush3.bf16.msra.mxu0 %v3281_v26  ;;  %v682_v26 = vcombine.high %v655_v21, %v669_v22 }
  0x34   :  { %2987 = vmatprep.subr.bf16.mxu0 %v3284_v28  ;;  %v3338_v28 = vld [vmem:[%s4275_s1 + $0x3f8] sm:$0xff]  }
  0x35   :  { %3008 = vmatpush3.bf16.msra.mxu1 %v3283_v27  ;;  %v681_v27 = vcombine.low %v655_v21, %v669_v22  ;;  %v3373_v21 = vld [vmem:[%s4275_s1 + $0x438] sm:$0xff]  }
  0x36   :  { %3009 = vmatprep.subr.bf16.mxu1 %v3286_v29  ;;  %v705_v29 = vrot.slane %v678_v24, %v3629_v44 }
  0x37   :  { %2988 = vmatpush3.bf16.msra.mxu0 %v3285_v30  ;;  %v691_v30 = vrot.slane %v677_v25, %v3629_v44 }
  0x38   :  { %2989 = vmatprep.subr.bf16.mxu0 %v3288_v32  ;;  %v719_v32 = vrot.slane %v681_v27, %v3629_v44 }
  0x39   :  { %3010 = vmatpush3.bf16.msra.mxu1 %v3287_v31  ;;  %v733_v31 = vrot.slane %v682_v26, %v3629_v44  ;;  %v3376_v26 = vld [vmem:[%s4275_s1 + $0x470] sm:$0xff]  }
  0x3a   :  { %3011 = vmatprep.subr.bf16.mxu1 %v3290_v33  ;;  %v3337_v33 = vld [vmem:[%s4275_s1 + $0x338] sm:$0xff]   ;;  %v741_v36 = vcombine.low %v691_v30, %v719_v32 }
  0x3b   :  { %2990 = vmatpush3.bf16.msra.mxu0 %v3289_v34  ;;  %v3339_v34 = vld [vmem:[%s4275_s1 + $0x3b8] sm:$0xff]   ;;  %v746_v37 = vcombine.high %v705_v29, %v733_v31 }
  0x3c   :  { %2991 = vmatprep.subr.bf16.mxu0 %v3292_v38  ;;  %v742_v38 = vcombine.high %v691_v30, %v719_v32  ;;  %v3377_v30 = vld [vmem:[%s4275_s1 + $0x430] sm:$0xff]   ;;  %v3380_v32 = vld [vmem:[%s4275_s1 + $0x468] sm:$0xff]  }
  0x3d   :  { %3012 = vmatpush3.bf16.msra.mxu1 %v3291_v35  ;;  %v745_v35 = vcombine.low %v705_v29, %v733_v31  ;;  %v3378_v29 = vld [vmem:[%s4275_s1 + $0x4f0] sm:$0xff]  }
  0x3e   :  { %3013 = vmatprep.subr.bf16.mxu1 %v3294_v39  ;;  %v3340_v39 = vld [vmem:[%s4275_s1 + $0x370] sm:$0xff]  }
  0x3f   :  { %2992 = vmatpush3.bf16.msra.mxu0 %v3293_v40  ;;  %v3342_v40 = vld [vmem:[%s4275_s1 + $0x3f0] sm:$0xff]  }
  0x40   :  { %3021 = vmatprep.subr.bf16.mxu0 %v3296_v45  ;;  %v3346_v45 = vld [vmem:[%s4275_s1 + $0x3e8] sm:$0xff]   ;;  %v3379_v31 = vld [vmem:[%s4275_s1 + $0x4b0] sm:$0xff]  }
  0x41   :  { %3014 = vmatpush3.bf16.msra.mxu1 %v3295_v41  ;;  %v3341_v41 = vld [vmem:[%s4275_s1 + $0x330] sm:$0xff]  }
  0x42   :  { %3043 = vmatprep.subr.bf16.mxu1 %v3298_v46  ;;  %2253 = vmatmul.mubr.bf16.vlgmr.msra.gmra.mxu0 %v607_v48  ;;  %v3345_v46 = vld [vmem:[%s4275_s1 + $0x328] sm:$0xff]   ;;  %v3348_v48 = vld [vmem:[%s4275_s1 + $0x360] sm:$0xff]  }
  0x43   :  { %3022 = vmatpush3.bf16.msra.mxu0 %v3297_v47  ;;  %2334 = vmatprep.mubr.bf16.mxu0 %v745_v35  ;;  %v3347_v47 = vld [vmem:[%s4275_s1 + $0x3a8] sm:$0xff]  }
  0x44   :  { %2294 = vmatmul.mubr.bf16.vlgmr.msra.gmra.mxu1 %v608_v49  ;;  %3023 = vmatprep.subr.bf16.mxu0 %v3300_v51  ;;  %v3350_v49 = vld [vmem:[%s4275_s1 + $0x3e0] sm:$0xff]   ;;  %v3383_v35 = vld [vmem:[%s4275_s1 + $0x4a8] sm:$0xff]  }
  0x45   :  { %3044 = vmatpush3.bf16.msra.mxu1 %v3299_v50  ;;  %2375 = vmatprep.mubr.bf16.mxu1 %v746_v37  ;;  %v3349_v50 = vld [vmem:[%s4275_s1 + $0x320] sm:$0xff]  }
  0x46   :  { %3045 = vmatprep.subr.bf16.mxu1 %v3302_v52  ;;  %v3351_v51 = vld [vmem:[%s4275_s1 + $0x3a0] sm:$0xff]   ;;  %v3352_v52 = vld [vmem:[%s4275_s1 + $0x358] sm:$0xff]  }
  0x47   :  { %3024 = vmatpush3.bf16.msra.mxu0 %v3301_v53  ;;  %v3354_v53 = vld [vmem:[%s4275_s1 + $0x3d8] sm:$0xff]   ;;  %v3386_v37 = vld [vmem:[%s4275_s1 + $0x4e0] sm:$0xff]  }
  0x48   :  { %3025 = vmatprep.subr.bf16.mxu0 %v3304_v55  ;;  %v3355_v55 = vld [vmem:[%s4275_s1 + $0x398] sm:$0xff]  }
  0x49   :  { %3046 = vmatpush3.bf16.msra.mxu1 %v3303_v54  ;;  %v3353_v54 = vld [vmem:[%s4275_s1 + $0x318] sm:$0xff]  }
  0x4a   :  { %3047 = vmatprep.subr.bf16.mxu1 %v3306_v56  ;;  %v3356_v56 = vld [vmem:[%s4275_s1 + $0x350] sm:$0xff]  }
  0x4b   :  { %3026 = vmatpush3.bf16.msra.mxu0 %v3305_v57  ;;  %v3358_v57 = vld [vmem:[%s4275_s1 + $0x3d0] sm:$0xff]  }
  0x4c   :  { %3027 = vmatprep.subr.bf16.mxu0 %v3308_v59  ;;  %v3359_v59 = vld [vmem:[%s4275_s1 + $0x390] sm:$0xff]  }
  0x4d   :  { %3048 = vmatpush3.bf16.msra.mxu1 %v3307_v58  ;;  %v3357_v58 = vld [vmem:[%s4275_s1 + $0x310] sm:$0xff]  }
  0x4e   :  { %3049 = vmatprep.subr.bf16.mxu1 %v3310_v60  ;;  %v3360_v60 = vld [vmem:[%s4275_s1 + $0x348] sm:$0xff]  }
  0x4f   :  { %3028 = vmatpush3.bf16.msra.mxu0 %v3309_v61  ;;  %v3362_v61 = vld [vmem:[%s4275_s1 + $0x3c8] sm:$0xff]  }
  0x50   :  { %3029 = vmatprep.subr.bf16.mxu0 %v3312_v63  ;;  %v3363_v63 = vld [vmem:[%s4275_s1 + $0x388] sm:$0xff]  }
  0x51   :  { %3050 = vmatpush3.bf16.msra.mxu1 %v3311_v62  ;;  %v3361_v62 = vld [vmem:[%s4275_s1 + $0x308] sm:$0xff]  }
  0x52   :  { %3051 = vmatprep.subr.bf16.mxu1 %v3314_v0  ;;  %v3364_v0 = vld [vmem:[%s4275_s1 + $0x340] sm:$0xff]  }
  0x53   :  { %3030 = vmatpush3.bf16.msra.mxu0 %v3313_v1  ;;  %v3366_v1 = vld [vmem:[%s4275_s1 + $0x3c0] sm:$0xff]  }
  0x54   :  { %3031 = vmatprep.subr.bf16.mxu0 %v3316_v3  ;;  %v3368_v3 = vld [vmem:[%s4274_s0 + $0x3e] ss:$25 sps:$4 sm:$0xff]  }
  0x55   :  { %3052 = vmatpush3.bf16.msra.mxu1 %v3315_v2  ;;  %v3367_v2 = vld [vmem:[%s4274_s0 + $0xc] ss:$25 sps:$4 sm:$0xff]  }
  0x56   :  { %3053 = vmatprep.subr.bf16.mxu1 %v3318_v4  ;;  %v3369_v4 = vld [vmem:[%s4274_s0 + $0x70] ss:$25 sps:$4 sm:$0xff]  }
  0x57   :  { %3032 = vmatpush3.bf16.msra.mxu0 %v3317_v5  ;;  %v3370_v5 = vld [vmem:[%s4274_s0 + $0xa2] ss:$25 sps:$4 sm:$0xff]  }
  0x58   :  { %3033 = vmatprep.subr.bf16.mxu0 %v3320_v7  ;;  %v634_v7 = vrot.slane %v3367_v2, %v3629_v44 }
  0x59   :  { %3054 = vmatpush3.bf16.msra.mxu1 %v3319_v6  ;;  %v3365_v6 = vld [vmem:[%s4275_s1 + $0x300] sm:$0xff]  }
  0x5a   :  { %3055 = vmatprep.subr.bf16.mxu1 %v3322_v8  ;;  %v648_v8 = vrot.slane %v3368_v3, %v3629_v44 }
  0x5b   :  { %3034 = vmatpush3.bf16.msra.mxu0 %v3321_v9  ;;  %v662_v9 = vrot.slane %v3369_v4, %v3629_v44 }
  0x5c   :  { %3035 = vmatprep.subr.bf16.mxu0 %v3324_v11  ;;  %v3371_v11 = vld [vmem:[%s4275_s1 + $0x380] sm:$0xff]   ;;  %v679_v15 = vcombine.low %v634_v7, %v648_v8 }
  0x5d   :  { %3056 = vmatpush3.bf16.msra.mxu1 %v3323_v10  ;;  %v676_v10 = vrot.slane %v3370_v5, %v3629_v44  ;;  %v3414_v5 = vld [vmem:[%s4275_s1 + $0x5f8] sm:$0xff]  }
  0x5e   :  { %3057 = vmatprep.subr.bf16.mxu1 %v3326_v12  ;;  %v3372_v12 = vld [vmem:[%s4275_s1 + $0x478] sm:$0xff]  }
  0x5f   :  { %3036 = vmatpush3.bf16.msra.mxu0 %v3325_v13  ;;  %v680_v13 = vcombine.high %v634_v7, %v648_v8  ;;  %v684_v14 = vcombine.high %v662_v9, %v676_v10  ;;  %v683_v17 = vcombine.low %v662_v9, %v676_v10  ;;  %v3413_v10 = vld [vmem:[%s4275_s1 + $0x538] sm:$0xff]  }
  0x60   :  { %3065 = vmatprep.subr.bf16.mxu0 %v3336_v23  ;;  %v3375_v23 = vld [vmem:[%s4275_s1 + $0x4b8] sm:$0xff]  }
  0x61   :  { %3058 = vmatpush3.bf16.msra.mxu1 %v3335_v20  ;;  %v712_v18 = vrot.slane %v680_v13, %v3629_v44  ;;  %v740_v19 = vrot.slane %v684_v14, %v3629_v44  ;;  %v698_v20 = vrot.slane %v679_v15, %v3629_v44  ;;  %v726_v22 = vrot.slane %v683_v17, %v3629_v44  ;;  %v3416_v15 = vld [vmem:[%s4275_s1 + $0x570] sm:$0xff]  }
  0x62   :  { %3087 = vmatprep.subr.bf16.mxu1 %v3338_v28  ;;  %2335 = vmatmul.mubr.bf16.vlgmr.msra.gmra.mxu0 %v741_v36  ;;  %v3384_v36 = vld [vmem:[%s4275_s1 + $0x460] sm:$0xff]  }
  0x63   :  { %3066 = vmatpush3.bf16.msra.mxu0 %v3337_v33  ;;  %v747_v24 = vcombine.low %v712_v18, %v740_v19  ;;  %v748_v25 = vcombine.high %v712_v18, %v740_v19  ;;  %v743_v27 = vcombine.low %v698_v20, %v726_v22  ;;  %v744_v28 = vcombine.high %v698_v20, %v726_v22  ;;  %v3382_v33 = vld [vmem:[%s4275_s1 + $0x4e8] sm:$0xff]   ;;  %v3418_v18 = vld [vmem:[%s4275_s1 + $0x5f0] sm:$0xff]  }
  0x64   :  { %2376 = vmatmul.mubr.bf16.vlgmr.msra.gmra.mxu1 %v742_v38  ;;  %3067 = vmatprep.subr.bf16.mxu0 %v3340_v39  ;;  %v3385_v38 = vld [vmem:[%s4275_s1 + $0x420] sm:$0xff]   ;;  %v3417_v19 = vld [vmem:[%s4275_s1 + $0x530] sm:$0xff]   ;;  %v3422_v22 = vld [vmem:[%s4275_s1 + $0x5e8] sm:$0xff]  }
  0x65   :  { %3088 = vmatpush3.bf16.msra.mxu1 %v3339_v34  ;;  %2416 = vmatprep.mubr.bf16.mxu0 %v747_v24  ;;  %v3381_v34 = vld [vmem:[%s4275_s1 + $0x428] sm:$0xff]   ;;  %v3387_v39 = vld [vmem:[%s4275_s1 + $0x4a0] sm:$0xff]   ;;  %v3419_v20 = vld [vmem:[%s4275_s1 + $0x5b0] sm:$0xff]  }
  0x66   :  { %3089 = vmatprep.subr.bf16.mxu1 %v3342_v40  ;;  %2457 = vmatprep.mubr.bf16.mxu1 %v748_v25  ;;  %v3388_v40 = vld [vmem:[%s4275_s1 + $0x458] sm:$0xff]   ;;  %v3423_v24 = vld [vmem:[%s4275_s1 + $0x5a8] sm:$0xff]   ;;  %v3424_v25 = vld [vmem:[%s4275_s1 + $0x560] sm:$0xff]  }
  0x67   :  { %3068 = vmatpush3.bf16.msra.mxu0 %v3341_v41  ;;  %v3390_v41 = vld [vmem:[%s4275_s1 + $0x4d8] sm:$0xff]  }
  0x68   :  { %3069 = vmatprep.subr.bf16.mxu0 %v3344_v43  ;;  %v3391_v43 = vld [vmem:[%s4275_s1 + $0x498] sm:$0xff]  }
  0x69   :  { %3090 = vmatpush3.bf16.msra.mxu1 %v3343_v42  ;;  %v3389_v42 = vld [vmem:[%s4275_s1 + $0x418] sm:$0xff]  }
  0x6a   :  { %3091 = vmatprep.subr.bf16.mxu1 %v3346_v45  ;;  %v3392_v45 = vld [vmem:[%s4275_s1 + $0x450] sm:$0xff]  }
  0x6b   :  { %3070 = vmatpush3.bf16.msra.mxu0 %v3345_v46  ;;  %v3394_v46 = vld [vmem:[%s4275_s1 + $0x4d0] sm:$0xff]  }
  0x6c   :  { %3071 = vmatprep.subr.bf16.mxu0 %v3348_v48  ;;  %v3395_v48 = vld [vmem:[%s4275_s1 + $0x490] sm:$0xff]  }
  0x6d   :  { %3092 = vmatpush3.bf16.msra.mxu1 %v3347_v47  ;;  %v3393_v47 = vld [vmem:[%s4275_s1 + $0x410] sm:$0xff]  }
  0x6e   :  { %3093 = vmatprep.subr.bf16.mxu1 %v3350_v49  ;;  %v3396_v49 = vld [vmem:[%s4275_s1 + $0x448] sm:$0xff]  }
  0x6f   :  { %3072 = vmatpush3.bf16.msra.mxu0 %v3349_v50  ;;  %v3398_v50 = vld [vmem:[%s4275_s1 + $0x4c8] sm:$0xff]  }
  0x70   :  { %3073 = vmatprep.subr.bf16.mxu0 %v3352_v52  ;;  %v3399_v52 = vld [vmem:[%s4275_s1 + $0x488] sm:$0xff]  }
  0x71   :  { %3094 = vmatpush3.bf16.msra.mxu1 %v3351_v51  ;;  %v3397_v51 = vld [vmem:[%s4275_s1 + $0x408] sm:$0xff]  }
  0x72   :  { %3095 = vmatprep.subr.bf16.mxu1 %v3354_v53  ;;  %v3400_v53 = vld [vmem:[%s4275_s1 + $0x440] sm:$0xff]  }
  0x73   :  { %3074 = vmatpush3.bf16.msra.mxu0 %v3353_v54  ;;  %v3402_v54 = vld [vmem:[%s4275_s1 + $0x4c0] sm:$0xff]  }
  0x74   :  { %3075 = vmatprep.subr.bf16.mxu0 %v3356_v56  ;;  %v3403_v56 = vld [vmem:[%s4274_s0 + $0x10] ss:$25 sps:$4 sm:$0xff]  }
  0x75   :  { %3096 = vmatpush3.bf16.msra.mxu1 %v3355_v55  ;;  %v3401_v55 = vld [vmem:[%s4275_s1 + $0x400] sm:$0xff]  }
  0x76   :  { %3097 = vmatprep.subr.bf16.mxu1 %v3358_v57  ;;  %v3405_v57 = vld [vmem:[%s4274_s0 + $0x42] ss:$25 sps:$4 sm:$0xff]  }
  0x77   :  { %3076 = vmatpush3.bf16.msra.mxu0 %v3357_v58  ;;  %v3407_v58 = vld [vmem:[%s4274_s0 + $0x74] ss:$25 sps:$4 sm:$0xff]  }
  0x78   :  { %3077 = vmatprep.subr.bf16.mxu0 %v3360_v60  ;;  %v763_v60 = vrot.slane %v3403_v56, %v3629_v44 }
  0x79   :  { %3098 = vmatpush3.bf16.msra.mxu1 %v3359_v59  ;;  %v3409_v59 = vld [vmem:[%s4274_s0 + $0xa6] ss:$25 sps:$4 sm:$0xff]  }
  0x7a   :  { %3099 = vmatprep.subr.bf16.mxu1 %v3362_v61  ;;  %v3411_v61 = vld [vmem:[%s4275_s1 + $0x480] sm:$0xff]  }
  0x7b   :  { %3078 = vmatpush3.bf16.msra.mxu0 %v3361_v62  ;;  %v777_v62 = vrot.slane %v3405_v57, %v3629_v44 }
  0x7c   :  { %3079 = vmatprep.subr.bf16.mxu0 %v3364_v0  ;;  %v805_v0 = vrot.slane %v3409_v59, %v3629_v44 }
  0x7d   :  { %3100 = vmatpush3.bf16.msra.mxu1 %v3363_v63  ;;  %v791_v63 = vrot.slane %v3407_v58, %v3629_v44  ;;  %v814_v2 = vcombine.high %v763_v60, %v777_v62  ;;  %v813_v4 = vcombine.low %v763_v60, %v777_v62  ;;  %v3448_v62 = vld [vmem:[%s4275_s1 + $0x618] sm:$0xff]  }
  0x7e   :  { %3101 = vmatprep.subr.bf16.mxu1 %v3366_v1  ;;  %v3412_v1 = vld [vmem:[%s4275_s1 + $0x578] sm:$0xff]  }
  0x7f   :  { %3080 = vmatpush3.bf16.msra.mxu0 %v3365_v6  ;;  %v818_v3 = vcombine.high %v791_v63, %v805_v0  ;;  %v817_v6 = vcombine.low %v791_v63, %v805_v0  ;;  %v841_v7 = vrot.slane %v814_v2, %v3629_v44  ;;  %v827_v9 = vrot.slane %v813_v4, %v3629_v44  ;;  %v3452_v4 = vld [vmem:[%s4274_s0 + $0x18] ss:$25 sps:$4 sm:$0x11]  }
  0x80   :  { %3109 = vmatprep.subr.bf16.mxu0 %v3372_v12  ;;  %v3415_v12 = vld [vmem:[%s4275_s1 + $0x5b8] sm:$0xff]   ;;  %v3487_v63 = vmov 0.0  }
  0x81   :  { %3102 = vmatpush3.bf16.msra.mxu1 %v3371_v11  ;;  %v869_v8 = vrot.slane %v818_v3, %v3629_v44  ;;  %v855_v11 = vrot.slane %v817_v6, %v3629_v44  ;;  %v3454_v6 = vld [vmem:[%s4274_s0 + $0x7c] ss:$25 sps:$4 sm:$0x11]  }
  0x82   :  { %3131 = vmatprep.subr.bf16.mxu1 %v3374_v16  ;;  %2417 = vmatmul.mubr.bf16.vlgmr.msra.gmra.mxu0 %v743_v27  ;;  %v3425_v27 = vld [vmem:[%s4275_s1 + $0x520] sm:$0xff]  }
  0x83   :  { %3110 = vmatpush3.bf16.msra.mxu0 %v3373_v21  ;;  %v881_v13 = vcombine.low %v841_v7, %v869_v8  ;;  %v882_v14 = vcombine.high %v841_v7, %v869_v8  ;;  %v877_v16 = vcombine.low %v827_v9, %v855_v11  ;;  %v878_v17 = vcombine.high %v827_v9, %v855_v11  ;;  %v3420_v21 = vld [vmem:[%s4275_s1 + $0x568] sm:$0xff]  }
  0x84   :  { %2458 = vmatmul.mubr.bf16.vlgmr.msra.gmra.mxu1 %v744_v28  ;;  %3111 = vmatprep.subr.bf16.mxu0 %v3376_v26  ;;  %v3426_v26 = vld [vmem:[%s4275_s1 + $0x5e0] sm:$0xff]   ;;  %v895_v8 = vrot.slane %v3452_v4, %v3629_v44 }
  0x85   :  { %3132 = vmatpush3.bf16.msra.mxu1 %v3375_v23  ;;  %2498 = vmatprep.mubr.bf16.mxu0 %v881_v13  ;;  %v3421_v23 = vld [vmem:[%s4275_s1 + $0x528] sm:$0xff]   ;;  %v3427_v28 = vld [vmem:[%s4275_s1 + $0x5a0] sm:$0xff]  }
  0x86   :  { %3133 = vmatprep.subr.bf16.mxu1 %v3378_v29  ;;  %2539 = vmatprep.mubr.bf16.mxu1 %v882_v14  ;;  %v3428_v29 = vld [vmem:[%s4275_s1 + $0x558] sm:$0xff]   ;;  %v3455_v7 = vld [vmem:[%s4274_s0 + $0xae] ss:$25 sps:$4 sm:$0x11]  }
  0x87   :  { %3112 = vmatpush3.bf16.msra.mxu0 %v3377_v30  ;;  %v3430_v30 = vld [vmem:[%s4275_s1 + $0x5d8] sm:$0xff]   ;;  %v916_v11 = vrot.slane %v3455_v7, %v3629_v44 }
  0x88   :  { %3113 = vmatprep.subr.bf16.mxu0 %v3380_v32  ;;  %v3431_v32 = vld [vmem:[%s4275_s1 + $0x598] sm:$0xff]  }
  0x89   :  { %3134 = vmatpush3.bf16.msra.mxu1 %v3379_v31  ;;  %v3429_v31 = vld [vmem:[%s4275_s1 + $0x518] sm:$0xff]  }
  0x8a   :  { %3135 = vmatprep.subr.bf16.mxu1 %v3382_v33  ;;  %v3432_v33 = vld [vmem:[%s4275_s1 + $0x550] sm:$0xff]  }
  0x8b   :  { %3114 = vmatpush3.bf16.msra.mxu0 %v3381_v34  ;;  %v3434_v34 = vld [vmem:[%s4275_s1 + $0x5d0] sm:$0xff]  }
  0x8c   :  { %3115 = vmatprep.subr.bf16.mxu0 %v3384_v36  ;;  %v3435_v36 = vld [vmem:[%s4275_s1 + $0x590] sm:$0xff]  }
  0x8d   :  { %3136 = vmatpush3.bf16.msra.mxu1 %v3383_v35  ;;  %v3433_v35 = vld [vmem:[%s4275_s1 + $0x510] sm:$0xff]  }
  0x8e   :  { %3137 = vmatprep.subr.bf16.mxu1 %v3386_v37  ;;  %v3436_v37 = vld [vmem:[%s4275_s1 + $0x548] sm:$0xff]  }
  0x8f   :  { %3116 = vmatpush3.bf16.msra.mxu0 %v3385_v38  ;;  %v3438_v38 = vld [vmem:[%s4275_s1 + $0x5c8] sm:$0xff]  }
  0x90   :  { %3117 = vmatprep.subr.bf16.mxu0 %v3388_v40  ;;  %v3439_v40 = vld [vmem:[%s4275_s1 + $0x588] sm:$0xff]  }
  0x91   :  { %3138 = vmatpush3.bf16.msra.mxu1 %v3387_v39  ;;  %v3437_v39 = vld [vmem:[%s4275_s1 + $0x508] sm:$0xff]  }
  0x92   :  { %3139 = vmatprep.subr.bf16.mxu1 %v3390_v41  ;;  %v3440_v41 = vld [vmem:[%s4275_s1 + $0x540] sm:$0xff]  }
  0x93   :  { %3118 = vmatpush3.bf16.msra.mxu0 %v3389_v42  ;;  %v3442_v42 = vld [vmem:[%s4275_s1 + $0x5c0] sm:$0xff]  }
  0x94   :  { %3119 = vmatprep.subr.bf16.mxu0 %v3392_v45  ;;  %v3444_v45 = vld [vmem:[%s4274_s0 + $0x46] ss:$25 sps:$4 sm:$0xff]  }
  0x95   :  { %3140 = vmatpush3.bf16.msra.mxu1 %v3391_v43  ;;  %v3443_v43 = vld [vmem:[%s4274_s0 + $0x14] ss:$25 sps:$4 sm:$0xff]  }
  0x96   :  { %3141 = vmatprep.subr.bf16.mxu1 %v3394_v46  ;;  %v3445_v46 = vld [vmem:[%s4274_s0 + $0x78] ss:$25 sps:$4 sm:$0xff]  }
  0x97   :  { %3120 = vmatpush3.bf16.msra.mxu0 %v3393_v47  ;;  %v3446_v47 = vld [vmem:[%s4274_s0 + $0xaa] ss:$25 sps:$4 sm:$0xff]  }
  0x98   :  { %3121 = vmatprep.subr.bf16.mxu0 %v3396_v49  ;;  %v770_v49 = vrot.slane %v3443_v43, %v3629_v44 }
  0x99   :  { %3142 = vmatpush3.bf16.msra.mxu1 %v3395_v48  ;;  %v3441_v48 = vld [vmem:[%s4275_s1 + $0x500] sm:$0xff]  }
  0x9a   :  { %3143 = vmatprep.subr.bf16.mxu1 %v3398_v50  ;;  %v784_v50 = vrot.slane %v3444_v45, %v3629_v44 }
  0x9b   :  { %3122 = vmatpush3.bf16.msra.mxu0 %v3397_v51  ;;  %v798_v51 = vrot.slane %v3445_v46, %v3629_v44 }
  0x9c   :  { %3123 = vmatprep.subr.bf16.mxu0 %v3400_v53  ;;  %v3447_v53 = vld [vmem:[%s4275_s1 + $0x580] sm:$0xff]  }
  0x9d   :  { %3144 = vmatpush3.bf16.msra.mxu1 %v3399_v52  ;;  %v812_v52 = vrot.slane %v3446_v47, %v3629_v44 }
  0x9e   :  { %3145 = vmatprep.subr.bf16.mxu1 %v3402_v54  ;;  %v816_v54 = vcombine.high %v770_v49, %v784_v50 }
  0x9f   :  { %3124 = vmatpush3.bf16.msra.mxu0 %v3401_v55  ;;  %v815_v55 = vcombine.low %v770_v49, %v784_v50  ;;  %v820_v56 = vcombine.high %v798_v51, %v812_v52  ;;  %v819_v57 = vcombine.low %v798_v51, %v812_v52  ;;  %v2733_v49 = vld [vmem:[%s4276_s2] ss:$0 sm:$0xff] }
  0xa0   :  { %3153 = vmatprep.subr.bf16.mxu0 %v3412_v1  ;;  %v848_v58 = vrot.slane %v816_v54, %v3629_v44 }
  0xa1   :  { %3146 = vmatpush3.bf16.msra.mxu1 %v3411_v61  ;;  %v834_v59 = vrot.slane %v815_v55, %v3629_v44  ;;  %v876_v60 = vrot.slane %v820_v56, %v3629_v44  ;;  %v862_v61 = vrot.slane %v819_v57, %v3629_v44 }
  0xa2   :  { %3175 = vmatprep.subr.bf16.mxu1 %v3414_v5  ;;  %2499 = vmatmul.mubr.bf16.vlgmr.msra.gmra.mxu0 %v877_v16  ;;  %v3453_v5 = vld [vmem:[%s4274_s0 + $0x4a] ss:$25 sps:$4 sm:$0x11]  }
  0xa3   :  { %3154 = vmatpush3.bf16.msra.mxu0 %v3413_v10  ;;  %v883_v0 = vcombine.low %v848_v58, %v876_v60  ;;  %v879_v1 = vcombine.low %v834_v59, %v862_v61  ;;  %v884_v2 = vcombine.high %v848_v58, %v876_v60  ;;  %v880_v3 = vcombine.high %v834_v59, %v862_v61 }
  0xa4   :  { %2540 = vmatmul.mubr.bf16.vlgmr.msra.gmra.mxu1 %v878_v17  ;;  %3155 = vmatprep.subr.bf16.mxu0 %v3416_v15  ;;  %v902_v9 = vrot.slane %v3453_v5, %v3629_v44  ;;  %v909_v10 = vrot.slane %v3454_v6, %v3629_v44  ;;  %v3450_v15 = vld [vmem:[%s4275_s1 + $0x608] sm:$0xff]  }
  0xa5   :  { %3176 = vmatpush3.bf16.msra.mxu1 %v3415_v12  ;;  %2580 = vmatprep.mubr.bf16.mxu0 %v883_v0  ;;  %v3449_v12 = vld [vmem:[%s4275_s1 + $0x610] sm:$0xff]  }
  0xa6   :  { %3177 = vmatprep.subr.bf16.mxu1 %v3418_v18  ;;  %2621 = vmatprep.mubr.bf16.mxu1 %v884_v2  ;;  %v917_v13 = vcombine.low %v895_v8, %v902_v9  ;;  %v918_v14 = vcombine.low %v909_v10, %v916_v11  ;;  %v3451_v18 = vld [vmem:[%s4275_s1 + $0x600] sm:$0xff]  }
  0xa7   :  { %3156 = vmatpush3.bf16.msra.mxu0 %v3417_v19 }
  0xa8   :  { %3157 = vmatprep.subr.bf16.mxu0 %v3420_v21  ;;  %v925_v16 = vrot.slane %v917_v13, %v3629_v44  ;;  %v932_v17 = vrot.slane %v918_v14, %v3629_v44 }
  0xa9   :  { %3178 = vmatpush3.bf16.msra.mxu1 %v3419_v20 }
  0xaa   :  { %3179 = vmatprep.subr.bf16.mxu1 %v3422_v22  ;;  %v933_v19 = vcombine.low %v925_v16, %v932_v17 }
  0xab   :  { %3158 = vmatpush3.bf16.msra.mxu0 %v3421_v23 }
  0xac   :  { %3159 = vmatprep.subr.bf16.mxu0 %v3424_v25 }
  0xad   :  { %3180 = vmatpush3.bf16.msra.mxu1 %v3423_v24 }
  0xae   :  { %3181 = vmatprep.subr.bf16.mxu1 %v3426_v26 }
  0xaf   :  { %3160 = vmatpush3.bf16.msra.mxu0 %v3425_v27 }
  0xb0   :  { %3161 = vmatprep.subr.bf16.mxu0 %v3428_v29 }
  0xb1   :  { %3182 = vmatpush3.bf16.msra.mxu1 %v3427_v28 }
  0xb2   :  { %3183 = vmatprep.subr.bf16.mxu1 %v3430_v30 }
  0xb3   :  { %3162 = vmatpush3.bf16.msra.mxu0 %v3429_v31 }
  0xb4   :  { %3163 = vmatprep.subr.bf16.mxu0 %v3432_v33 }
  0xb5   :  { %3184 = vmatpush3.bf16.msra.mxu1 %v3431_v32 }
  0xb6   :  { %3185 = vmatprep.subr.bf16.mxu1 %v3434_v34 }
  0xb7   :  { %3164 = vmatpush3.bf16.msra.mxu0 %v3433_v35 }
  0xb8   :  { %3165 = vmatprep.subr.bf16.mxu0 %v3436_v37 }
  0xb9   :  { %3186 = vmatpush3.bf16.msra.mxu1 %v3435_v36 }
  0xba   :  { %3187 = vmatprep.subr.bf16.mxu1 %v3438_v38 }
  0xbb   :  { %3166 = vmatpush3.bf16.msra.mxu0 %v3437_v39 }
  0xbc   :  { %3167 = vmatprep.subr.bf16.mxu0 %v3440_v41 }
  0xbd   :  { %3188 = vmatpush3.bf16.msra.mxu1 %v3439_v40 }
  0xbe   :  { %3189 = vmatprep.subr.bf16.mxu1 %v3442_v42 }
  0xbf   :  { %3168 = vmatpush3.bf16.msra.mxu0 %v3441_v48 }
  0xc0   :  { %3202 = vmatprep.subr.bf16.mxu0 %v3487_v63 }
  0xc1   :  { %3190 = vmatpush3.bf16.msra.mxu1 %v3447_v53 }
  0xc2   :  { %2581 = vmatmul.mubr.bf16.vlgmr.msra.gmra.mxu0 %v879_v1 }
  0xc3   :  { %3203 = vmatpush3.bf16.msra.mxu0 %v3448_v62  ;;  %3210 = vmatprep.mubr.msk.bf16.mxu0 %vm3488_vm0, %v3487_v63 }
  0xc4   :  { %2622 = vmatmul.mubr.bf16.vlgmr.msra.gmra.mxu1 %v880_v3  ;;  %3204 = vmatprep.subr.bf16.mxu0 %v3487_v63 }
  0xc7   :  { %3205 = vmatpush3.bf16.msra.mxu0 %v3449_v12 }
  0xc8   :  { %3206 = vmatprep.subr.bf16.mxu0 %v3487_v63 }
  0xcb   :  { %3207 = vmatpush3.bf16.msra.mxu0 %v3450_v15 }
  0xcc   :  { %3208 = vmatprep.subr.bf16.mxu0 %v3487_v63 }
  0xcf   :  { %3209 = vmatpush3.bf16.msra.mxu0 %v3451_v18 }
  0xd2   :  { %3211 = vmatmul.mubr.msk.bf16.vlgmr.msra.gmra.mxu0 %vm2134_vm1, %v933_v19 }
  0xe2   :  { %v2949_v20 = vpop.f32.mrf.mxu0 }
  0xe4   :  { %v2971_v21 = vpop.f32.mrf.mxu1  ;;  %v2950_v22 = vpop.f32.mrf.mxu0 }
  0xe5   :  { %v2951_v48 = vadd.f32 %v2950_v22, %v2949_v20 }
  0xe6   :  { %v2972_v23 = vpop.f32.mrf.mxu1  ;;  %v2952_v24 = vpop.f32.mrf.mxu0 }
  0xe7   :  { %v2173_v52 = vadd.f32 %v2951_v48, %v2733_v49  ;;  %v2973_v53 = vadd.f32 %v2972_v23, %v2971_v21 }
  0xe8   :  { %v2974_v25 = vpop.f32.mrf.mxu1  ;;  %v2953_v26 = vpop.f32.mrf.mxu0 }
  0xe9   :  { %v2954_v54 = vadd.f32 %v2953_v26, %v2952_v24  ;;  %v2214_v58 = vadd.f32 %v2973_v53, %v2173_v52 }
  0xea   :  { %v2975_v27 = vpop.f32.mrf.mxu1 }
  0xeb   :  { %v2176_v59 = vadd.f32 %v2954_v54, %v2733_v49  ;;  %v2976_v60 = vadd.f32 %v2975_v27, %v2974_v25 }
  0xed   :  { %v2217_v2 = vadd.f32 %v2976_v60, %v2176_v59 }
 0x102   :  { %v2993_v28 = vpop.f32.mrf.mxu0 }
 0x104   :  { %v3015_v44 = vpop.f32.mrf.mxu1  ;;  %v2994_v29 = vpop.f32.mrf.mxu0 }
 0x105   :  { %v2995_v55 = vadd.f32 %v2994_v29, %v2993_v28 }
 0x106   :  { %v3016_v30 = vpop.f32.mrf.mxu1  ;;  %v2996_v31 = vpop.f32.mrf.mxu0 }
 0x107   :  { %v2255_v63 = vadd.f32 %v2995_v55, %v2214_v58  ;;  %v3017_v0 = vadd.f32 %v3016_v30, %v3015_v44 }
 0x108   :  { %v3018_v32 = vpop.f32.mrf.mxu1  ;;  %v2997_v33 = vpop.f32.mrf.mxu0 }
 0x109   :  { %v2998_v1 = vadd.f32 %v2997_v33, %v2996_v31  ;;  %v2296_v6 = vadd.f32 %v3017_v0, %v2255_v63 }
 0x10a   :  { %v3019_v34 = vpop.f32.mrf.mxu1 }
 0x10b   :  { %v2258_v7 = vadd.f32 %v2998_v1, %v2217_v2  ;;  %v3020_v8 = vadd.f32 %v3019_v34, %v3018_v32 }
 0x10d   :  { %v2299_v14 = vadd.f32 %v3020_v8, %v2258_v7 }
 0x122   :  { %v3037_v35 = vpop.f32.mrf.mxu0 }
 0x124   :  { %v3059_v36 = vpop.f32.mrf.mxu1  ;;  %v3038_v37 = vpop.f32.mrf.mxu0 }
 0x125   :  { %v3039_v3 = vadd.f32 %v3038_v37, %v3037_v35 }
 0x126   :  { %v3060_v38 = vpop.f32.mrf.mxu1  ;;  %v3040_v39 = vpop.f32.mrf.mxu0 }
 0x127   :  { %v2337_v9 = vadd.f32 %v3039_v3, %v2296_v6  ;;  %v3061_v10 = vadd.f32 %v3060_v38, %v3059_v36 }
 0x128   :  { %v3062_v40 = vpop.f32.mrf.mxu1  ;;  %v3041_v41 = vpop.f32.mrf.mxu0 }
 0x129   :  { %v3042_v11 = vadd.f32 %v3041_v41, %v3040_v39  ;;  %v2378_v16 = vadd.f32 %v3061_v10, %v2337_v9 }
 0x12a   :  { %v3063_v42 = vpop.f32.mrf.mxu1 }
 0x12b   :  { %v2340_v17 = vadd.f32 %v3042_v11, %v2299_v14  ;;  %v3064_v18 = vadd.f32 %v3063_v42, %v3062_v40  ;;  %v2931_v14 = vld [vmem:[%s4276_s2 + $0x1] ss:$0 sm:$0xff] }
 0x12d   :  { %v2381_v26 = vadd.f32 %v3064_v18, %v2340_v17 }
 0x142   :  { %v3081_v43 = vpop.f32.mrf.mxu0 }
 0x144   :  { %v3103_v45 = vpop.f32.mrf.mxu1  ;;  %v3082_v46 = vpop.f32.mrf.mxu0 }
 0x145   :  { %v3083_v15 = vadd.f32 %v3082_v46, %v3081_v43 }
 0x146   :  { %v3104_v47 = vpop.f32.mrf.mxu1  ;;  %v3084_v50 = vpop.f32.mrf.mxu0 }
 0x147   :  { %v2419_v21 = vadd.f32 %v3083_v15, %v2378_v16  ;;  %v3105_v22 = vadd.f32 %v3104_v47, %v3103_v45  ;;  %v2932_v16 = vld [vmem:[%s4276_s2 + $0x2] ss:$0 sm:$0xff] }
 0x148   :  { %v3106_v51 = vpop.f32.mrf.mxu1  ;;  %v3085_v56 = vpop.f32.mrf.mxu0 }
 0x149   :  { %v3086_v23 = vadd.f32 %v3085_v56, %v3084_v50  ;;  %v2460_v44 = vadd.f32 %v3105_v22, %v2419_v21 }
 0x14a   :  { %v3107_v57 = vpop.f32.mrf.mxu1 }
 0x14b   :  { %v2422_v29 = vadd.f32 %v3086_v23, %v2381_v26  ;;  %v3108_v30 = vadd.f32 %v3107_v57, %v3106_v51 }
 0x14d   :  { %v2463_v36 = vadd.f32 %v3108_v30, %v2422_v29 }
 0x162   :  { %v3125_v61 = vpop.f32.mrf.mxu0 }
 0x164   :  { %v3147_v62 = vpop.f32.mrf.mxu1  ;;  %v3126_v4 = vpop.f32.mrf.mxu0 }
 0x165   :  { %v3127_v27 = vadd.f32 %v3126_v4, %v3125_v61 }
 0x166   :  { %v3148_v5 = vpop.f32.mrf.mxu1  ;;  %v3128_v12 = vpop.f32.mrf.mxu0 }
 0x167   :  { %v2501_v33 = vadd.f32 %v3127_v27, %v2460_v44  ;;  %v3149_v34 = vadd.f32 %v3148_v5, %v3147_v62 }
 0x168   :  { %v3150_v13 = vpop.f32.mrf.mxu1  ;;  %v3129_v19 = vpop.f32.mrf.mxu0 }
 0x169   :  { %v3130_v35 = vadd.f32 %v3129_v19, %v3128_v12  ;;  %v2542_v40 = vadd.f32 %v3149_v34, %v2501_v33 }
 0x16a   :  { %v3151_v20 = vpop.f32.mrf.mxu1 }
 0x16b   :  { %v2504_v41 = vadd.f32 %v3130_v35, %v2463_v36  ;;  %v3152_v42 = vadd.f32 %v3151_v20, %v3150_v13 }
 0x16d   :  { %v2545_v48 = vadd.f32 %v3152_v42, %v2504_v41 }
 0x182   :  { %v3169_v24 = vpop.f32.mrf.mxu0 }
 0x184   :  { %v3191_v25 = vpop.f32.mrf.mxu1  ;;  %v3170_v28 = vpop.f32.mrf.mxu0 }
 0x185   :  { %v3171_v37 = vadd.f32 %v3170_v28, %v3169_v24 }
 0x186   :  { %v3172_v31 = vpop.f32.mrf.mxu0  ;;  %v3192_v32 = vpop.f32.mrf.mxu1 }
 0x187   :  { %v2583_v43 = vadd.f32 %v3171_v37, %v2542_v40  ;;  %v3193_v45 = vadd.f32 %v3192_v32, %v3191_v25 }
 0x188   :  { %v3173_v38 = vpop.f32.mrf.mxu0  ;;  %v3194_v39 = vpop.f32.mrf.mxu1 }
 0x189   :  { %v3174_v46 = vadd.f32 %v3173_v38, %v3172_v31  ;;  %v2624_v51 = vadd.f32 %v3193_v45, %v2583_v43 }
 0x18a   :  { %v3195_v47 = vpop.f32.mrf.mxu1 }
 0x18b   :  { %v2586_v49 = vadd.f32 %v3174_v46, %v2545_v48  ;;  %v3196_v50 = vadd.f32 %v3195_v47, %v3194_v39 }
 0x18d   :  { %v2627_v55 = vadd.f32 %v3196_v50, %v2586_v49 }
 0x192   :  { %v2664_v52 = vpop.f32.mrf.mxu0 }
 0x193   :  { %v2665_v53 = vadd.f32 %v2664_v52, %v2624_v51 }
 0x194   :  { %v3212_v54 = vpop.f32.mrf.mxu0 }
 0x195   :  { %v2672_v56 = vsel %vm2671_vm2, %v2665_v53, 0.0 }
 0x196   :  { %v2667_v57 = vpop.f32.mrf.mxu0  ;;  %2673 = vadd.xlane.f32.xlu0 %v2672_v56 }
 0x197   :  { %v2668_v58 = vadd.f32 %v2667_v57, %v2627_v55 }
 0x198   :  { %v3213_v59 = vpop.f32.mrf.mxu0 }
 0x199   :  { %v2675_v60 = vsel %vm2671_vm2, %v2668_v58, 0.0 }
 0x19a   :  { %2676 = vadd.xlane.f32.xlu0 %v2675_v60 }
 0x21f   :  { %v2674_v61 = vpop.xlane.xlu0 %2673 }
 0x220   :  { %v2679_v62 = vmul.f32 0.06666667, %v2674_v61 }
 0x222   :  { %v2681_v63 = vsub.f32 %v2665_v53, %v2679_v62 }
 0x223   :  { %v2677_v0 = vpop.xlane.xlu0 %2676 }
 0x224   :  { %v2680_v1 = vmul.f32 0.06666667, %v2677_v0  ;;  %v2683_v2 = vmul.f32 %v2681_v63, %v2681_v63 }
 0x226   :  { %v2682_v3 = vsub.f32 %v2668_v58, %v2680_v1  ;;  %v2685_v4 = vsel %vm2671_vm2, %v2683_v2, 0.0 }
 0x227   :  { %2686 = vadd.xlane.f32.xlu1 %v2685_v4 }
 0x228   :  { %v2684_v5 = vmul.f32 %v2682_v3, %v2682_v3 }
 0x22a   :  { %v2688_v6 = vsel %vm2671_vm2, %v2684_v5, 0.0 }
 0x22b   :  { %2689 = vadd.xlane.f32.xlu1 %v2688_v6 }
 0x2b0   :  { %v2687_v7 = vpop.xlane.xlu1 %2686 }
 0x2b1   :  { %v2691_v8 = vmul.f32 0.06666667, %v2687_v7 }
 0x2b3   :  { %v2693_v9 = vadd.f32 1e-05, %v2691_v8 }
 0x2b4   :  { %v2690_v10 = vpop.xlane.xlu1 %2689 }
 0x2b5   :  { %3456 = vrsqrt.f32 %v2693_v9  ;;  %v2692_v11 = vmul.f32 0.06666667, %v2690_v10 }
 0x2b7   :  { %v2694_v12 = vadd.f32 1e-05, %v2692_v11 }
 0x2b9   :  { %3458 = vrsqrt.f32 %v2694_v12 }
 0x2c2   :  { %v3457_v13 = vpop.eup %3456 }
 0x2c3   :  { %v2697_v15 = vmul.f32 %v3457_v13, %v2681_v63 }
 0x2c5   :  { %v2704_v17 = vmul.f32 %v2931_v14, %v2697_v15 }
 0x2c6   :  { %v3459_v18 = vpop.eup %3458 }
 0x2c7   :  { %v2711_v19 = vadd.f32 %v2932_v16, %v2704_v17  ;;  %v2698_v20 = vmul.f32 %v3459_v18, %v2682_v3 }
 0x2c9   :  { %3460 = vtanh.f32 %v2711_v19  ;;  %v2705_v21 = vmul.f32 %v2931_v14, %v2698_v20 }
 0x2cb   :  { %v2712_v22 = vadd.f32 %v2932_v16, %v2705_v21 }
 0x2cd   :  { %3462 = vtanh.f32 %v2712_v22 }
 0x2d6   :  { %v3461_v23 = vpop.eup %3460 }
 0x2d7   :  { %2715 = vst.msk [vmem:[#allocation2] sm:$0xff] %vm2671_vm2, %v3461_v23 }
 0x2da   :  { %v3463_v24 = vpop.eup %3462 }
 0x2db   :  { %2716 = vst.msk [vmem:[#allocation2 + $0x8] sm:$0xff] %vm2671_vm2, %v3463_v24 }
 0x2dc   :  { %2721 = vsyncadd [#allocation3], 224  ;;  %s3489_s5 = smov [#allocation2]  }
 0x2dd   :  { %s2722_s6 = sshll.u32 %s3489_s5, 4  ;;  %s2723_s6 = int_to_ptr.vmem [resolvable:$true] %s2722_s6 }
 0x2de   :  { %s3464_s7 = scalar_lea.vmem %s2723_s6, 32  ;;  %s3468_s2 = scalar_lea.vmem %s2723_s6, 256 }
 0x2df   :  { %p3465_p0 = scmp.ne.s32.totalorder %s2723_s6, %s3464_s7  ;;  %p3469_p1 = scmp.lt.s32.totalorder %s2723_s6, %s2723_s6 }
 0x2e0   :  { %p3470_p2 = scmp.lt.s32.totalorder %s3468_s2, %s3464_s7 }
 0x2e2   :  { %p3471_p3 = por %p3470_p2, %p3469_p1 }
 0x2e4   :  { %p3472_p4 = pnand %p3471_p3, %p3465_p0 }
 0x2e6   :  { %3475 = shalt.err (!%p3472_p4)
}
 0x2e7   :  { %s3490_s8 = smov 32   ;;  %s3491_s9 = smov 2  }
 0x2e8   :  { %2728 = dma.vmem_to_hbm [thread:$0]  %s2723_s6, 32, %s4277_s3, [#allocation3], %s3490_s8, %s3490_s8, %s3491_s9  }
 0x2e9   :  { %3484 = dma.done.wait [#allocation3], 256  }
 0x2ea   :  { %3485 = vsyncadd [#allocation3], 4294967040 }
 0x2eb   :  { %2732 = vsyncpa [#allocation3], 1 }

</bundles_post_ra>
